<compile_context>
chip_gen: v6e
topology: v6e:2x2x1
jax: 0.10.0
libtpu: 0.0.40
codegen_flags: <defaults>
</compile_context>

<pallas_src>
import functools

import jax
import jax.numpy as jnp
from jax.experimental import pallas as pl
from jax.experimental.pallas import tpu as pltpu  # noqa: F401  (used when scaling; see TODOs)

# ----------------------------------------------------------------------------
# Small synthetic configuration (mirrors the MultiScopicCNN config structure)
# ----------------------------------------------------------------------------
BATCH = 2
IN_CHANNELS = 4
SEQ_LEN = 32

# scopes[branch][block][conv] = dilation
SCOPES = (
    ((1, 1), (1, 1)),   # branch 0
    ((2, 4), (4, 8)),   # branch 1
)
# num_filters[branch][block]  (same #filters for every conv of the block)
NUM_FILTERS = (
    (8, 16),
    (8, 16),
)
# filter_lengths[branch][block][conv] = kernel size
FILTER_LENGTHS = (
    ((3, 3), (3, 3)),
    ((3, 3), (3, 3)),
)
# subsample_lengths[branch][block]
SUBSAMPLE_LENGTHS = (
    (2, 2),
    (2, 2),
)
BN_EPS = 1e-5


# ----------------------------------------------------------------------------
# Fused Pallas kernel: the entire MultiScopicCNN forward in one invocation
# ----------------------------------------------------------------------------
def _fused_cnn_kernel(*refs, scopes, subsamples):
    """refs = (x_ref,
               <per branch, per block: w0, b0, w1, b1, ..., bn_scale, bn_shift>,
               out_ref)

    x_ref    : (B, L0, Cin)          input, NLC layout (VMEM)
    w        : (K*Cin, Cout)         conv weight, pre-reshaped for im2col
    b        : (1, Cout)             conv bias
    bn_scale : (1, C)                gamma / sqrt(var + eps)
    bn_shift : (1, C)                beta - mean * bn_scale
    out_ref  : (B, L_out, C_total)   concatenated branch outputs (the only HBM store)
    """
    x_ref = refs[0]
    out_ref = refs[-1]
    params = refs[1:-1]

    B = x_ref.shape[0]

    def conv1d_relu(x, w_ref, bias_ref, dil):
        """x: (B, L, Cin) value -> (B, L, Cout).  Dilated 'same' conv + bias + ReLU.

        im2col: the K dilated shifts are concatenated along lanes and contracted in a
        single MXU matmul against the (K*Cin, Cout) weight.
        """
        _, L, Cin = x.shape
        KC, Cout = w_ref.shape
        K = KC // Cin
        P = (K - 1) // 2 * dil                            # 'same' padding (odd K)
        if P > 0:
            zpad = jnp.zeros((B, P, Cin), jnp.float32)
            xp = jnp.concatenate([zpad, x, zpad], axis=1)  # in-register zero halo
        else:
            xp = x
        taps = [xp[:, t * dil:t * dil + L, :] for t in range(K)]   # (B, L, Cin) each
        cols = jnp.concatenate(taps, axis=-1) if K > 1 else taps[0]  # (B, L, K*Cin)
        y = jnp.dot(cols.reshape(B * L, KC), w_ref[...],
                    preferred_element_type=jnp.float32)             # one MXU push
        y = jnp.maximum(y + bias_ref[...], 0.0)                      # (1, Cout) broadcasts
        return y.reshape(B, L, Cout)

    def bn_maxpool(y, scale_ref, shift_ref, st):
        """y: (B, L, C) value.  Eval-mode BN affine, then MaxPool1d(k=st, s=st)."""
        _, L, C = y.shape
        y = y * scale_ref[...] + shift_ref[...]           # (1, C) broadcasts
        if st == 1:
            return y
        L_out = L // st                                   # floor, like nn.MaxPool1d
        # Non-overlapping windows (kernel == stride): split the length axis and take
        # an unrolled max over the window axis -- pure VPU, no masks, no MXU.
        yt = y[:, :L_out * st, :].reshape(B, L_out, st, C)
        m = yt[:, :, 0, :]
        for j in range(1, st):                            # static, tiny (st == 2)
            m = jnp.maximum(m, yt[:, :, j, :])
        return m

    x0 = x_ref[...]                  # read the input once; reused by both branches
    branch_outs = []
    p = 0
    for br_idx, branch_dils in enumerate(scopes):         # fully unrolled (static cfg)
        h = x0
        for blk_idx, block_dils in enumerate(branch_dils):
            for dil in block_dils:                        # (conv -> ReLU) * N
                w_ref, bias_ref = params[p], params[p + 1]
                p += 2
                h = conv1d_relu(h, w_ref, bias_ref, dil)
            scale_ref, shift_ref = params[p], params[p + 1]
            p += 2
            h = bn_maxpool(h, scale_ref, shift_ref, subsamples[br_idx][blk_idx])
            # TODO(synk): dropout prob is 0 in this config; at inference it is identity.
        branch_outs.append(h)
    # Single lane-dense(r) store of the concatenated branches == torch.cat(dim=1).
    out_ref[...] = jnp.concatenate(branch_outs, axis=-1).astype(out_ref.dtype)


# ----------------------------------------------------------------------------
# Wrapper: fold BN, flatten params, launch ONE pallas_call
# ----------------------------------------------------------------------------
def multi_scopic_cnn_forward(x_ncl, params):
    """x_ncl: (batch, channels, seq_len) — PyTorch layout.  Returns (batch, C_total, L_out)."""
    x = jnp.transpose(x_ncl, (0, 2, 1)).astype(jnp.float32)   # single NCL -> NLC transpose
    B, L0, Cin0 = x.shape

    flat_inputs = [x]
    scopes, subsamples = [], []
    c_total, l_final = 0, None
    for branch in params:
        L_cur, c_in = L0, Cin0
        br_dils, br_subs = [], []
        for blk in branch:
            blk_dils = []
            for conv in blk["convs"]:
                w = conv["w"]                                  # (K, Cin, Cout)
                K, Cin, Cout = w.shape
                flat_inputs.append(w.reshape(K * Cin, Cout))   # im2col weight layout
                flat_inputs.append(conv["b"].reshape(1, -1))
                blk_dils.append(conv["dilation"])
                c_in = Cout
            # fold eval-mode BatchNorm1d into a per-channel affine
            inv_std = 1.0 / jnp.sqrt(blk["bn_var"] + BN_EPS)
            scale = blk["bn_gamma"] * inv_std
            shift = blk["bn_beta"] - blk["bn_mean"] * scale
            flat_inputs.append(scale.reshape(1, -1))
            flat_inputs.append(shift.reshape(1, -1))
            br_dils.append(tuple(blk_dils))
            br_subs.append(blk["subsample"])
            L_cur //= blk["subsample"]
        scopes.append(tuple(br_dils))
        subsamples.append(tuple(br_subs))
        c_total += c_in
        if l_final is None:
            l_final = L_cur
        else:
            # Concatenation along channels requires identical per-branch lengths.
            assert l_final == L_cur, "branches must produce identical output lengths"

    kernel = functools.partial(_fused_cnn_kernel,
                               scopes=tuple(scopes),
                               subsamples=tuple(subsamples))
    out_nlc = pl.pallas_call(
        kernel,
        out_shape=jax.ShapeDtypeStruct((B, l_final, c_total), jnp.float32),
    )(*flat_inputs)
    # TODO(synk): at real CPSC2019 sizes (L≈4000+, 64–256 filters) add a grid over
    # length/batch (and branch for v7x's 2 TensorCores) with "parallel"
    # dimension_semantics and an explicit pltpu.CompilerParams(vmem_limit_bytes=...),
    # and carry activations/weights in bf16; at this toy size one grid-less step wins.
    return jnp.transpose(out_nlc, (0, 2, 1))                  # single NLC -> NCL transpose


# ----------------------------------------------------------------------------
# Pure-JAX reference (no Pallas) for a numerical cross-check
# ----------------------------------------------------------------------------
def _reference_forward(x_ncl, params):
    x = jnp.transpose(x_ncl, (0, 2, 1)).astype(jnp.float32)
    outs = []
    for branch in params:
        h = x
        for blk in branch:
            for conv in blk["convs"]:
                w, b, dil = conv["w"], conv["b"], conv["dilation"]
                K = w.shape[0]
                P = (K - 1) // 2 * dil
                L = h.shape[1]
                hp = jnp.pad(h, ((0, 0), (P, P), (0, 0)))
                acc = sum(jnp.einsum("blc,cd->bld", hp[:, t * dil:t * dil + L, :], w[t])
                          for t in range(K))
                h = jnp.maximum(acc + b, 0.0)
            inv_std = 1.0 / jnp.sqrt(blk["bn_var"] + BN_EPS)
            scale = blk["bn_gamma"] * inv_std
            shift = blk["bn_beta"] - blk["bn_mean"] * scale
            h = h * scale + shift
            st = blk["subsample"]
            L_out = h.shape[1] // st
            h = h[:, :L_out * st, :].reshape(h.shape[0], L_out, st, h.shape[2]).max(axis=2)
        outs.append(h)
    out = jnp.concatenate(outs, axis=-1)
    return jnp.transpose(out, (0, 2, 1))


# ----------------------------------------------------------------------------
# Parameter init (deterministic, synthetic)
# ----------------------------------------------------------------------------
def init_params(key):
    params = []
    for b_idx in range(len(SCOPES)):
        in_ch = IN_CHANNELS
        branch = []
        for blk_idx in range(len(SCOPES[b_idx])):
            out_ch = NUM_FILTERS[b_idx][blk_idx]
            convs = []
            conv_in = in_ch
            for c_idx, dil in enumerate(SCOPES[b_idx][blk_idx]):
                K = FILTER_LENGTHS[b_idx][blk_idx][c_idx]
                key, k1, k2 = jax.random.split(key, 3)
                # PyTorch Conv1d weight (Cout, Cin, K) -> kernel layout (K, Cin, Cout)
                w_pt = jax.random.normal(k1, (out_ch, conv_in, K), jnp.float32) * 0.1
                w = jnp.transpose(w_pt, (2, 1, 0))
                bias = jax.random.normal(k2, (out_ch,), jnp.float32) * 0.05
                convs.append(dict(w=w, b=bias, dilation=dil))
                conv_in = out_ch
            key, k3, k4, k5, k6 = jax.random.split(key, 5)
            branch.append(dict(
                convs=convs,
                bn_gamma=jax.random.uniform(k3, (out_ch,), jnp.float32, 0.5, 1.5),
                bn_beta=jax.random.normal(k4, (out_ch,), jnp.float32) * 0.1,
                bn_mean=jax.random.normal(k5, (out_ch,), jnp.float32) * 0.1,
                bn_var=jax.random.uniform(k6, (out_ch,), jnp.float32, 0.5, 1.5),
                subsample=SUBSAMPLE_LENGTHS[b_idx][blk_idx],
            ))
            in_ch = out_ch
        params.append(branch)
    return params


# ----------------------------------------------------------------------------
if __name__ == "__main__":
    key = jax.random.PRNGKey(0)
    key, kx = jax.random.split(key)
    x = jax.random.normal(kx, (BATCH, IN_CHANNELS, SEQ_LEN), jnp.float32)

    params = init_params(key)

    fwd = jax.jit(functools.partial(multi_scopic_cnn_forward, params=params))
    out = jax.block_until_ready(fwd(x))

    expected_channels = sum(nf[-1] for nf in NUM_FILTERS)      # concat over branches
    expected_len = SEQ_LEN
    for s in SUBSAMPLE_LENGTHS[0]:
        expected_len //= s
    assert out.shape == (BATCH, expected_channels, expected_len), out.shape
    assert out.dtype == jnp.float32

    ref = jax.block_until_ready(_reference_forward(x, params))
    max_err = float(jnp.max(jnp.abs(out - ref)))
    assert max_err < 1e-3, f"max abs error vs pure-JAX reference: {max_err}"

    print("KERNEL_OK")
</pallas_src>

<mosaic_0001>
module attributes {stable_mosaic.version = 11 : i64} {
  func.func @_fused_cnn_kernel(%arg0: memref<2x32x4xf32, #tpu.memory_space<vmem>>, %arg1: memref<12x8xf32, #tpu.memory_space<vmem>>, %arg2: memref<1x8xf32, #tpu.memory_space<vmem>>, %arg3: memref<24x8xf32, #tpu.memory_space<vmem>>, %arg4: memref<1x8xf32, #tpu.memory_space<vmem>>, %arg5: memref<1x8xf32, #tpu.memory_space<vmem>>, %arg6: memref<1x8xf32, #tpu.memory_space<vmem>>, %arg7: memref<24x16xf32, #tpu.memory_space<vmem>>, %arg8: memref<1x16xf32, #tpu.memory_space<vmem>>, %arg9: memref<48x16xf32, #tpu.memory_space<vmem>>, %arg10: memref<1x16xf32, #tpu.memory_space<vmem>>, %arg11: memref<1x16xf32, #tpu.memory_space<vmem>>, %arg12: memref<1x16xf32, #tpu.memory_space<vmem>>, %arg13: memref<12x8xf32, #tpu.memory_space<vmem>>, %arg14: memref<1x8xf32, #tpu.memory_space<vmem>>, %arg15: memref<24x8xf32, #tpu.memory_space<vmem>>, %arg16: memref<1x8xf32, #tpu.memory_space<vmem>>, %arg17: memref<1x8xf32, #tpu.memory_space<vmem>>, %arg18: memref<1x8xf32, #tpu.memory_space<vmem>>, %arg19: memref<24x16xf32, #tpu.memory_space<vmem>>, %arg20: memref<1x16xf32, #tpu.memory_space<vmem>>, %arg21: memref<48x16xf32, #tpu.memory_space<vmem>>, %arg22: memref<1x16xf32, #tpu.memory_space<vmem>>, %arg23: memref<1x16xf32, #tpu.memory_space<vmem>>, %arg24: memref<1x16xf32, #tpu.memory_space<vmem>>, %arg25: memref<2x8x32xf32, #tpu.memory_space<vmem>>) attributes {dimension_semantics = [], scalar_prefetch = 0 : i64, scratch_operands = 0 : i64, tpu.core_type = #tpu.core_type<tc>} {
    %c0 = arith.constant 0 : index
    %c0_0 = arith.constant 0 : index
    %c0_1 = arith.constant 0 : index
    %0 = vector.load %arg0[%c0, %c0_0, %c0_1] : memref<2x32x4xf32, #tpu.memory_space<vmem>>, vector<2x32x4xf32>
    %cst = arith.constant 0.000000e+00 : f32
    %1 = vector.broadcast %cst : f32 to vector<2x1x4xf32>
    %2 = tpu.concatenate %1, %0, %1 in 1 : vector<2x1x4xf32>, vector<2x32x4xf32>, vector<2x1x4xf32> -> vector<2x34x4xf32>
    %3 = vector.extract_strided_slice %2 {offsets = [0, 0, 0], sizes = [2, 32, 4], strides = [1, 1, 1]} : vector<2x34x4xf32> to vector<2x32x4xf32>
    %4 = vector.extract_strided_slice %2 {offsets = [0, 1, 0], sizes = [2, 32, 4], strides = [1, 1, 1]} : vector<2x34x4xf32> to vector<2x32x4xf32>
    %5 = vector.extract_strided_slice %2 {offsets = [0, 2, 0], sizes = [2, 32, 4], strides = [1, 1, 1]} : vector<2x34x4xf32> to vector<2x32x4xf32>
    %6 = tpu.concatenate %3, %4, %5 in 2 : vector<2x32x4xf32>, vector<2x32x4xf32>, vector<2x32x4xf32> -> vector<2x32x12xf32>
    %7 = vector.shape_cast %6 : vector<2x32x12xf32> to vector<64x12xf32>
    %c0_2 = arith.constant 0 : index
    %c0_3 = arith.constant 0 : index
    %8 = vector.load %arg1[%c0_2, %c0_3] : memref<12x8xf32, #tpu.memory_space<vmem>>, vector<12x8xf32>
    %cst_4 = arith.constant dense<0.000000e+00> : vector<64x8xf32>
    %9 = tpu.matmul %7, %8, %cst_4 {dimension_numbers = #tpu.dot_dimension_numbers<[1], [0], [0], [1], [0, 0, 1, 1], [], []>} : vector<64x12xf32>, vector<12x8xf32>, vector<64x8xf32> -> vector<64x8xf32>
    %c0_5 = arith.constant 0 : index
    %c0_6 = arith.constant 0 : index
    %10 = vector.load %arg2[%c0_5, %c0_6] : memref<1x8xf32, #tpu.memory_space<vmem>>, vector<1x8xf32>
    %11 = vector.broadcast %10 : vector<1x8xf32> to vector<64x8xf32>
    %12 = arith.addf %9, %11 : vector<64x8xf32>
    %cst_7 = arith.constant 0.000000e+00 : f32
    %13 = vector.broadcast %cst_7 : f32 to vector<64x8xf32>
    %14 = arith.maximumf %12, %13 : vector<64x8xf32>
    %15 = vector.shape_cast %14 : vector<64x8xf32> to vector<2x32x8xf32>
    %cst_8 = arith.constant 0.000000e+00 : f32
    %16 = vector.broadcast %cst_8 : f32 to vector<2x1x8xf32>
    %17 = tpu.concatenate %16, %15, %16 in 1 : vector<2x1x8xf32>, vector<2x32x8xf32>, vector<2x1x8xf32> -> vector<2x34x8xf32>
    %18 = vector.extract_strided_slice %17 {offsets = [0, 0, 0], sizes = [2, 32, 8], strides = [1, 1, 1]} : vector<2x34x8xf32> to vector<2x32x8xf32>
    %19 = vector.extract_strided_slice %17 {offsets = [0, 1, 0], sizes = [2, 32, 8], strides = [1, 1, 1]} : vector<2x34x8xf32> to vector<2x32x8xf32>
    %20 = vector.extract_strided_slice %17 {offsets = [0, 2, 0], sizes = [2, 32, 8], strides = [1, 1, 1]} : vector<2x34x8xf32> to vector<2x32x8xf32>
    %21 = tpu.concatenate %18, %19, %20 in 2 : vector<2x32x8xf32>, vector<2x32x8xf32>, vector<2x32x8xf32> -> vector<2x32x24xf32>
    %22 = vector.shape_cast %21 : vector<2x32x24xf32> to vector<64x24xf32>
    %c0_9 = arith.constant 0 : index
    %c0_10 = arith.constant 0 : index
    %23 = vector.load %arg3[%c0_9, %c0_10] : memref<24x8xf32, #tpu.memory_space<vmem>>, vector<24x8xf32>
    %cst_11 = arith.constant dense<0.000000e+00> : vector<64x8xf32>
    %24 = tpu.matmul %22, %23, %cst_11 {dimension_numbers = #tpu.dot_dimension_numbers<[1], [0], [0], [1], [0, 0, 1, 1], [], []>} : vector<64x24xf32>, vector<24x8xf32>, vector<64x8xf32> -> vector<64x8xf32>
    %c0_12 = arith.constant 0 : index
    %c0_13 = arith.constant 0 : index
    %25 = vector.load %arg4[%c0_12, %c0_13] : memref<1x8xf32, #tpu.memory_space<vmem>>, vector<1x8xf32>
    %26 = vector.broadcast %25 : vector<1x8xf32> to vector<64x8xf32>
    %27 = arith.addf %24, %26 : vector<64x8xf32>
    %cst_14 = arith.constant 0.000000e+00 : f32
    %28 = vector.broadcast %cst_14 : f32 to vector<64x8xf32>
    %29 = arith.maximumf %27, %28 : vector<64x8xf32>
    %30 = vector.shape_cast %29 : vector<64x8xf32> to vector<2x32x8xf32>
    %c0_15 = arith.constant 0 : index
    %c0_16 = arith.constant 0 : index
    %31 = vector.load %arg5[%c0_15, %c0_16] : memref<1x8xf32, #tpu.memory_space<vmem>>, vector<1x8xf32>
    %32 = vector.shape_cast %31 : vector<1x8xf32> to vector<1x1x8xf32>
    %33 = vector.broadcast %32 : vector<1x1x8xf32> to vector<2x32x8xf32>
    %34 = arith.mulf %30, %33 : vector<2x32x8xf32>
    %c0_17 = arith.constant 0 : index
    %c0_18 = arith.constant 0 : index
    %35 = vector.load %arg6[%c0_17, %c0_18] : memref<1x8xf32, #tpu.memory_space<vmem>>, vector<1x8xf32>
    %36 = vector.shape_cast %35 : vector<1x8xf32> to vector<1x1x8xf32>
    %37 = vector.broadcast %36 : vector<1x1x8xf32> to vector<2x32x8xf32>
    %38 = arith.addf %34, %37 : vector<2x32x8xf32>
    %39 = vector.shape_cast %38 : vector<2x32x8xf32> to vector<2x16x2x8xf32>
    %40 = vector.extract_strided_slice %39 {offsets = [0, 0, 0, 0], sizes = [2, 16, 1, 8], strides = [1, 1, 1, 1]} : vector<2x16x2x8xf32> to vector<2x16x1x8xf32>
    %41 = vector.shape_cast %40 : vector<2x16x1x8xf32> to vector<2x16x8xf32>
    %42 = vector.extract_strided_slice %39 {offsets = [0, 0, 1, 0], sizes = [2, 16, 1, 8], strides = [1, 1, 1, 1]} : vector<2x16x2x8xf32> to vector<2x16x1x8xf32>
    %43 = vector.shape_cast %42 : vector<2x16x1x8xf32> to vector<2x16x8xf32>
    %44 = arith.maximumf %41, %43 : vector<2x16x8xf32>
    %cst_19 = arith.constant 0.000000e+00 : f32
    %45 = vector.broadcast %cst_19 : f32 to vector<2x1x8xf32>
    %46 = tpu.concatenate %45, %44, %45 in 1 : vector<2x1x8xf32>, vector<2x16x8xf32>, vector<2x1x8xf32> -> vector<2x18x8xf32>
    %47 = vector.extract_strided_slice %46 {offsets = [0, 0, 0], sizes = [2, 16, 8], strides = [1, 1, 1]} : vector<2x18x8xf32> to vector<2x16x8xf32>
    %48 = vector.extract_strided_slice %46 {offsets = [0, 1, 0], sizes = [2, 16, 8], strides = [1, 1, 1]} : vector<2x18x8xf32> to vector<2x16x8xf32>
    %49 = vector.extract_strided_slice %46 {offsets = [0, 2, 0], sizes = [2, 16, 8], strides = [1, 1, 1]} : vector<2x18x8xf32> to vector<2x16x8xf32>
    %50 = tpu.concatenate %47, %48, %49 in 2 : vector<2x16x8xf32>, vector<2x16x8xf32>, vector<2x16x8xf32> -> vector<2x16x24xf32>
    %51 = vector.shape_cast %50 : vector<2x16x24xf32> to vector<32x24xf32>
    %c0_20 = arith.constant 0 : index
    %c0_21 = arith.constant 0 : index
    %52 = vector.load %arg7[%c0_20, %c0_21] : memref<24x16xf32, #tpu.memory_space<vmem>>, vector<24x16xf32>
    %cst_22 = arith.constant dense<0.000000e+00> : vector<32x16xf32>
    %53 = tpu.matmul %51, %52, %cst_22 {dimension_numbers = #tpu.dot_dimension_numbers<[1], [0], [0], [1], [0, 0, 1, 1], [], []>} : vector<32x24xf32>, vector<24x16xf32>, vector<32x16xf32> -> vector<32x16xf32>
    %c0_23 = arith.constant 0 : index
    %c0_24 = arith.constant 0 : index
    %54 = vector.load %arg8[%c0_23, %c0_24] : memref<1x16xf32, #tpu.memory_space<vmem>>, vector<1x16xf32>
    %55 = vector.broadcast %54 : vector<1x16xf32> to vector<32x16xf32>
    %56 = arith.addf %53, %55 : vector<32x16xf32>
    %cst_25 = arith.constant 0.000000e+00 : f32
    %57 = vector.broadcast %cst_25 : f32 to vector<32x16xf32>
    %58 = arith.maximumf %56, %57 : vector<32x16xf32>
    %59 = vector.shape_cast %58 : vector<32x16xf32> to vector<2x16x16xf32>
    %cst_26 = arith.constant 0.000000e+00 : f32
    %60 = vector.broadcast %cst_26 : f32 to vector<2x1x16xf32>
    %61 = tpu.concatenate %60, %59, %60 in 1 : vector<2x1x16xf32>, vector<2x16x16xf32>, vector<2x1x16xf32> -> vector<2x18x16xf32>
    %62 = vector.extract_strided_slice %61 {offsets = [0, 0, 0], sizes = [2, 16, 16], strides = [1, 1, 1]} : vector<2x18x16xf32> to vector<2x16x16xf32>
    %63 = vector.extract_strided_slice %61 {offsets = [0, 1, 0], sizes = [2, 16, 16], strides = [1, 1, 1]} : vector<2x18x16xf32> to vector<2x16x16xf32>
    %64 = vector.extract_strided_slice %61 {offsets = [0, 2, 0], sizes = [2, 16, 16], strides = [1, 1, 1]} : vector<2x18x16xf32> to vector<2x16x16xf32>
    %65 = tpu.concatenate %62, %63, %64 in 2 : vector<2x16x16xf32>, vector<2x16x16xf32>, vector<2x16x16xf32> -> vector<2x16x48xf32>
    %66 = vector.shape_cast %65 : vector<2x16x48xf32> to vector<32x48xf32>
    %c0_27 = arith.constant 0 : index
    %c0_28 = arith.constant 0 : index
    %67 = vector.load %arg9[%c0_27, %c0_28] : memref<48x16xf32, #tpu.memory_space<vmem>>, vector<48x16xf32>
    %cst_29 = arith.constant dense<0.000000e+00> : vector<32x16xf32>
    %68 = tpu.matmul %66, %67, %cst_29 {dimension_numbers = #tpu.dot_dimension_numbers<[1], [0], [0], [1], [0, 0, 1, 1], [], []>} : vector<32x48xf32>, vector<48x16xf32>, vector<32x16xf32> -> vector<32x16xf32>
    %c0_30 = arith.constant 0 : index
    %c0_31 = arith.constant 0 : index
    %69 = vector.load %arg10[%c0_30, %c0_31] : memref<1x16xf32, #tpu.memory_space<vmem>>, vector<1x16xf32>
    %70 = vector.broadcast %69 : vector<1x16xf32> to vector<32x16xf32>
    %71 = arith.addf %68, %70 : vector<32x16xf32>
    %cst_32 = arith.constant 0.000000e+00 : f32
    %72 = vector.broadcast %cst_32 : f32 to vector<32x16xf32>
    %73 = arith.maximumf %71, %72 : vector<32x16xf32>
    %74 = vector.shape_cast %73 : vector<32x16xf32> to vector<2x16x16xf32>
    %c0_33 = arith.constant 0 : index
    %c0_34 = arith.constant 0 : index
    %75 = vector.load %arg11[%c0_33, %c0_34] : memref<1x16xf32, #tpu.memory_space<vmem>>, vector<1x16xf32>
    %76 = vector.shape_cast %75 : vector<1x16xf32> to vector<1x1x16xf32>
    %77 = vector.broadcast %76 : vector<1x1x16xf32> to vector<2x16x16xf32>
    %78 = arith.mulf %74, %77 : vector<2x16x16xf32>
    %c0_35 = arith.constant 0 : index
    %c0_36 = arith.constant 0 : index
    %79 = vector.load %arg12[%c0_35, %c0_36] : memref<1x16xf32, #tpu.memory_space<vmem>>, vector<1x16xf32>
    %80 = vector.shape_cast %79 : vector<1x16xf32> to vector<1x1x16xf32>
    %81 = vector.broadcast %80 : vector<1x1x16xf32> to vector<2x16x16xf32>
    %82 = arith.addf %78, %81 : vector<2x16x16xf32>
    %83 = vector.shape_cast %82 : vector<2x16x16xf32> to vector<2x8x2x16xf32>
    %84 = vector.extract_strided_slice %83 {offsets = [0, 0, 0, 0], sizes = [2, 8, 1, 16], strides = [1, 1, 1, 1]} : vector<2x8x2x16xf32> to vector<2x8x1x16xf32>
    %85 = vector.shape_cast %84 : vector<2x8x1x16xf32> to vector<2x8x16xf32>
    %86 = vector.extract_strided_slice %83 {offsets = [0, 0, 1, 0], sizes = [2, 8, 1, 16], strides = [1, 1, 1, 1]} : vector<2x8x2x16xf32> to vector<2x8x1x16xf32>
    %87 = vector.shape_cast %86 : vector<2x8x1x16xf32> to vector<2x8x16xf32>
    %88 = arith.maximumf %85, %87 : vector<2x8x16xf32>
    %cst_37 = arith.constant 0.000000e+00 : f32
    %89 = vector.broadcast %cst_37 : f32 to vector<2x2x4xf32>
    %90 = tpu.concatenate %89, %0, %89 in 1 : vector<2x2x4xf32>, vector<2x32x4xf32>, vector<2x2x4xf32> -> vector<2x36x4xf32>
    %91 = vector.extract_strided_slice %90 {offsets = [0, 0, 0], sizes = [2, 32, 4], strides = [1, 1, 1]} : vector<2x36x4xf32> to vector<2x32x4xf32>
    %92 = vector.extract_strided_slice %90 {offsets = [0, 2, 0], sizes = [2, 32, 4], strides = [1, 1, 1]} : vector<2x36x4xf32> to vector<2x32x4xf32>
    %93 = vector.extract_strided_slice %90 {offsets = [0, 4, 0], sizes = [2, 32, 4], strides = [1, 1, 1]} : vector<2x36x4xf32> to vector<2x32x4xf32>
    %94 = tpu.concatenate %91, %92, %93 in 2 : vector<2x32x4xf32>, vector<2x32x4xf32>, vector<2x32x4xf32> -> vector<2x32x12xf32>
    %95 = vector.shape_cast %94 : vector<2x32x12xf32> to vector<64x12xf32>
    %c0_38 = arith.constant 0 : index
    %c0_39 = arith.constant 0 : index
    %96 = vector.load %arg13[%c0_38, %c0_39] : memref<12x8xf32, #tpu.memory_space<vmem>>, vector<12x8xf32>
    %cst_40 = arith.constant dense<0.000000e+00> : vector<64x8xf32>
    %97 = tpu.matmul %95, %96, %cst_40 {dimension_numbers = #tpu.dot_dimension_numbers<[1], [0], [0], [1], [0, 0, 1, 1], [], []>} : vector<64x12xf32>, vector<12x8xf32>, vector<64x8xf32> -> vector<64x8xf32>
    %c0_41 = arith.constant 0 : index
    %c0_42 = arith.constant 0 : index
    %98 = vector.load %arg14[%c0_41, %c0_42] : memref<1x8xf32, #tpu.memory_space<vmem>>, vector<1x8xf32>
    %99 = vector.broadcast %98 : vector<1x8xf32> to vector<64x8xf32>
    %100 = arith.addf %97, %99 : vector<64x8xf32>
    %cst_43 = arith.constant 0.000000e+00 : f32
    %101 = vector.broadcast %cst_43 : f32 to vector<64x8xf32>
    %102 = arith.maximumf %100, %101 : vector<64x8xf32>
    %103 = vector.shape_cast %102 : vector<64x8xf32> to vector<2x32x8xf32>
    %cst_44 = arith.constant 0.000000e+00 : f32
    %104 = vector.broadcast %cst_44 : f32 to vector<2x4x8xf32>
    %105 = tpu.concatenate %104, %103, %104 in 1 : vector<2x4x8xf32>, vector<2x32x8xf32>, vector<2x4x8xf32> -> vector<2x40x8xf32>
    %106 = vector.extract_strided_slice %105 {offsets = [0, 0, 0], sizes = [2, 32, 8], strides = [1, 1, 1]} : vector<2x40x8xf32> to vector<2x32x8xf32>
    %107 = vector.extract_strided_slice %105 {offsets = [0, 4, 0], sizes = [2, 32, 8], strides = [1, 1, 1]} : vector<2x40x8xf32> to vector<2x32x8xf32>
    %108 = vector.extract_strided_slice %105 {offsets = [0, 8, 0], sizes = [2, 32, 8], strides = [1, 1, 1]} : vector<2x40x8xf32> to vector<2x32x8xf32>
    %109 = tpu.concatenate %106, %107, %108 in 2 : vector<2x32x8xf32>, vector<2x32x8xf32>, vector<2x32x8xf32> -> vector<2x32x24xf32>
    %110 = vector.shape_cast %109 : vector<2x32x24xf32> to vector<64x24xf32>
    %c0_45 = arith.constant 0 : index
    %c0_46 = arith.constant 0 : index
    %111 = vector.load %arg15[%c0_45, %c0_46] : memref<24x8xf32, #tpu.memory_space<vmem>>, vector<24x8xf32>
    %cst_47 = arith.constant dense<0.000000e+00> : vector<64x8xf32>
    %112 = tpu.matmul %110, %111, %cst_47 {dimension_numbers = #tpu.dot_dimension_numbers<[1], [0], [0], [1], [0, 0, 1, 1], [], []>} : vector<64x24xf32>, vector<24x8xf32>, vector<64x8xf32> -> vector<64x8xf32>
    %c0_48 = arith.constant 0 : index
    %c0_49 = arith.constant 0 : index
    %113 = vector.load %arg16[%c0_48, %c0_49] : memref<1x8xf32, #tpu.memory_space<vmem>>, vector<1x8xf32>
    %114 = vector.broadcast %113 : vector<1x8xf32> to vector<64x8xf32>
    %115 = arith.addf %112, %114 : vector<64x8xf32>
    %cst_50 = arith.constant 0.000000e+00 : f32
    %116 = vector.broadcast %cst_50 : f32 to vector<64x8xf32>
    %117 = arith.maximumf %115, %116 : vector<64x8xf32>
    %118 = vector.shape_cast %117 : vector<64x8xf32> to vector<2x32x8xf32>
    %c0_51 = arith.constant 0 : index
    %c0_52 = arith.constant 0 : index
    %119 = vector.load %arg17[%c0_51, %c0_52] : memref<1x8xf32, #tpu.memory_space<vmem>>, vector<1x8xf32>
    %120 = vector.shape_cast %119 : vector<1x8xf32> to vector<1x1x8xf32>
    %121 = vector.broadcast %120 : vector<1x1x8xf32> to vector<2x32x8xf32>
    %122 = arith.mulf %118, %121 : vector<2x32x8xf32>
    %c0_53 = arith.constant 0 : index
    %c0_54 = arith.constant 0 : index
    %123 = vector.load %arg18[%c0_53, %c0_54] : memref<1x8xf32, #tpu.memory_space<vmem>>, vector<1x8xf32>
    %124 = vector.shape_cast %123 : vector<1x8xf32> to vector<1x1x8xf32>
    %125 = vector.broadcast %124 : vector<1x1x8xf32> to vector<2x32x8xf32>
    %126 = arith.addf %122, %125 : vector<2x32x8xf32>
    %127 = vector.shape_cast %126 : vector<2x32x8xf32> to vector<2x16x2x8xf32>
    %128 = vector.extract_strided_slice %127 {offsets = [0, 0, 0, 0], sizes = [2, 16, 1, 8], strides = [1, 1, 1, 1]} : vector<2x16x2x8xf32> to vector<2x16x1x8xf32>
    %129 = vector.shape_cast %128 : vector<2x16x1x8xf32> to vector<2x16x8xf32>
    %130 = vector.extract_strided_slice %127 {offsets = [0, 0, 1, 0], sizes = [2, 16, 1, 8], strides = [1, 1, 1, 1]} : vector<2x16x2x8xf32> to vector<2x16x1x8xf32>
    %131 = vector.shape_cast %130 : vector<2x16x1x8xf32> to vector<2x16x8xf32>
    %132 = arith.maximumf %129, %131 : vector<2x16x8xf32>
    %cst_55 = arith.constant 0.000000e+00 : f32
    %133 = vector.broadcast %cst_55 : f32 to vector<2x4x8xf32>
    %134 = tpu.concatenate %133, %132, %133 in 1 : vector<2x4x8xf32>, vector<2x16x8xf32>, vector<2x4x8xf32> -> vector<2x24x8xf32>
    %135 = vector.extract_strided_slice %134 {offsets = [0, 0, 0], sizes = [2, 16, 8], strides = [1, 1, 1]} : vector<2x24x8xf32> to vector<2x16x8xf32>
    %136 = vector.extract_strided_slice %134 {offsets = [0, 4, 0], sizes = [2, 16, 8], strides = [1, 1, 1]} : vector<2x24x8xf32> to vector<2x16x8xf32>
    %137 = vector.extract_strided_slice %134 {offsets = [0, 8, 0], sizes = [2, 16, 8], strides = [1, 1, 1]} : vector<2x24x8xf32> to vector<2x16x8xf32>
    %138 = tpu.concatenate %135, %136, %137 in 2 : vector<2x16x8xf32>, vector<2x16x8xf32>, vector<2x16x8xf32> -> vector<2x16x24xf32>
    %139 = vector.shape_cast %138 : vector<2x16x24xf32> to vector<32x24xf32>
    %c0_56 = arith.constant 0 : index
    %c0_57 = arith.constant 0 : index
    %140 = vector.load %arg19[%c0_56, %c0_57] : memref<24x16xf32, #tpu.memory_space<vmem>>, vector<24x16xf32>
    %cst_58 = arith.constant dense<0.000000e+00> : vector<32x16xf32>
    %141 = tpu.matmul %139, %140, %cst_58 {dimension_numbers = #tpu.dot_dimension_numbers<[1], [0], [0], [1], [0, 0, 1, 1], [], []>} : vector<32x24xf32>, vector<24x16xf32>, vector<32x16xf32> -> vector<32x16xf32>
    %c0_59 = arith.constant 0 : index
    %c0_60 = arith.constant 0 : index
    %142 = vector.load %arg20[%c0_59, %c0_60] : memref<1x16xf32, #tpu.memory_space<vmem>>, vector<1x16xf32>
    %143 = vector.broadcast %142 : vector<1x16xf32> to vector<32x16xf32>
    %144 = arith.addf %141, %143 : vector<32x16xf32>
    %cst_61 = arith.constant 0.000000e+00 : f32
    %145 = vector.broadcast %cst_61 : f32 to vector<32x16xf32>
    %146 = arith.maximumf %144, %145 : vector<32x16xf32>
    %147 = vector.shape_cast %146 : vector<32x16xf32> to vector<2x16x16xf32>
    %cst_62 = arith.constant 0.000000e+00 : f32
    %148 = vector.broadcast %cst_62 : f32 to vector<2x8x16xf32>
    %149 = tpu.concatenate %148, %147, %148 in 1 : vector<2x8x16xf32>, vector<2x16x16xf32>, vector<2x8x16xf32> -> vector<2x32x16xf32>
    %150 = vector.extract_strided_slice %149 {offsets = [0, 0, 0], sizes = [2, 16, 16], strides = [1, 1, 1]} : vector<2x32x16xf32> to vector<2x16x16xf32>
    %151 = vector.extract_strided_slice %149 {offsets = [0, 8, 0], sizes = [2, 16, 16], strides = [1, 1, 1]} : vector<2x32x16xf32> to vector<2x16x16xf32>
    %152 = vector.extract_strided_slice %149 {offsets = [0, 16, 0], sizes = [2, 16, 16], strides = [1, 1, 1]} : vector<2x32x16xf32> to vector<2x16x16xf32>
    %153 = tpu.concatenate %150, %151, %152 in 2 : vector<2x16x16xf32>, vector<2x16x16xf32>, vector<2x16x16xf32> -> vector<2x16x48xf32>
    %154 = vector.shape_cast %153 : vector<2x16x48xf32> to vector<32x48xf32>
    %c0_63 = arith.constant 0 : index
    %c0_64 = arith.constant 0 : index
    %155 = vector.load %arg21[%c0_63, %c0_64] : memref<48x16xf32, #tpu.memory_space<vmem>>, vector<48x16xf32>
    %cst_65 = arith.constant dense<0.000000e+00> : vector<32x16xf32>
    %156 = tpu.matmul %154, %155, %cst_65 {dimension_numbers = #tpu.dot_dimension_numbers<[1], [0], [0], [1], [0, 0, 1, 1], [], []>} : vector<32x48xf32>, vector<48x16xf32>, vector<32x16xf32> -> vector<32x16xf32>
    %c0_66 = arith.constant 0 : index
    %c0_67 = arith.constant 0 : index
    %157 = vector.load %arg22[%c0_66, %c0_67] : memref<1x16xf32, #tpu.memory_space<vmem>>, vector<1x16xf32>
    %158 = vector.broadcast %157 : vector<1x16xf32> to vector<32x16xf32>
    %159 = arith.addf %156, %158 : vector<32x16xf32>
    %cst_68 = arith.constant 0.000000e+00 : f32
    %160 = vector.broadcast %cst_68 : f32 to vector<32x16xf32>
    %161 = arith.maximumf %159, %160 : vector<32x16xf32>
    %162 = vector.shape_cast %161 : vector<32x16xf32> to vector<2x16x16xf32>
    %c0_69 = arith.constant 0 : index
    %c0_70 = arith.constant 0 : index
    %163 = vector.load %arg23[%c0_69, %c0_70] : memref<1x16xf32, #tpu.memory_space<vmem>>, vector<1x16xf32>
    %164 = vector.shape_cast %163 : vector<1x16xf32> to vector<1x1x16xf32>
    %165 = vector.broadcast %164 : vector<1x1x16xf32> to vector<2x16x16xf32>
    %166 = arith.mulf %162, %165 : vector<2x16x16xf32>
    %c0_71 = arith.constant 0 : index
    %c0_72 = arith.constant 0 : index
    %167 = vector.load %arg24[%c0_71, %c0_72] : memref<1x16xf32, #tpu.memory_space<vmem>>, vector<1x16xf32>
    %168 = vector.shape_cast %167 : vector<1x16xf32> to vector<1x1x16xf32>
    %169 = vector.broadcast %168 : vector<1x1x16xf32> to vector<2x16x16xf32>
    %170 = arith.addf %166, %169 : vector<2x16x16xf32>
    %171 = vector.shape_cast %170 : vector<2x16x16xf32> to vector<2x8x2x16xf32>
    %172 = vector.extract_strided_slice %171 {offsets = [0, 0, 0, 0], sizes = [2, 8, 1, 16], strides = [1, 1, 1, 1]} : vector<2x8x2x16xf32> to vector<2x8x1x16xf32>
    %173 = vector.shape_cast %172 : vector<2x8x1x16xf32> to vector<2x8x16xf32>
    %174 = vector.extract_strided_slice %171 {offsets = [0, 0, 1, 0], sizes = [2, 8, 1, 16], strides = [1, 1, 1, 1]} : vector<2x8x2x16xf32> to vector<2x8x1x16xf32>
    %175 = vector.shape_cast %174 : vector<2x8x1x16xf32> to vector<2x8x16xf32>
    %176 = arith.maximumf %173, %175 : vector<2x8x16xf32>
    %177 = tpu.concatenate %88, %176 in 2 : vector<2x8x16xf32>, vector<2x8x16xf32> -> vector<2x8x32xf32>
    %c0_73 = arith.constant 0 : index
    %c0_74 = arith.constant 0 : index
    %c0_75 = arith.constant 0 : index
    %178 = vector.load %arg25[%c0_73, %c0_74, %c0_75] : memref<2x8x32xf32, #tpu.memory_space<vmem>>, vector<2x8x32xf32>
    tpu.vector_store %arg25[%c0_73, %c0_74, %c0_75], %177 {strides = array<i32>} : memref<2x8x32xf32, #tpu.memory_space<vmem>>, vector<2x8x32xf32>,
    return
  }
}

</mosaic_0001>

<bundles_post_ra>
// kernel: multi_scopic_cnn_forward.1
= control target key start
LH: loop header
LB: loop body
LE: loop exit
PB: predicated region body
PF: predicated region fallthrough
CT: control target
= control target key end

     0   :  { %s6057_s0 = inlined_call_operand.vmem [shape: f32[2,32,4], index: 0, kind: input, shape index: {}]   ;;  %s6058_s1 = inlined_call_operand.vmem [shape: f32[12,8], index: 1, kind: input, shape index: {}]   ;;  %s6059_s2 = inlined_call_operand.vmem [shape: f32[1,8], index: 2, kind: input, shape index: {}]   ;;  %s6060_s3 = inlined_call_operand.vmem [shape: f32[24,8], index: 3, kind: input, shape index: {}]   ;;  %s6061_s4 = inlined_call_operand.hbm [shape: f32[1,8], index: 4, kind: input, shape index: {}]   ;;  %s6062_s5 = inlined_call_operand.hbm [shape: f32[1,8], index: 5, kind: input, shape index: {}]   ;;  %s6063_s6 = inlined_call_operand.hbm [shape: f32[1,8], index: 6, kind: input, shape index: {}]   ;;  %s6064_s7 = inlined_call_operand.vmem [shape: f32[24,16], index: 7, kind: input, shape index: {}]   ;;  %s6065_s8 = inlined_call_operand.hbm [shape: f32[1,16], index: 8, kind: input, shape index: {}]   ;;  %s6066_s9 = inlined_call_operand.vmem [shape: f32[48,16], index: 9, kind: input, shape index: {}]   ;;  %s6067_s10 = inlined_call_operand.hbm [shape: f32[1,16], index: 10, kind: input, shape index: {}]   ;;  %s6068_s11 = inlined_call_operand.hbm [shape: f32[1,16], index: 11, kind: input, shape index: {}]   ;;  %s6069_s12 = inlined_call_operand.hbm [shape: f32[1,16], index: 12, kind: input, shape index: {}]   ;;  %s6070_s13 = inlined_call_operand.hbm [shape: f32[12,8], index: 13, kind: input, shape index: {}]   ;;  %s6071_s14 = inlined_call_operand.hbm [shape: f32[1,8], index: 14, kind: input, shape index: {}]   ;;  %s6072_s15 = inlined_call_operand.hbm [shape: f32[24,8], index: 15, kind: input, shape index: {}]   ;;  %s6073_s16 = inlined_call_operand.hbm [shape: f32[1,8], index: 16, kind: input, shape index: {}]   ;;  %s6074_s17 = inlined_call_operand.hbm [shape: f32[1,8], index: 17, kind: input, shape index: {}]   ;;  %s6075_s18 = inlined_call_operand.hbm [shape: f32[1,8], index: 18, kind: input, shape index: {}]   ;;  %s6076_s19 = inlined_call_operand.hbm [shape: f32[24,16], index: 19, kind: input, shape index: {}]   ;;  %s6077_s20 = inlined_call_operand.hbm [shape: f32[1,16], index: 20, kind: input, shape index: {}]   ;;  %s6078_s21 = inlined_call_operand.hbm [shape: f32[48,16], index: 21, kind: input, shape index: {}]   ;;  %s6079_s22 = inlined_call_operand.hbm [shape: f32[1,16], index: 22, kind: input, shape index: {}]   ;;  %s6080_s23 = inlined_call_operand.hbm [shape: f32[1,16], index: 23, kind: input, shape index: {}]   ;;  %s6081_s24 = inlined_call_operand.hbm [shape: f32[1,16], index: 24, kind: input, shape index: {}]   ;;  %s6082_s25 = inlined_call_operand.hbm [shape: f32[2,8,32], index: 25, kind: output, shape index: {}]  }
   0x1   :  { %6092 = sst [smem:[#allocation44_spill]] %s6057_s0 }
   0x2   :  { %6093 = sst [smem:[#allocation45_spill]] %s6058_s1 }
   0x3   :  { %6094 = sst [smem:[#allocation46_spill]] %s6059_s2 }
   0x4   :  { %6095 = sst [smem:[#allocation47_spill]] %s6060_s3 }
   0x5   :  { %6096 = sst [smem:[#allocation48_spill]] %s6061_s4 }
   0x6   :  { %6097 = sst [smem:[#allocation49_spill]] %s6062_s5 }
   0x7   :  { %6098 = sst [smem:[#allocation50_spill]] %s6063_s6 }
   0x8   :  { %6099 = sst [smem:[#allocation51_spill]] %s6064_s7 }
   0x9   :  { %6100 = sst [smem:[#allocation52_spill]] %s6065_s8 }
   0xa   :  { %6101 = sst [smem:[#allocation53_spill]] %s6066_s9 }
   0xb   :  { %30 = vsyncpa [#allocation3], 0 }
   0xc   :  { %31 = vsyncpa [#allocation6], 0 }
   0xd   :  { %32 = vsyncpa [#allocation9], 0 }
   0xe   :  { %33 = vsyncpa [#allocation12], 0 }
   0xf   :  { %34 = vsyncpa [#allocation15], 0 }
  0x10   :  { %35 = vsyncpa [#allocation18], 0 }
  0x11   :  { %36 = vsyncpa [#allocation21], 0 }
  0x12   :  { %37 = vsyncpa [#allocation24], 0 }
  0x13   :  { %38 = vsyncpa [#allocation27], 0 }
  0x14   :  { %39 = vsyncpa [#allocation30], 0 }
  0x15   :  { %40 = vsyncpa [#allocation4], 0  ;;  %s4572_s29 = smov [#allocation5]   ;;  %s4573_s6 = smov [#allocation8]  }
  0x16   :  { %s65_s2 = sshll.u32 %s4572_s29, 4  ;;  %s87_s30 = sshll.u32 %s4573_s6, 4  ;;  %s66_s2 = int_to_ptr.vmem [resolvable:$true] %s65_s2  ;;  %s88_s30 = int_to_ptr.vmem [resolvable:$true] %s87_s30 }
  0x17   :  { %s4158_s7 = scalar_lea.vmem %s66_s2, 16  ;;  %s4162_s3 = scalar_lea.vmem %s66_s2, 32 }
  0x18   :  { %p4159_p0 = scmp.ne.s32.totalorder %s66_s2, %s4158_s7  ;;  %p4163_p1 = scmp.lt.s32.totalorder %s66_s2, %s66_s2 }
  0x19   :  { %p4164_p2 = scmp.lt.s32.totalorder %s4162_s3, %s4158_s7 }
  0x1b   :  { %p4165_p3 = por %p4164_p2, %p4163_p1 }
  0x1d   :  { %p4166_p4 = pnand %p4165_p3, %p4159_p0 }
  0x1f   :  { %4169 = shalt.err (!%p4166_p4)
}
  0x20   :  { %s6102_s8 = sld [smem:[#allocation49_spill]]  ;;  %s4178_s27 = scalar_lea.vmem %s88_s30, 16 }
  0x21   :  { %p4179_p5 = scmp.ne.s32.totalorder %s88_s30, %s4178_s27  ;;  %s4182_s4 = scalar_lea.vmem %s88_s30, 32 }
  0x22   :  { %p4183_p6 = scmp.lt.s32.totalorder %s88_s30, %s88_s30  ;;  %p4184_p7 = scmp.lt.s32.totalorder %s4182_s4, %s4178_s27 }
  0x24   :  { %p4185_p8 = por %p4184_p7, %p4183_p6 }
  0x26   :  { %68 = dma.hbm_to_vmem [thread:$0]  %s6102_s8, 16, %s66_s2, [#allocation6]  }
  0x27   :  { %p4186_p9 = pnand %p4185_p8, %p4179_p5 }
  0x29   :  { %4189 = shalt.err (!%p4186_p9)
}
  0x2a   :  { %s6103_s5 = sld [smem:[#allocation52_spill]]  ;;  %s4574_s0 = smov [#allocation11]  }
  0x2b   :  { %s109_s29 = sshll.u32 %s4574_s0, 4  ;;  %s4575_s6 = smov [#allocation14]   ;;  %s110_s29 = int_to_ptr.vmem [resolvable:$true] %s109_s29 }
  0x2c   :  { %s128_s7 = sshll.u32 %s4575_s6, 4  ;;  %s4198_s3 = scalar_lea.vmem %s110_s29, 16  ;;  %s129_s7 = int_to_ptr.vmem [resolvable:$true] %s128_s7 }
  0x2d   :  { %p4199_p10 = scmp.ne.s32.totalorder %s110_s29, %s4198_s3  ;;  %s4202_s2 = scalar_lea.vmem %s110_s29, 32 }
  0x2e   :  { %p4203_p11 = scmp.lt.s32.totalorder %s110_s29, %s110_s29  ;;  %p4204_p12 = scmp.lt.s32.totalorder %s4202_s2, %s4198_s3 }
  0x30   :  { %90 = dma.hbm_to_vmem [thread:$0]  %s6103_s5, 16, %s88_s30, [#allocation9]  }
  0x31   :  { %p4205_p13 = por %p4204_p12, %p4203_p11 }
  0x33   :  { %p4206_p0 = pnand %p4205_p13, %p4199_p10 }
  0x35   :  { %4209 = shalt.err (!%p4206_p0)
}
  0x36   :  { %112 = dma.hbm_to_vmem [thread:$0]  %s6068_s11, 16, %s110_s29, [#allocation12]  }
  0x37   :  { %s4218_s8 = scalar_lea.vmem %s129_s7, 256  ;;  %p4223_p2 = scmp.lt.s32.totalorder %s129_s7, %s129_s7 }
  0x38   :  { %p4219_p1 = scmp.ne.s32.totalorder %s129_s7, %s4218_s8  ;;  %p4224_p3 = scmp.lt.s32.totalorder %s4218_s8, %s4218_s8 }
  0x3a   :  { %p4225_p4 = por %p4224_p3, %p4223_p2 }
  0x3c   :  { %p4226_p5 = pnand %p4225_p4, %p4219_p1 }
  0x3e   :  { %4229 = shalt.err (!%p4226_p5)
}
  0x3f   :  { %s4576_s30 = smov 128   ;;  %s4577_s27 = smov 8  }
  0x40   :  { %134 = dma.hbm_to_vmem [thread:$0]  %s6070_s13, 256, %s129_s7, [#allocation15], %s4576_s30, %s4576_s30, %s4577_s27  }
  0x41   :  { %s4578_s9 = smov [#allocation17]   ;;  %s4579_s0 = smov [#allocation20]  }
  0x42   :  { %s150_s5 = sshll.u32 %s4578_s9, 4  ;;  %s173_s11 = sshll.u32 %s4579_s0, 4  ;;  %s151_s5 = int_to_ptr.vmem [resolvable:$true] %s150_s5  ;;  %s174_s11 = int_to_ptr.vmem [resolvable:$true] %s173_s11 }
  0x43   :  { %s4238_s29 = scalar_lea.vmem %s151_s5, 384  ;;  %p4243_p7 = scmp.lt.s32.totalorder %s151_s5, %s151_s5 }
  0x44   :  { %p4239_p6 = scmp.ne.s32.totalorder %s151_s5, %s4238_s29  ;;  %p4244_p8 = scmp.lt.s32.totalorder %s4238_s29, %s4238_s29 }
  0x46   :  { %p4245_p9 = por %p4244_p8, %p4243_p7 }
  0x48   :  { %p4246_p10 = pnand %p4245_p9, %p4239_p6 }
  0x4a   :  { %4249 = shalt.err (!%p4246_p10)
}
  0x4b   :  { %156 = dma.hbm_to_vmem [thread:$0]  %s6072_s15, 384, %s151_s5, [#allocation18], %s4576_s30, %s4576_s30, %s4577_s27  }
  0x4c   :  { %s4258_s13 = scalar_lea.vmem %s174_s11, 16  ;;  %s4262_s7 = scalar_lea.vmem %s174_s11, 32 }
  0x4d   :  { %p4259_p11 = scmp.ne.s32.totalorder %s174_s11, %s4258_s13  ;;  %p4263_p12 = scmp.lt.s32.totalorder %s174_s11, %s174_s11 }
  0x4e   :  { %p4264_p13 = scmp.lt.s32.totalorder %s4262_s7, %s4258_s13 }
  0x50   :  { %p4265_p0 = por %p4264_p13, %p4263_p12 }
  0x52   :  { %p4266_p1 = pnand %p4265_p0, %p4259_p11 }
  0x54   :  { %4269 = shalt.err (!%p4266_p1)
}
  0x55   :  { %176 = dma.hbm_to_vmem [thread:$0]  %s6074_s17, 16, %s174_s11, [#allocation21]  }
  0x56   :  { %s4580_s1 = smov [#allocation23]   ;;  %s4581_s4 = smov [#allocation26]  }
  0x57   :  { %s192_s8 = sshll.u32 %s4580_s1, 4  ;;  %s214_s28 = sshll.u32 %s4581_s4, 4  ;;  %s193_s8 = int_to_ptr.vmem [resolvable:$true] %s192_s8  ;;  %s215_s28 = int_to_ptr.vmem [resolvable:$true] %s214_s28 }
  0x58   :  { %s4278_s9 = scalar_lea.vmem %s193_s8, 384  ;;  %p4283_p3 = scmp.lt.s32.totalorder %s193_s8, %s193_s8 }
  0x59   :  { %p4279_p2 = scmp.ne.s32.totalorder %s193_s8, %s4278_s9  ;;  %p4284_p4 = scmp.lt.s32.totalorder %s4278_s9, %s4278_s9 }
  0x5b   :  { %p4285_p5 = por %p4284_p4, %p4283_p3 }
  0x5d   :  { %p4286_p6 = pnand %p4285_p5, %p4279_p2 }
  0x5f   :  { %4289 = shalt.err (!%p4286_p6)
}
  0x60   :  { %198 = dma.hbm_to_vmem [thread:$0]  %s6076_s19, 384, %s193_s8, [#allocation24], %s4576_s30, %s4576_s30, %s4577_s27  }
  0x61   :  { %s4298_s17 = scalar_lea.vmem %s215_s28, 768  ;;  %p4303_p8 = scmp.lt.s32.totalorder %s215_s28, %s215_s28 }
  0x62   :  { %p4299_p7 = scmp.ne.s32.totalorder %s215_s28, %s4298_s17  ;;  %p4304_p9 = scmp.lt.s32.totalorder %s4298_s17, %s4298_s17 }
  0x64   :  { %p4305_p10 = por %p4304_p9, %p4303_p8 }
  0x66   :  { %p4306_p11 = pnand %p4305_p10, %p4299_p7 }
  0x68   :  { %4309 = shalt.err (!%p4306_p11)
}
  0x69   :  { %220 = dma.hbm_to_vmem [thread:$0]  %s6078_s21, 768, %s215_s28, [#allocation27], %s4576_s30, %s4576_s30, %s4577_s27  }
  0x6a   :  { %s4582_s29 = smov [#allocation29]   ;;  %s4583_s3 = smov [#allocation2]  }
  0x6b   :  { %s237_s6 = sshll.u32 %s4582_s29, 4  ;;  %s55_s13 = sshll.u32 %s4583_s3, 4  ;;  %s238_s6 = int_to_ptr.vmem [resolvable:$true] %s237_s6  ;;  %s56_s13 = int_to_ptr.vmem [resolvable:$true] %s55_s13 }
  0x6c   :  { %s4318_s19 = scalar_lea.vmem %s238_s6, 16  ;;  %s4322_s7 = scalar_lea.vmem %s238_s6, 32 }
  0x6d   :  { %p4319_p12 = scmp.ne.s32.totalorder %s238_s6, %s4318_s19  ;;  %p4323_p13 = scmp.lt.s32.totalorder %s238_s6, %s238_s6 }
  0x6e   :  { %p4324_p0 = scmp.lt.s32.totalorder %s4322_s7, %s4318_s19 }
  0x70   :  { %p4325_p1 = por %p4324_p0, %p4323_p13 }
  0x72   :  { %p4326_p2 = pnand %p4325_p1, %p4319_p12 }
  0x74   :  { %4329 = shalt.err (!%p4326_p2)
}
  0x75   :  { %240 = dma.hbm_to_vmem [thread:$0]  %s6080_s23, 16, %s238_s6, [#allocation30]  }
  0x76   :  { %s4338_s1 = scalar_lea.vmem %s56_s13, 16  ;;  %s4342_s21 = scalar_lea.vmem %s56_s13, 32 }
  0x77   :  { %p4339_p3 = scmp.ne.s32.totalorder %s56_s13, %s4338_s1  ;;  %p4343_p4 = scmp.lt.s32.totalorder %s56_s13, %s56_s13 }
  0x78   :  { %p4344_p5 = scmp.lt.s32.totalorder %s4342_s21, %s4338_s1 }
  0x7a   :  { %p4345_p6 = por %p4344_p5, %p4343_p4 }
  0x7c   :  { %p4346_p7 = pnand %p4345_p6, %p4339_p3 }
  0x7e   :  { %4349 = shalt.err (!%p4346_p7)
}
  0x7f   :  { %s6104_s28 = sld [smem:[#allocation48_spill]]  ;;  %s4584_s9 = smov [#allocation7]  }
  0x80   :  { %s75_s15 = sshll.u32 %s4584_s9, 4  ;;  %s4585_s5 = smov [#allocation10]   ;;  %s76_s15 = int_to_ptr.vmem [resolvable:$true] %s75_s15 }
  0x81   :  { %s99_s17 = sshll.u32 %s4585_s5, 4  ;;  %s4358_s0 = scalar_lea.vmem %s76_s15, 16  ;;  %s100_s17 = int_to_ptr.vmem [resolvable:$true] %s99_s17 }
  0x82   :  { %p4359_p8 = scmp.ne.s32.totalorder %s76_s15, %s4358_s0  ;;  %s4362_s23 = scalar_lea.vmem %s76_s15, 32 }
  0x83   :  { %p4363_p9 = scmp.lt.s32.totalorder %s76_s15, %s76_s15  ;;  %p4364_p10 = scmp.lt.s32.totalorder %s4362_s23, %s4358_s0 }
  0x85   :  { %58 = dma.hbm_to_vmem [thread:$0]  %s6104_s28, 16, %s56_s13, [#allocation3]  }
  0x86   :  { %p4365_p11 = por %p4364_p10, %p4363_p9 }
  0x88   :  { %p4366_p12 = pnand %p4365_p11, %p4359_p8 }
  0x8a   :  { %4369 = shalt.err (!%p4366_p12)
}
  0x8b   :  { %s6105_s6 = sld [smem:[#allocation50_spill]]  ;;  %s4378_s3 = scalar_lea.vmem %s100_s17, 16 }
  0x8c   :  { %p4379_p13 = scmp.ne.s32.totalorder %s100_s17, %s4378_s3  ;;  %s4382_s13 = scalar_lea.vmem %s100_s17, 32 }
  0x8d   :  { %p4383_p0 = scmp.lt.s32.totalorder %s100_s17, %s100_s17  ;;  %p4384_p1 = scmp.lt.s32.totalorder %s4382_s13, %s4378_s3 }
  0x8f   :  { %p4385_p2 = por %p4384_p1, %p4383_p0 }
  0x91   :  { %78 = dma.hbm_to_vmem [thread:$0]  %s6105_s6, 16, %s76_s15, [#allocation6]  }
  0x92   :  { %p4386_p3 = pnand %p4385_p2, %p4379_p13 }
  0x94   :  { %4389 = shalt.err (!%p4386_p3)
}
  0x95   :  { %102 = dma.hbm_to_vmem [thread:$0]  %s6067_s10, 16, %s100_s17, [#allocation9]  }
  0x96   :  { %s4586_s2 = smov [#allocation13]   ;;  %s4587_s1 = smov [#allocation16]  }
  0x97   :  { %s119_s26 = sshll.u32 %s4586_s2, 4  ;;  %s141_s21 = sshll.u32 %s4587_s1, 4  ;;  %s120_s26 = int_to_ptr.vmem [resolvable:$true] %s119_s26  ;;  %s142_s21 = int_to_ptr.vmem [resolvable:$true] %s141_s21 }
  0x98   :  { %s4398_s8 = scalar_lea.vmem %s120_s26, 16  ;;  %s4402_s4 = scalar_lea.vmem %s120_s26, 32 }
  0x99   :  { %p4399_p4 = scmp.ne.s32.totalorder %s120_s26, %s4398_s8  ;;  %p4403_p5 = scmp.lt.s32.totalorder %s120_s26, %s120_s26 }
  0x9a   :  { %p4404_p6 = scmp.lt.s32.totalorder %s4402_s4, %s4398_s8 }
  0x9c   :  { %p4405_p7 = por %p4404_p6, %p4403_p5 }
  0x9e   :  { %p4406_p8 = pnand %p4405_p7, %p4399_p4 }
  0xa0   :  { %4409 = shalt.err (!%p4406_p8)
}
  0xa1   :  { %122 = dma.hbm_to_vmem [thread:$0]  %s6069_s12, 16, %s120_s26, [#allocation12]  }
  0xa2   :  { %s4418_s15 = scalar_lea.vmem %s142_s21, 16  ;;  %s4422_s10 = scalar_lea.vmem %s142_s21, 32 }
  0xa3   :  { %p4419_p9 = scmp.ne.s32.totalorder %s142_s21, %s4418_s15  ;;  %p4423_p10 = scmp.lt.s32.totalorder %s142_s21, %s142_s21 }
  0xa4   :  { %p4424_p11 = scmp.lt.s32.totalorder %s4422_s10, %s4418_s15 }
  0xa6   :  { %p4425_p12 = por %p4424_p11, %p4423_p10 }
  0xa8   :  { %p4426_p13 = pnand %p4425_p12, %p4419_p9 }
  0xaa   :  { %4429 = shalt.err (!%p4426_p13)
}
  0xab   :  { %144 = dma.hbm_to_vmem [thread:$0]  %s6071_s14, 16, %s142_s21, [#allocation15]  }
  0xac   :  { %s4588_s0 = smov [#allocation19]   ;;  %s4589_s11 = smov [#allocation22]  }
  0xad   :  { %s163_s23 = sshll.u32 %s4588_s0, 4  ;;  %s183_s29 = sshll.u32 %s4589_s11, 4  ;;  %s164_s23 = int_to_ptr.vmem [resolvable:$true] %s163_s23  ;;  %s184_s29 = int_to_ptr.vmem [resolvable:$true] %s183_s29 }
  0xae   :  { %s4438_s6 = scalar_lea.vmem %s164_s23, 16  ;;  %s4442_s12 = scalar_lea.vmem %s164_s23, 32 }
  0xaf   :  { %p4439_p0 = scmp.ne.s32.totalorder %s164_s23, %s4438_s6  ;;  %p4443_p1 = scmp.lt.s32.totalorder %s164_s23, %s164_s23 }
  0xb0   :  { %p4444_p2 = scmp.lt.s32.totalorder %s4442_s12, %s4438_s6 }
  0xb2   :  { %p4445_p3 = por %p4444_p2, %p4443_p1 }
  0xb4   :  { %p4446_p4 = pnand %p4445_p3, %p4439_p0 }
  0xb6   :  { %4449 = shalt.err (!%p4446_p4)
}
  0xb7   :  { %166 = dma.hbm_to_vmem [thread:$0]  %s6073_s16, 16, %s164_s23, [#allocation18]  }
  0xb8   :  { %s4458_s19 = scalar_lea.vmem %s184_s29, 16  ;;  %s4462_s14 = scalar_lea.vmem %s184_s29, 32 }
  0xb9   :  { %p4459_p5 = scmp.ne.s32.totalorder %s184_s29, %s4458_s19  ;;  %p4463_p6 = scmp.lt.s32.totalorder %s184_s29, %s184_s29 }
  0xba   :  { %p4464_p7 = scmp.lt.s32.totalorder %s4462_s14, %s4458_s19 }
  0xbc   :  { %p4465_p8 = por %p4464_p7, %p4463_p6 }
  0xbe   :  { %p4466_p9 = pnand %p4465_p8, %p4459_p5 }
  0xc0   :  { %4469 = shalt.err (!%p4466_p9)
}
  0xc1   :  { %186 = dma.hbm_to_vmem [thread:$0]  %s6075_s18, 16, %s184_s29, [#allocation21]  }
  0xc2   :  { %s4590_s26 = smov [#allocation25]   ;;  %s4591_s21 = smov [#allocation28]  }
  0xc3   :  { %s205_s1 = sshll.u32 %s4590_s26, 4  ;;  %s227_s8 = sshll.u32 %s4591_s21, 4  ;;  %s206_s1 = int_to_ptr.vmem [resolvable:$true] %s205_s1  ;;  %s228_s8 = int_to_ptr.vmem [resolvable:$true] %s227_s8 }
  0xc4   :  { %s4478_s4 = scalar_lea.vmem %s206_s1, 16  ;;  %s4482_s16 = scalar_lea.vmem %s206_s1, 32 }
  0xc5   :  { %p4479_p10 = scmp.ne.s32.totalorder %s206_s1, %s4478_s4  ;;  %p4483_p11 = scmp.lt.s32.totalorder %s206_s1, %s206_s1 }
  0xc6   :  { %p4484_p12 = scmp.lt.s32.totalorder %s4482_s16, %s4478_s4 }
  0xc8   :  { %p4485_p13 = por %p4484_p12, %p4483_p11 }
  0xca   :  { %p4486_p0 = pnand %p4485_p13, %p4479_p10 }
  0xcc   :  { %4489 = shalt.err (!%p4486_p0)
}
  0xcd   :  { %208 = dma.hbm_to_vmem [thread:$0]  %s6077_s20, 16, %s206_s1, [#allocation24]  }
  0xce   :  { %s4498_s15 = scalar_lea.vmem %s228_s8, 16  ;;  %s4502_s18 = scalar_lea.vmem %s228_s8, 32 }
  0xcf   :  { %p4499_p1 = scmp.ne.s32.totalorder %s228_s8, %s4498_s15  ;;  %p4503_p2 = scmp.lt.s32.totalorder %s228_s8, %s228_s8 }
  0xd0   :  { %p4504_p3 = scmp.lt.s32.totalorder %s4502_s18, %s4498_s15 }
  0xd2   :  { %p4505_p4 = por %p4504_p3, %p4503_p2 }
  0xd4   :  { %p4506_p5 = pnand %p4505_p4, %p4499_p1 }
  0xd6   :  { %4509 = shalt.err (!%p4506_p5)
}
  0xd7   :  { %230 = dma.hbm_to_vmem [thread:$0]  %s6079_s22, 16, %s228_s8, [#allocation27]  }
  0xd8   :  { %s4592_s17 = smov [#allocation31]  }
  0xd9   :  { %s247_s0 = sshll.u32 %s4592_s17, 4  ;;  %s248_s0 = int_to_ptr.vmem [resolvable:$true] %s247_s0 }
  0xda   :  { %s4518_s23 = scalar_lea.vmem %s248_s0, 16  ;;  %s4522_s11 = scalar_lea.vmem %s248_s0, 32 }
  0xdb   :  { %p4519_p6 = scmp.ne.s32.totalorder %s248_s0, %s4518_s23  ;;  %p4523_p7 = scmp.lt.s32.totalorder %s248_s0, %s248_s0 }
  0xdc   :  { %p4524_p8 = scmp.lt.s32.totalorder %s4522_s11, %s4518_s23 }
  0xde   :  { %p4525_p9 = por %p4524_p8, %p4523_p7 }
  0xe0   :  { %p4526_p10 = pnand %p4525_p9, %p4519_p6 }
  0xe2   :  { %4529 = shalt.err (!%p4526_p10)
}
  0xe3   :  { %250 = dma.hbm_to_vmem [thread:$0]  %s6081_s24, 16, %s248_s0, [#allocation30]  }
  0xe4   :  { %4550 = dma.done.wait [#allocation3], 16  }
  0xe5   :  { %4551 = vsyncadd [#allocation3], 4294967280 }
  0xe6   :  { %4552 = dma.done.wait [#allocation6], 32  }
  0xe7   :  { %4553 = vsyncadd [#allocation6], 4294967264 }
  0xe8   :  { %4554 = dma.done.wait [#allocation9], 32  }
  0xe9   :  { %4555 = vsyncadd [#allocation9], 4294967264 }
  0xea   :  { %4556 = dma.done.wait [#allocation12], 32  }
  0xeb   :  { %4557 = vsyncadd [#allocation12], 4294967264 }
  0xec   :  { %4558 = dma.done.wait [#allocation15], 272  }
  0xed   :  { %4559 = vsyncadd [#allocation15], 4294967024 }
  0xee   :  { %4560 = dma.done.wait [#allocation18], 400  }
  0xef   :  { %4561 = vsyncadd [#allocation18], 4294966896 }
  0xf0   :  { %4562 = dma.done.wait [#allocation21], 32  }
  0xf1   :  { %4563 = vsyncadd [#allocation21], 4294967264 }
  0xf2   :  { %4564 = dma.done.wait [#allocation24], 400  }
  0xf3   :  { %4565 = vsyncadd [#allocation24], 4294966896 }
  0xf4   :  { %4566 = dma.done.wait [#allocation27], 784  }
  0xf5   :  { %4567 = vsyncadd [#allocation27], 4294966512 }
  0xf6   :  { %4568 = dma.done.wait [#allocation30], 32  }
  0xf7   :  { %4569 = vsyncadd [#allocation30], 4294967264  ;;  %s6106_s6 = sld [smem:[#allocation44_spill]]  ;;  %vm324_vm0 = vcmask 1040384   ;;  %vm495_vm1 = vcmask 1043456   ;;  %vm400_vm2 = vcmask 1045504  }
  0xf8   :  { %vm357_vm3 = vcmask 1046528   ;;  %s6107_s1 = sld [smem:[#allocation45_spill]]  ;;  %s4593_s10 = smov 4   ;;  %vm443_vm4 = vcmask 31744   ;;  %vm452_vm5 = vcmask 64512   ;;  %vm6088_vm6 = vcmask 97280  }
  0xf9   :  { %s6108_s11 = sld [smem:[#allocation46_spill]]  ;;  %s4594_s13 = smov 16   ;;  %vm744_vm7 = vcmask 130048   ;;  %vm763_vm8 = vcmask 195584   ;;  %vm1971_vm9 = vcmask 1041408   ;;  %vm1395_vm10 = vcmask 1042434  }
  0xfa   :  { %s6109_s22 = sld [smem:[#allocation47_spill]]  ;;  %vm1407_vm11 = vcmask 1041409   ;;  %vm1397_vm12 = vcmask 1043459   ;;  %vm6091_vm13 = vcmask 1044484   ;;  %vm1401_vm14 = vcmask 1045509   ;;  %s4596_s20 = smov 32  }
  0xfb   :  { %s6110_s7 = sld [smem:[#allocation51_spill]]  ;;  %vm6090_vm15 = vcmask 1046534   ;;  %s4598_s29 = smov [#allocation32]  }
  0xfc   :  { %s6118_s16 = sld [smem:[#allocation53_spill]] }
  0xfd   :  { %v4801_v0 = vld [vmem:[%s6106_s6] sm:$0xff]  ;;  %v4806_v1 = vld [vmem:[%s6106_s6 + $0x8] sm:$0xff]  ;;  %v4811_v2 = vld [vmem:[%s6106_s6 + $0x10] sm:$0xff] }
  0xfe   :  { %v325_v3 = vrot.slane %v4801_v0, 7  ;;  %v326_v4 = vrot.slane %v4806_v1, 7  ;;  %v328_v5 = vrot.slane %v4811_v2, 7  ;;  %v4819_v6 = vld [vmem:[%s6106_s6 + $0x18] sm:$0xff]  ;;  %v462_v11 = vld [vmem:[%s6107_s1 + $0x8] sm:$0xf] }
  0xff   :  { %v330_v7 = vrot.slane %v4819_v6, 7  ;;  %v461_v12 = vld [vmem:[%s6107_s1] sm:$0xff]  ;;  %3995 = vmatprep.subr.msk.mxu0 %vm495_vm1, %v462_v11  ;;  %v4859_v24 = vld [vmem:[%s6106_s6 + $0x28] sm:$0xff]  ;;  %v4864_v25 = vld [vmem:[%s6106_s6 + $0x30] sm:$0xff] }
 0x100   :  { %v4823_v8 = vsel %vm324_vm0, %v325_v3, %v326_v4  ;;  %v4826_v9 = vsel %vm324_vm0, 0.0, %v325_v3  ;;  %v4829_v10 = vsel %vm324_vm0, %v326_v4, %v328_v5  ;;  %3996 = vmatpush3.msk.msra.mxu0 %vm495_vm1, %v462_v11  ;;  %v4854_v23 = vld [vmem:[%s6106_s6 + $0x20] sm:$0xff]  ;;  %v333_v31 = vrot.slane %v4859_v24, 7  ;;  %v4891_v40 = vld [vmem:[%s6106_s6 + $0x38] sm:$0xff] }
 0x101   :  { %v401_v13 = vrot.slane %v4826_v9, 2  ;;  %v402_v14 = vrot.slane %v4823_v8, 2  ;;  %v358_v15 = vrot.slane %v4826_v9, 1  ;;  %v359_v16 = vrot.slane %v4823_v8, 1  ;;  %3997 = vmatprep.subr.mxu0 %v461_v12 }
 0x102   :  { %v404_v17 = vrot.slane %v4829_v10, 2  ;;  %v361_v18 = vrot.slane %v4829_v10, 1  ;;  %v4845_v19 = vsel %vm324_vm0, %v328_v5, %v330_v7  ;;  %v351_v20 = vsel %vm324_vm0, %v330_v7, 0.0  ;;  %3998 = vmatpush3.msra.mxu0 %v461_v12 }
 0x103   :  { %v403_v21 = vsel %vm400_vm2, %v401_v13, %v402_v14  ;;  %v360_v22 = vsel %vm357_vm3, %v358_v15, %v359_v16  ;;  %v363_v28 = vrot.slane %v4845_v19, 1  ;;  %v365_v29 = vrot.slane %v351_v20, 1 }
 0x104   :  { %419 = vrot.lane.b32.xlu1 %v403_v21, %s4577_s27  ;;  %376 = vrot.lane.b32.xlu0 %v360_v22, %s4593_s10  ;;  %v405_v26 = vsel %vm400_vm2, %v402_v14, %v404_v17  ;;  %v362_v27 = vsel %vm357_vm3, %v359_v16, %v361_v18  ;;  %v332_v30 = vrot.slane %v4854_v23, 7  ;;  %v335_v32 = vrot.slane %v4864_v25, 7 }
 0x105   :  { %v406_v33 = vrot.slane %v4845_v19, 2  ;;  %v408_v34 = vrot.slane %v351_v20, 2  ;;  %v366_v35 = vsel %vm357_vm3, %v363_v28, %v365_v29  ;;  %v364_v36 = vsel %vm357_vm3, %v361_v18, %v363_v28 }
 0x106   :  { %v4880_v37 = vsel %vm324_vm0, %v332_v30, %v333_v31  ;;  %v4883_v38 = vsel %vm324_vm0, %v333_v31, %v335_v32  ;;  %v4886_v39 = vsel %vm324_vm0, 0.0, %v332_v30  ;;  %v337_v46 = vrot.slane %v4891_v40, 7 }
 0x107   :  { %v409_v41 = vsel %vm400_vm2, %v406_v33, %v408_v34  ;;  %v407_v42 = vsel %vm400_vm2, %v404_v17, %v406_v33  ;;  %v368_v43 = vrot.slane %v4880_v37, 1  ;;  %v370_v44 = vrot.slane %v4883_v38, 1 }
 0x108   :  { %421 = vrot.lane.b32.xlu1 %v405_v26, %s4577_s27  ;;  %378 = vrot.lane.b32.xlu0 %v362_v27, %s4593_s10  ;;  %v367_v45 = vrot.slane %v4886_v39, 1  ;;  %v411_v47 = vrot.slane %v4880_v37, 2  ;;  %v413_v50 = vrot.slane %v4883_v38, 2  ;;  %v410_v51 = vrot.slane %v4886_v39, 2 }
 0x109   :  { %v371_v48 = vsel %vm357_vm3, %v368_v43, %v370_v44  ;;  %v338_v52 = vsel %vm324_vm0, %v335_v32, %v337_v46  ;;  %v352_v53 = vsel %vm324_vm0, %v337_v46, 0.0 }
 0x10a   :  { %v369_v49 = vsel %vm357_vm3, %v367_v45, %v368_v43  ;;  %v414_v54 = vsel %vm400_vm2, %v411_v47, %v413_v50  ;;  %v412_v55 = vsel %vm400_vm2, %v410_v51, %v411_v47  ;;  %v372_v56 = vrot.slane %v338_v52, 1  ;;  %v755_v47 = vld [vmem:[%s6109_s22 + $0x10] sm:$0xff]  ;;  %v754_v51 = vld [vmem:[%s6109_s22 + $0x8] sm:$0xff] }
 0x10b   :  { %v374_v57 = vrot.slane %v352_v53, 1  ;;  %v415_v60 = vrot.slane %v338_v52, 2  ;;  %v417_v61 = vrot.slane %v352_v53, 2  ;;  %4011 = vmatprep.subr.mxu1 %v755_v47 }
 0x10c   :  { %382 = vrot.lane.b32.xlu1 %v366_v35, %s4593_s10  ;;  %380 = vrot.lane.b32.xlu0 %v364_v36, %s4593_s10  ;;  %v373_v59 = vsel %vm357_vm3, %v370_v44, %v372_v56 }
 0x10d   :  { %v375_v58 = vsel %vm357_vm3, %v372_v56, %v374_v57  ;;  %v418_v62 = vsel %vm400_vm2, %v415_v60, %v417_v61  ;;  %v416_v63 = vsel %vm400_vm2, %v413_v50, %v415_v60  ;;  %4012 = vmatpush3.msra.mxu1 %v755_v47 }
 0x10e   :  { %4013 = vmatprep.subr.mxu1 %v754_v51 }
 0x10f   :  { %4014 = vmatpush3.msra.mxu1 %v754_v51 }
 0x110   :  { %425 = vrot.lane.b32.xlu1 %v409_v41, %s4577_s27  ;;  %423 = vrot.lane.b32.xlu0 %v407_v42, %s4577_s27  ;;  %v4958_v41 = vld [vmem:[%s6108_s11] ss:$0 sm:$0xff] }
 0x114   :  { %386 = vrot.lane.b32.xlu1 %v371_v48, %s4593_s10  ;;  %384 = vrot.lane.b32.xlu0 %v369_v49, %s4593_s10 }
 0x118   :  { %429 = vrot.lane.b32.xlu1 %v414_v54, %s4577_s27  ;;  %427 = vrot.lane.b32.xlu0 %v412_v55, %s4577_s27 }
 0x11c   :  { %390 = vrot.lane.b32.xlu1 %v375_v58, %s4593_s10  ;;  %388 = vrot.lane.b32.xlu0 %v373_v59, %s4593_s10 }
 0x120   :  { %433 = vrot.lane.b32.xlu1 %v418_v62, %s4577_s27  ;;  %431 = vrot.lane.b32.xlu0 %v416_v63, %s4577_s27 }
 0x176   :  { %v420_v3 = vpop.permute.xlu1 %419  ;;  %v377_v4 = vpop.permute.xlu0 %376 }
 0x177   :  { %v444_v5 = vsel %vm443_vm4, %v4826_v9, %v377_v4 }
 0x178   :  { %v453_v7 = vsel %vm452_vm5, %v444_v5, %v420_v3 }
 0x179   :  { %3999 = vmatprep.mubr.msk.f32.mxu0 %vm6088_vm6, %v453_v7 }
 0x17a   :  { %v422_v11 = vpop.permute.xlu1 %421  ;;  %v379_v12 = vpop.permute.xlu0 %378 }
 0x17b   :  { %v445_v13 = vsel %vm443_vm4, %v4823_v8, %v379_v12 }
 0x17c   :  { %v454_v14 = vsel %vm452_vm5, %v445_v13, %v422_v11 }
 0x17d   :  { %4000 = vmatmul.mubr.msk.f32.vlgmr.msra.gmra.mxu0 %vm6088_vm6, %v454_v14 }
 0x17e   :  { %v383_v15 = vpop.permute.xlu1 %382  ;;  %v381_v16 = vpop.permute.xlu0 %380 }
 0x17f   :  { %v447_v17 = vsel %vm443_vm4, %v4845_v19, %v383_v15  ;;  %v446_v9 = vsel %vm443_vm4, %v4829_v10, %v381_v16 }
 0x182   :  { %v426_v18 = vpop.permute.xlu1 %425  ;;  %v424_v20 = vpop.permute.xlu0 %423 }
 0x183   :  { %v456_v21 = vsel %vm452_vm5, %v447_v17, %v426_v18  ;;  %v455_v22 = vsel %vm452_vm5, %v446_v9, %v424_v20 }
 0x184   :  { %4002 = vmatprep.mubr.msk.f32.mxu0 %vm6088_vm6, %v455_v22 }
 0x185   :  { %4003 = vmatmul.mubr.msk.f32.gmra.mxu0 %vm6088_vm6, %v456_v21 }
 0x186   :  { %v387_v8 = vpop.permute.xlu1 %386  ;;  %v385_v26 = vpop.permute.xlu0 %384 }
 0x187   :  { %v449_v27 = vsel %vm443_vm4, %v4880_v37, %v387_v8  ;;  %v448_v19 = vsel %vm443_vm4, %v4886_v39, %v385_v26 }
 0x18a   :  { %v430_v28 = vpop.permute.xlu1 %429  ;;  %v428_v10 = vpop.permute.xlu0 %427 }
 0x18b   :  { %v458_v29 = vsel %vm452_vm5, %v449_v27, %v430_v28  ;;  %v457_v30 = vsel %vm452_vm5, %v448_v19, %v428_v10 }
 0x18c   :  { %4005 = vmatprep.mubr.msk.f32.mxu0 %vm6088_vm6, %v457_v30 }
 0x18d   :  { %4006 = vmatmul.mubr.msk.f32.gmra.mxu0 %vm6088_vm6, %v458_v29 }
 0x18e   :  { %v391_v31 = vpop.permute.xlu1 %390  ;;  %v389_v32 = vpop.permute.xlu0 %388 }
 0x18f   :  { %v451_v33 = vsel %vm443_vm4, %v338_v52, %v391_v31  ;;  %v450_v34 = vsel %vm443_vm4, %v4883_v38, %v389_v32  ;;  %v753_v52 = vld [vmem:[%s6109_s22] sm:$0xff]  ;;  %s3736_s22 = sshll.u32 %s4598_s29, 4  ;;  %s3737_s22 = int_to_ptr.vmem [resolvable:$true] %s3736_s22 }
 0x190   :  { %4015 = vmatprep.subr.mxu1 %v753_v52  ;;  %s4530_s24 = scalar_lea.vmem %s3737_s22, 256  ;;  %p4535_p12 = scmp.lt.s32.totalorder %s3737_s22, %s3737_s22 }
 0x191   :  { %4016 = vmatpush3.msra.mxu1 %v753_v52  ;;  %p4531_p11 = scmp.ne.s32.totalorder %s3737_s22, %s4530_s24  ;;  %p4536_p13 = scmp.lt.s32.totalorder %s4530_s24, %s4530_s24 }
 0x192   :  { %v434_v35 = vpop.permute.xlu1 %433  ;;  %v432_v36 = vpop.permute.xlu0 %431 }
 0x193   :  { %v460_v37 = vsel %vm452_vm5, %v451_v33, %v434_v35  ;;  %v459_v39 = vsel %vm452_vm5, %v450_v34, %v432_v36  ;;  %p4537_p0 = por %p4536_p13, %p4535_p12 }
 0x194   :  { %4008 = vmatprep.mubr.msk.f32.mxu0 %vm6088_vm6, %v459_v39 }
 0x195   :  { %4009 = vmatmul.mubr.msk.f32.gmra.mxu0 %vm6088_vm6, %v460_v37  ;;  %vm6089_vm6 = vcmask 1047559   ;;  %p4538_p1 = pnand %p4537_p0, %p4531_p11 }
 0x23d   :  { %v4001_v42 = vpop.f32.mrf.mxu0 }
 0x23e   :  { %v571_v43 = vadd.f32 %v4001_v42, %v4958_v41 }
 0x23f   :  { %v565_v44 = vpop.f32.mrf.mxu0 }
 0x240   :  { %v605_v38 = vmax.f32 %v571_v43, 0.0  ;;  %v566_v45 = vadd.f32 %v4958_v41, %v565_v44 }
 0x242   :  { %v604_v46 = vmax.f32 %v566_v45, 0.0  ;;  %v621_v48 = vrot.slane %v605_v38, 7 }
 0x244   :  { %v620_v49 = vrot.slane %v604_v46, 7 }
 0x245   :  { %v4004_v50 = vpop.f32.mrf.mxu0 }
 0x246   :  { %v4972_v53 = vsel %vm324_vm0, %v620_v49, %v621_v48  ;;  %v4975_v54 = vsel %vm324_vm0, 0.0, %v620_v49  ;;  %v581_v55 = vadd.f32 %v4004_v50, %v4958_v41 }
 0x247   :  { %v575_v56 = vpop.f32.mrf.mxu0  ;;  %v652_v57 = vrot.slane %v4975_v54, 1  ;;  %v653_v58 = vrot.slane %v4972_v53, 1  ;;  %v694_v61 = vrot.slane %v4975_v54, 2  ;;  %v695_v63 = vrot.slane %v4972_v53, 2 }
 0x248   :  { %v607_v59 = vmax.f32 %v581_v55, 0.0  ;;  %v576_v60 = vadd.f32 %v4958_v41, %v575_v56 }
 0x249   :  { %v654_v62 = vsel %vm357_vm3, %v652_v57, %v653_v58  ;;  %v696_v11 = vsel %vm400_vm2, %v694_v61, %v695_v63 }
 0x24a   :  { %v606_v3 = vmax.f32 %v576_v60, 0.0  ;;  %670 = vrot.lane.b32.xlu0 %v654_v62, %s4577_s27  ;;  %v625_v4 = vrot.slane %v607_v59, 7 }
 0x24c   :  { %v623_v5 = vrot.slane %v606_v3, 7  ;;  %v646_v27 = vsel %vm324_vm0, %v625_v4, 0.0 }
 0x24d   :  { %v4007_v7 = vpop.f32.mrf.mxu0  ;;  %v659_v34 = vrot.slane %v646_v27, 1  ;;  %v701_v47 = vrot.slane %v646_v27, 2 }
 0x24e   :  { %v4987_v12 = vsel %vm324_vm0, %v621_v48, %v623_v5  ;;  %v4990_v13 = vsel %vm324_vm0, %v623_v5, %v625_v4  ;;  %v591_v14 = vadd.f32 %v4007_v7, %v4958_v41  ;;  %712 = vrot.lane.b32.xlu0 %v696_v11, %s4594_s13 }
 0x24f   :  { %v585_v15 = vpop.f32.mrf.mxu0  ;;  %v655_v16 = vrot.slane %v4987_v12, 1  ;;  %v657_v17 = vrot.slane %v4990_v13, 1  ;;  %v697_v22 = vrot.slane %v4987_v12, 2  ;;  %v699_v8 = vrot.slane %v4990_v13, 2 }
 0x250   :  { %v609_v9 = vmax.f32 %v591_v14, 0.0  ;;  %v586_v18 = vadd.f32 %v4958_v41, %v585_v15 }
 0x251   :  { %v658_v20 = vsel %vm357_vm3, %v655_v16, %v657_v17  ;;  %v656_v21 = vsel %vm357_vm3, %v653_v58, %v655_v16  ;;  %v700_v29 = vsel %vm400_vm2, %v697_v22, %v699_v8  ;;  %v698_v30 = vsel %vm400_vm2, %v695_v63, %v697_v22 }
 0x252   :  { %v608_v26 = vmax.f32 %v586_v18, 0.0  ;;  %674 = vrot.lane.b32.xlu0 %v658_v20, %s4577_s27  ;;  %672 = vrot.lane.b32.xlu1 %v656_v21, %s4577_s27  ;;  %v628_v19 = vrot.slane %v609_v9, 7  ;;  %v660_v44 = vsel %vm357_vm3, %v657_v17, %v659_v34  ;;  %v702_v50 = vsel %vm400_vm2, %v699_v8, %v701_v47 }
 0x254   :  { %v627_v28 = vrot.slane %v608_v26, 7 }
 0x255   :  { %v4010_v10 = vpop.f32.mrf.mxu0 }
 0x256   :  { %v5007_v31 = vsel %vm324_vm0, %v627_v28, %v628_v19  ;;  %v5010_v32 = vsel %vm324_vm0, 0.0, %v627_v28  ;;  %v601_v33 = vadd.f32 %v4010_v10, %v4958_v41  ;;  %716 = vrot.lane.b32.xlu0 %v700_v29, %s4594_s13  ;;  %714 = vrot.lane.b32.xlu1 %v698_v30, %s4594_s13 }
 0x257   :  { %v595_v35 = vpop.f32.mrf.mxu0  ;;  %v661_v36 = vrot.slane %v5010_v32, 1  ;;  %v662_v37 = vrot.slane %v5007_v31, 1  ;;  %v703_v43 = vrot.slane %v5010_v32, 2  ;;  %v704_v45 = vrot.slane %v5007_v31, 2 }
 0x258   :  { %v611_v39 = vmax.f32 %v601_v33, 0.0  ;;  %v596_v42 = vadd.f32 %v4958_v41, %v595_v35 }
 0x259   :  { %v663_v38 = vsel %vm357_vm3, %v661_v36, %v662_v37  ;;  %v705_v41 = vsel %vm400_vm2, %v703_v43, %v704_v45 }
 0x25a   :  { %v610_v46 = vmax.f32 %v596_v42, 0.0  ;;  %676 = vrot.lane.b32.xlu1 %v660_v44, %s4577_s27  ;;  %678 = vrot.lane.b32.xlu0 %v663_v38, %s4577_s27  ;;  %v632_v48 = vrot.slane %v611_v39, 7  ;;  %v1973_v38 = vrot.slane %v4806_v1, 6 }
 0x25c   :  { %v630_v49 = vrot.slane %v610_v46, 7  ;;  %v647_v61 = vsel %vm324_vm0, %v632_v48, 0.0 }
 0x25d   :  { %v668_v3 = vrot.slane %v647_v61, 1  ;;  %v710_v5 = vrot.slane %v647_v61, 2 }
 0x25e   :  { %v631_v51 = vsel %vm324_vm0, %v628_v19, %v630_v49  ;;  %v633_v52 = vsel %vm324_vm0, %v630_v49, %v632_v48  ;;  %718 = vrot.lane.b32.xlu1 %v702_v50, %s4594_s13  ;;  %720 = vrot.lane.b32.xlu0 %v705_v41, %s4594_s13  ;;  %v1977_v41 = vrot.slane %v4819_v6, 6 }
 0x25f   :  { %v664_v55 = vrot.slane %v631_v51, 1  ;;  %v666_v56 = vrot.slane %v633_v52, 1  ;;  %v706_v59 = vrot.slane %v631_v51, 2  ;;  %v708_v60 = vrot.slane %v633_v52, 2 }
 0x261   :  { %v667_v57 = vsel %vm357_vm3, %v664_v55, %v666_v56  ;;  %v665_v58 = vsel %vm357_vm3, %v662_v37, %v664_v55  ;;  %v709_v62 = vsel %vm400_vm2, %v706_v59, %v708_v60  ;;  %v707_v63 = vsel %vm400_vm2, %v704_v45, %v706_v59 }
 0x262   :  { %682 = vrot.lane.b32.xlu0 %v667_v57, %s4577_s27  ;;  %680 = vrot.lane.b32.xlu1 %v665_v58, %s4577_s27  ;;  %v669_v4 = vsel %vm357_vm3, %v666_v56, %v668_v3  ;;  %v711_v7 = vsel %vm400_vm2, %v708_v60, %v710_v5  ;;  %v1975_v45 = vrot.slane %v4811_v2, 6  ;;  %v1998_v59 = vsel %vm1971_vm9, %v1977_v41, 0.0 }
 0x263   :  { %v2011_v60 = vrot.slane %v1998_v59, 2  ;;  %v2053_v3 = vrot.slane %v1998_v59, 4  ;;  %v1980_v59 = vrot.slane %v4859_v24, 6 }
 0x264   :  { %v5083_v48 = vsel %vm1971_vm9, %v1973_v38, %v1975_v45  ;;  %v5101_v58 = vsel %vm1971_vm9, %v1975_v45, %v1977_v41  ;;  %v1979_v45 = vrot.slane %v4854_v23, 6 }
 0x265   :  { %v2049_v55 = vrot.slane %v5083_v48, 4  ;;  %v2009_v6 = vrot.slane %v5101_v58, 2 }
 0x266   :  { %724 = vrot.lane.b32.xlu0 %v709_v62, %s4594_s13  ;;  %722 = vrot.lane.b32.xlu1 %v707_v63, %s4594_s13  ;;  %v2051_v63 = vrot.slane %v5101_v58, 4  ;;  %v5353_v24 = vsel %vm1971_vm9, 0.0, %v1979_v45 }
 0x267   :  { %v2012_v62 = vsel %vm400_vm2, %v2009_v6, %v2011_v60 }
 0x268   :  { %v2054_v5 = vsel %vm495_vm1, %v2051_v63, %v2053_v3 }
 0x26a   :  { %684 = vrot.lane.b32.xlu1 %v669_v4, %s4577_s27  ;;  %v2052_v4 = vsel %vm495_vm1, %v2049_v55, %v2051_v63 }
 0x26e   :  { %726 = vrot.lane.b32.xlu1 %v711_v7, %s4594_s13  ;;  %v1984_v7 = vrot.slane %v4891_v40, 6  ;;  %v5127_v40 = vld [vmem:[#allocation2] ss:$0 sm:$0xff] }
 0x2bc   :  { %v671_v11 = vpop.permute.xlu0 %670 }
 0x2bd   :  { %v736_v14 = vsel %vm452_vm5, %v4975_v54, %v671_v11  ;;  %v1982_v11 = vrot.slane %v4864_v25, 6 }
 0x2c0   :  { %v713_v15 = vpop.permute.xlu0 %712 }
 0x2c1   :  { %v745_v16 = vsel %vm744_vm7, %v736_v14, %v713_v15  ;;  %v5119_v14 = vsel %vm1971_vm9, %v1982_v11, %v1984_v7  ;;  %v5122_v15 = vsel %vm1971_vm9, %v1984_v7, 0.0 }
 0x2c2   :  { %4017 = vmatprep.mubr.msk.f32.mxu1 %vm763_vm8, %v745_v16  ;;  %v1496_v16 = vld [vmem:[%s6110_s7 + $0x10] sm:$0xff] }
 0x2c3   :  { %4029 = vmatprep.subr.mxu0 %v1496_v16 }
 0x2c4   :  { %v673_v17 = vpop.permute.xlu1 %672  ;;  %v675_v9 = vpop.permute.xlu0 %674  ;;  %4030 = vmatpush3.msra.mxu0 %v1496_v16 }
 0x2c5   :  { %v737_v18 = vsel %vm452_vm5, %v4972_v53, %v673_v17  ;;  %v738_v20 = vsel %vm452_vm5, %v4987_v12, %v675_v9  ;;  %v4595_v17 = vmov 1983009808  }
 0x2c6   :  { %v941_v9 = vunpack.c.l.s4 %v4595_v17 }
 0x2c8   :  { %v715_v21 = vpop.permute.xlu1 %714  ;;  %v717_v22 = vpop.permute.xlu0 %716 }
 0x2c9   :  { %v746_v8 = vsel %vm744_vm7, %v737_v18, %v715_v21  ;;  %v747_v26 = vsel %vm744_vm7, %v738_v20, %v717_v22  ;;  %v943_v18 = vlaneseq  ;;  %v942_v22 = vunpack.c.0.s8 %v941_v9 }
 0x2ca   :  { %4018 = vmatmul.mubr.msk.f32.vlgmr.msra.gmra.mxu1 %vm763_vm8, %v746_v8 }
 0x2cb   :  { %4020 = vmatprep.mubr.msk.f32.mxu1 %vm763_vm8, %v747_v26  ;;  %v944_v8 = vshrl.u32 %v943_v18, 7  ;;  %v5130_v26 = vld [vmem:[#allocation5] ss:$0 sm:$0xff] }
 0x2cc   :  { %v677_v54 = vpop.permute.xlu1 %676  ;;  %v679_v27 = vpop.permute.xlu0 %678 }
 0x2cd   :  { %v739_v19 = vsel %vm452_vm5, %v4990_v13, %v677_v54  ;;  %v740_v53 = vsel %vm452_vm5, %v5010_v32, %v679_v27 }
 0x2d0   :  { %v719_v28 = vpop.permute.xlu1 %718  ;;  %v721_v12 = vpop.permute.xlu0 %720 }
 0x2d1   :  { %v748_v10 = vsel %vm744_vm7, %v739_v19, %v719_v28  ;;  %v749_v29 = vsel %vm744_vm7, %v740_v53, %v721_v12  ;;  %v5133_v53 = vld [vmem:[#allocation7] ss:$0 sm:$0xff]  ;;  %v5136_v12 = vsub.s32 %v942_v22, %v944_v8 }
 0x2d2   :  { %4021 = vmatmul.mubr.msk.f32.gmra.mxu1 %vm763_vm8, %v748_v10 }
 0x2d3   :  { %4023 = vmatprep.mubr.msk.f32.mxu1 %vm763_vm8, %v749_v29 }
 0x2d4   :  { %v681_v30 = vpop.permute.xlu1 %680  ;;  %v683_v33 = vpop.permute.xlu0 %682 }
 0x2d5   :  { %v741_v34 = vsel %vm452_vm5, %v5007_v31, %v681_v30  ;;  %v742_v13 = vsel %vm452_vm5, %v631_v51, %v683_v33  ;;  %v1972_v31 = vrot.slane %v4801_v0, 6  ;;  %v2007_v0 = vrot.slane %v5083_v48, 2 }
 0x2d7   :  { %v5077_v46 = vsel %vm1971_vm9, %v1972_v31, %v1973_v38  ;;  %v5080_v47 = vsel %vm1971_vm9, 0.0, %v1972_v31  ;;  %v2010_v61 = vsel %vm400_vm2, %v2007_v0, %v2009_v6 }
 0x2d8   :  { %v723_v35 = vpop.permute.xlu1 %722  ;;  %v725_v36 = vpop.permute.xlu0 %724  ;;  %v2004_v49 = vrot.slane %v5080_v47, 2  ;;  %v2005_v50 = vrot.slane %v5077_v46, 2  ;;  %v2046_v51 = vrot.slane %v5080_v47, 4 }
 0x2d9   :  { %v750_v32 = vsel %vm744_vm7, %v741_v34, %v723_v35  ;;  %v751_v37 = vsel %vm744_vm7, %v742_v13, %v725_v36 }
 0x2da   :  { %4024 = vmatmul.mubr.msk.f32.gmra.mxu1 %vm763_vm8, %v750_v32  ;;  %v2006_v1 = vsel %vm400_vm2, %v2004_v49, %v2005_v50  ;;  %v2008_v2 = vsel %vm400_vm2, %v2005_v50, %v2007_v0  ;;  %v5143_v32 = vsub.s32 0, %v944_v8 }
 0x2db   :  { %4026 = vmatprep.mubr.msk.f32.mxu1 %vm763_vm8, %v751_v37  ;;  %2022 = vrot.lane.b32.xlu0 %v2006_v1, %s4593_s10 }
 0x2dc   :  { %v685_v39 = vpop.permute.xlu1 %684  ;;  %2024 = vrot.lane.b32.xlu1 %v2008_v2, %s4593_s10 }
 0x2dd   :  { %v743_v42 = vsel %vm452_vm5, %v633_v52, %v685_v39  ;;  %v2047_v52 = vrot.slane %v5077_v46, 4 }
 0x2df   :  { %v2048_v56 = vsel %vm495_vm1, %v2046_v51, %v2047_v52  ;;  %v2050_v57 = vsel %vm495_vm1, %v2047_v52, %v2049_v55 }
 0x2e0   :  { %v727_v43 = vpop.permute.xlu1 %726  ;;  %2064 = vrot.lane.b32.xlu0 %v2048_v56, %s4577_s27  ;;  %2066 = vrot.lane.b32.xlu1 %v2050_v57, %s4577_s27 }
 0x2e1   :  { %v752_v44 = vsel %vm744_vm7, %v743_v42, %v727_v43 }
 0x2e2   :  { %4027 = vmatmul.mubr.msk.f32.gmra.mxu1 %vm763_vm8, %v752_v44 }
 0x2e4   :  { %2026 = vrot.lane.b32.xlu0 %v2010_v61, %s4593_s10  ;;  %2028 = vrot.lane.b32.xlu1 %v2012_v62, %s4593_s10 }
 0x2e8   :  { %2068 = vrot.lane.b32.xlu0 %v2052_v4, %s4577_s27  ;;  %2070 = vrot.lane.b32.xlu1 %v2054_v5, %s4577_s27 }
 0x38a   :  { %v4019_v20 = vpop.f32.mrf.mxu1 }
 0x38b   :  { %v860_v21 = vadd.f32 %v4019_v20, %v5127_v40 }
 0x38c   :  { %v854_v54 = vpop.f32.mrf.mxu1 }
 0x38d   :  { %v894_v27 = vmax.f32 %v860_v21, 0.0  ;;  %v855_v19 = vadd.f32 %v5127_v40, %v854_v54 }
 0x38f   :  { %v909_v28 = vmul.f32 %v5130_v26, %v894_v27  ;;  %v893_v10 = vmax.f32 %v855_v19, 0.0 }
 0x391   :  { %v924_v29 = vadd.f32 %v5133_v53, %v909_v28  ;;  %v908_v30 = vmul.f32 %v5130_v26, %v893_v10 }
 0x392   :  { %v4022_v33 = vpop.f32.mrf.mxu1 }
 0x393   :  { %v956_v34 = vcombine.high %v924_v29, %v924_v29  ;;  %v963_v13 = vrot.slane %v924_v29, %v5136_v12  ;;  %v923_v35 = vadd.f32 %v5133_v53, %v908_v30  ;;  %v870_v36 = vadd.f32 %v4022_v33, %v5127_v40 }
 0x394   :  { %v864_v37 = vpop.f32.mrf.mxu1 }
 0x395   :  { %v970_v39 = vrot.slane %v956_v34, %v5136_v12  ;;  %v971_v42 = vcombine.high %v963_v13, %v963_v13  ;;  %v3782_v43 = vrot.slane %v963_v13, 9  ;;  %v939_v44 = vcombine.high %v923_v35, %v923_v35 }
 0x396   :  { %v946_v31 = vrot.slane %v923_v35, %v5136_v12  ;;  %v896_v38 = vmax.f32 %v870_v36, 0.0  ;;  %v865_v1 = vadd.f32 %v5127_v40, %v864_v37 }
 0x397   :  { %v972_v49 = vcombine.high %v970_v39, %v970_v39  ;;  %v3783_v50 = vrot.slane %v971_v42, 9  ;;  %v3784_v0 = vrot.slane %v970_v39, 9  ;;  %v953_v2 = vrot.slane %v939_v44, %v5136_v12 }
 0x398   :  { %v954_v41 = vcombine.high %v946_v31, %v946_v31  ;;  %v3778_v51 = vrot.slane %v946_v31, 9  ;;  %v911_v52 = vmul.f32 %v5130_v26, %v896_v38  ;;  %v5151_v56 = vmax.f32 %v963_v13, %v3782_v43 }
 0x399   :  { %v3785_v55 = vrot.slane %v972_v49, 9  ;;  %v5153_v57 = vmax.f32 %v971_v42, %v3783_v50  ;;  %v955_v6 = vcombine.high %v953_v2, %v953_v2  ;;  %v3780_v61 = vrot.slane %v953_v2, 9 }
 0x39a   :  { %v3779_v60 = vrot.slane %v954_v41, 9  ;;  %v1203_v62 = vmax.f32 %v946_v31, %v3778_v51  ;;  %v4025_v63 = vpop.f32.mrf.mxu1  ;;  %v5156_v3 = vmax.f32 %v970_v39, %v3784_v0  ;;  %v926_v4 = vadd.f32 %v5133_v53, %v911_v52 }
 0x39b   :  { %v895_v5 = vmax.f32 %v865_v1, 0.0  ;;  %v880_v7 = vadd.f32 %v4025_v63, %v5127_v40  ;;  %v5160_v16 = vmax.f32 %v972_v49, %v3785_v55  ;;  %v3781_v17 = vrot.slane %v955_v6, 9 }
 0x39c   :  { %v1204_v9 = vmax.f32 %v954_v41, %v3779_v60  ;;  %v5162_v18 = vmax.f32 %v953_v2, %v3780_v61  ;;  %v1286_v20 = vrot.slane %v5151_v56, %v5143_v32  ;;  %v990_v21 = vcombine.high %v926_v4, %v926_v4  ;;  %v874_v54 = vpop.f32.mrf.mxu1 }
 0x39d   :  { %v997_v22 = vrot.slane %v926_v4, %v5136_v12  ;;  %v910_v8 = vmul.f32 %v5130_v26, %v895_v5  ;;  %v5168_v27 = vmax.f32 %v955_v6, %v3781_v17  ;;  %v1270_v19 = vrot.slane %v1203_v62, %v5143_v32 }
 0x39e   :  { %v1274_v28 = vrot.slane %v1204_v9, %v5143_v32  ;;  %v898_v10 = vmax.f32 %v880_v7, 0.0  ;;  %v1004_v29 = vrot.slane %v990_v21, %v5136_v12  ;;  %v1298_v13 = vrot.slane %v5160_v16, %v5143_v32 }
 0x39f   :  { %v1005_v30 = vcombine.high %v997_v22, %v997_v22  ;;  %v3790_v33 = vrot.slane %v997_v22, 9  ;;  %v925_v34 = vadd.f32 %v5133_v53, %v910_v8  ;;  %v1278_v35 = vrot.slane %v5162_v18, %v5143_v32 }
 0x3a0   :  { %v913_v36 = vmul.f32 %v5130_v26, %v898_v10  ;;  %v875_v37 = vadd.f32 %v5127_v40, %v874_v54  ;;  %v1282_v39 = vrot.slane %v5168_v27, %v5143_v32  ;;  %v5183_v42 = vsel %vm1395_vm10, %v1274_v28, %v1270_v19 }
 0x3a1   :  { %v3791_v43 = vrot.slane %v1005_v30, 9  ;;  %v973_v44 = vcombine.high %v925_v34, %v925_v34  ;;  %v3792_v31 = vrot.slane %v1004_v29, 9  ;;  %v980_v38 = vrot.slane %v925_v34, %v5136_v12 }
 0x3a2   :  { %v928_v49 = vadd.f32 %v5133_v53, %v913_v36  ;;  %v897_v50 = vmax.f32 %v875_v37, 0.0  ;;  %v4028_v0 = vpop.f32.mrf.mxu1  ;;  %v5187_v1 = vmax.f32 %v997_v22, %v3790_v33  ;;  %v1006_v51 = vcombine.high %v1004_v29, %v1004_v29 }
 0x3a3   :  { %v5189_v2 = vmax.f32 %v1005_v30, %v3791_v43  ;;  %v987_v41 = vrot.slane %v973_v44, %v5136_v12  ;;  %v988_v52 = vcombine.high %v980_v38, %v980_v38  ;;  %v3786_v55 = vrot.slane %v980_v38, 9 }
 0x3a4   :  { %v1024_v6 = vcombine.high %v928_v49, %v928_v49  ;;  %v1031_v60 = vrot.slane %v928_v49, %v5136_v12  ;;  %v912_v63 = vmul.f32 %v5130_v26, %v897_v50  ;;  %v890_v4 = vadd.f32 %v4028_v0, %v5127_v40  ;;  %v884_v37 = vpop.f32.mrf.mxu1 }
 0x3a5   :  { %v989_v61 = vcombine.high %v987_v41, %v987_v41  ;;  %v3788_v62 = vrot.slane %v987_v41, 9  ;;  %v3787_v5 = vrot.slane %v988_v52, 9  ;;  %v1211_v7 = vmax.f32 %v980_v38, %v3786_v55 }
 0x3a6   :  { %v1038_v16 = vrot.slane %v1024_v6, %v5136_v12  ;;  %v1039_v17 = vcombine.high %v1031_v60, %v1031_v60  ;;  %v3798_v22 = vrot.slane %v1031_v60, 9  ;;  %v927_v8 = vadd.f32 %v5133_v53, %v912_v63 }
 0x3a7   :  { %v3789_v9 = vrot.slane %v989_v61, 9  ;;  %v1213_v21 = vmax.f32 %v987_v41, %v3788_v62  ;;  %v1212_v54 = vmax.f32 %v988_v52, %v3787_v5  ;;  %v1302_v19 = vrot.slane %v1211_v7, %v5143_v32 }
 0x3a8   :  { %v1040_v28 = vcombine.high %v1038_v16, %v1038_v16  ;;  %v3799_v10 = vrot.slane %v1039_v17, 9  ;;  %v5198_v30 = vmax.f32 %v1004_v29, %v3792_v31  ;;  %v3800_v34 = vrot.slane %v1038_v16, 9 }
 0x3a9   :  { %v1214_v33 = vmax.f32 %v989_v61, %v3789_v9  ;;  %v5200_v36 = vmax.f32 %v1031_v60, %v3798_v22  ;;  %v1318_v43 = vrot.slane %v5187_v1, %v5143_v32  ;;  %v1306_v44 = vrot.slane %v1212_v54, %v5143_v32 }
 0x3aa   :  { %v1310_v38 = vrot.slane %v1213_v21, %v5143_v32  ;;  %v3801_v49 = vrot.slane %v1040_v28, 9  ;;  %v1408_v0 = vsel %vm1407_vm11, %v1302_v19, %v1298_v13  ;;  %v5208_v29 = vmax.f32 %v1039_v17, %v3799_v10 }
 0x3ab   :  { %v1314_v50 = vrot.slane %v1214_v33, %v5143_v32  ;;  %v1007_v31 = vcombine.high %v927_v8, %v927_v8  ;;  %v5210_v41 = vmax.f32 %v1038_v16, %v3800_v34  ;;  %v1014_v52 = vrot.slane %v927_v8, %v5136_v12 }
 0x3ac   :  { %v900_v55 = vmax.f32 %v890_v4, 0.0  ;;  %v885_v1 = vadd.f32 %v5127_v40, %v884_v37  ;;  %v5214_v6 = vmax.f32 %v1040_v28, %v3801_v49  ;;  %v1350_v60 = vrot.slane %v5200_v36, %v5143_v32 }
 0x3ad   :  { %v1021_v61 = vrot.slane %v1007_v31, %v5136_v12  ;;  %v3793_v62 = vrot.slane %v1006_v51, 9  ;;  %v1022_v13 = vcombine.high %v1014_v52, %v1014_v52  ;;  %v3794_v63 = vrot.slane %v1014_v52, 9 }
 0x3ae   :  { %v915_v5 = vmul.f32 %v5130_v26, %v900_v55  ;;  %v1322_v7 = vrot.slane %v5189_v2, %v5143_v32  ;;  %v899_v40 = vmax.f32 %v885_v1, 0.0  ;;  %v1326_v22 = vrot.slane %v5198_v30, %v5143_v32 }
 0x3af   :  { %v1023_v4 = vcombine.high %v1021_v61, %v1021_v61  ;;  %v3796_v16 = vrot.slane %v1021_v61, 9  ;;  %v1218_v17 = vmax.f32 %v1006_v51, %v3793_v62  ;;  %v3795_v9 = vrot.slane %v1022_v13, 9 }
 0x3b0   :  { %v930_v21 = vadd.f32 %v5133_v53, %v915_v5  ;;  %v1409_v8 = vsel %vm1395_vm10, %v1306_v44, %v1408_v0  ;;  %v1362_v54 = vrot.slane %v5214_v6, %v5143_v32  ;;  %v1219_v28 = vmax.f32 %v1014_v52, %v3794_v63 }
 0x3b1   :  { %v3797_v19 = vrot.slane %v1023_v4, 9  ;;  %v914_v2 = vmul.f32 %v5130_v26, %v899_v40  ;;  %v1220_v10 = vmax.f32 %v1022_v13, %v3795_v9  ;;  %v5229_v33 = vmax.f32 %v1021_v61, %v3796_v16 }
 0x3b2   :  { %v1058_v51 = vcombine.high %v930_v21, %v930_v21  ;;  %v1065_v34 = vrot.slane %v930_v21, %v5136_v12  ;;  %v1330_v44 = vrot.slane %v1218_v17, %v5143_v32  ;;  %v1410_v49 = vsel %vm1397_vm12, %v1310_v38, %v1409_v8 }
 0x3b3   :  { %v5232_v37 = vmax.f32 %v1023_v4, %v3797_v19  ;;  %v929_v30 = vadd.f32 %v5133_v53, %v914_v2  ;;  %v1338_v0 = vrot.slane %v1220_v10, %v5143_v32  ;;  %v1334_v55 = vrot.slane %v1219_v28, %v5143_v32  ;;  %v1495_v2 = vld [vmem:[%s6110_s7 + $0x8] sm:$0xff] }
 0x3b4   :  { %v1072_v31 = vrot.slane %v1058_v51, %v5136_v12  ;;  %v1073_v26 = vcombine.high %v1065_v34, %v1065_v34  ;;  %v3806_v52 = vrot.slane %v1065_v34, 9  ;;  %v1411_v61 = vsel %vm6091_vm13, %v1314_v50, %v1410_v49  ;;  %4031 = vmatprep.subr.mxu0 %v1495_v2 }
 0x3b5   :  { %v1041_v1 = vcombine.high %v929_v30, %v929_v30  ;;  %v1048_v6 = vrot.slane %v929_v30, %v5136_v12  ;;  %v1342_v53 = vrot.slane %v5229_v33, %v5143_v32  ;;  %v1412_v16 = vsel %vm1401_vm14, %v1318_v43, %v1411_v61  ;;  %4032 = vmatpush3.msra.mxu0 %v1495_v2 }
 0x3b6   :  { %v3807_v62 = vrot.slane %v1073_v26, 9  ;;  %v3808_v13 = vrot.slane %v1072_v31, 9  ;;  %v1231_v63 = vmax.f32 %v1065_v34, %v3806_v52  ;;  %v1346_v40 = vrot.slane %v5232_v37, %v5143_v32 }
 0x3b7   :  { %v1055_v38 = vrot.slane %v1041_v1, %v5136_v12  ;;  %v1056_v5 = vcombine.high %v1048_v6, %v1048_v6  ;;  %v3802_v4 = vrot.slane %v1048_v6, 9  ;;  %v1415_v17 = vsel %vm1395_vm10, %v1338_v0, %v1334_v55 }
 0x3b8   :  { %v1232_v9 = vmax.f32 %v1073_v26, %v3807_v62  ;;  %v1413_v50 = vsel %vm6090_vm15, %v1322_v7, %v1412_v16  ;;  %v1233_v10 = vmax.f32 %v1072_v31, %v3808_v13  ;;  %v1382_v33 = vrot.slane %v1231_v63, %v5143_v32 }
 0x3b9   :  { %v1057_v21 = vcombine.high %v1055_v38, %v1055_v38  ;;  %v3803_v8 = vrot.slane %v1056_v5, 9  ;;  %v3804_v19 = vrot.slane %v1055_v38, 9  ;;  %v1227_v28 = vmax.f32 %v1048_v6, %v3802_v4  ;;  %v1494_v6 = vld [vmem:[%s6110_s7] sm:$0xff] }
 0x3ba   :  { %v5255_v43 = vsel %vm6089_vm6, %v1326_v22, %v1413_v50  ;;  %v1436_v51 = vsel %vm324_vm0, %v1330_v44, 0.0  ;;  %v1398_v26 = vsel %vm1397_vm12, %v1278_v35, %v5183_v42  ;;  %v1290_v18 = vrot.slane %v5153_v57, %v5143_v32  ;;  %4033 = vmatprep.subr.mxu0 %v1494_v6 }
 0x3bb   :  { %v3805_v34 = vrot.slane %v1057_v21, 9  ;;  %v1228_v37 = vmax.f32 %v1056_v5, %v3803_v8  ;;  %v1229_v7 = vmax.f32 %v1055_v38, %v3804_v19  ;;  %v1366_v30 = vrot.slane %v1227_v28, %v5143_v32  ;;  %4034 = vmatpush3.msra.mxu0 %v1494_v6 }
 0x3bc   :  { %v1443_v49 = vrot.slane %v5255_v43, 1  ;;  %v1445_v0 = vrot.slane %v1436_v51, 1  ;;  %v1465_v22 = vrot.slane %v5255_v43, 2  ;;  %v1400_v35 = vsel %vm6091_vm13, %v1282_v39, %v1398_v26 }
 0x3bd   :  { %v1230_v52 = vmax.f32 %v1057_v21, %v3805_v34  ;;  %v1370_v44 = vrot.slane %v1228_v37, %v5143_v32  ;;  %v1374_v55 = vrot.slane %v1229_v7, %v5143_v32  ;;  %v1421_v1 = vsel %vm1407_vm11, %v1366_v30, %v1362_v54  ;;  %v5326_v37 = vld [vmem:[#allocation14 + $0x8] sm:$0xf] }
 0x3be   :  { %v1446_v61 = vsel %vm357_vm3, %v1443_v49, %v1445_v0  ;;  %v1074_v42 = vcombine.high %v1072_v31, %v1072_v31  ;;  %v1294_v54 = vrot.slane %v5156_v3, %v5143_v32  ;;  %v1402_v13 = vsel %vm1401_vm14, %v1286_v20, %v1400_v35  ;;  %4059 = vmatprep.subr.msk.mxu0 %vm495_vm1, %v5326_v37 }
 0x3bf   :  { %v1378_v62 = vrot.slane %v1230_v52, %v5143_v32  ;;  %1454 = vrot.lane.b32.xlu1 %v1446_v61, %s4577_s27  ;;  %v1467_v57 = vrot.slane %v1436_v51, 2  ;;  %v1404_v63 = vsel %vm6090_vm15, %v1290_v18, %v1402_v13  ;;  %v1386_v39 = vrot.slane %v1232_v9, %v5143_v32 }
 0x3c0   :  { %v3809_v27 = vrot.slane %v1074_v42, 9  ;;  %v1422_v31 = vsel %vm1395_vm10, %v1370_v44, %v1421_v1  ;;  %v1406_v38 = vsel %vm6089_vm6, %v1294_v54, %v1404_v63  ;;  %v1390_v3 = vrot.slane %v1233_v10, %v5143_v32 }
 0x3c1   :  { %v1468_v5 = vsel %vm400_vm2, %v1465_v22, %v1467_v57  ;;  %v1423_v4 = vsel %vm1397_vm12, %v1374_v55, %v1422_v31  ;;  %v5295_v56 = vsel %vm324_vm0, 0.0, %v1406_v38  ;;  %v1416_v50 = vsel %vm1397_vm12, %v1342_v53, %v1415_v17 }
 0x3c2   :  { %v1234_v20 = vmax.f32 %v1074_v42, %v3809_v27  ;;  %v1424_v16 = vsel %vm6091_vm13, %v1378_v62, %v1423_v4  ;;  %v1442_v9 = vrot.slane %v5295_v56, 1  ;;  %v1354_v8 = vrot.slane %v5208_v29, %v5143_v32 }
 0x3c3   :  { %1476 = vrot.lane.b32.xlu1 %v1468_v5, %s4594_s13  ;;  %v1425_v21 = vsel %vm1401_vm14, %v1382_v33, %v1424_v16  ;;  %v1417_v19 = vsel %vm6091_vm13, %v1346_v40, %v1416_v50  ;;  %v1358_v10 = vrot.slane %v5210_v41, %v5143_v32  ;;  %v1464_v34 = vrot.slane %v5295_v56, 2  ;;  %v2025_v5 = vpop.permute.xlu1 %2024 }
 0x3c4   :  { %v1394_v28 = vrot.slane %v1234_v20, %v5143_v32  ;;  %v1426_v2 = vsel %vm6090_vm15, %v1386_v39, %v1425_v21  ;;  %v1418_v53 = vsel %vm1401_vm14, %v1350_v60, %v1417_v19  ;;  %v1444_v17 = vsel %vm357_vm3, %v1442_v9, %v1443_v49 }
 0x3c5   :  { %v5315_v33 = vsel %vm6089_vm6, %v1390_v3, %v1426_v2  ;;  %v1419_v29 = vsel %vm6090_vm15, %v1354_v8, %v1418_v53  ;;  %1452 = vrot.lane.b32.xlu0 %v1444_v17, %s4577_s27  ;;  %v5333_v7 = vsel %vm1971_vm9, %v1979_v45, %v1980_v59  ;;  %v5340_v30 = vsel %vm1971_vm9, %v1980_v59, %v1982_v11  ;;  %v2023_v3 = vpop.permute.xlu0 %2022 }
 0x3c6   :  { %v1437_v40 = vsel %vm324_vm0, %v1394_v28, 0.0  ;;  %v1448_v51 = vrot.slane %v5315_v33, 1  ;;  %v1420_v41 = vsel %vm6089_vm6, %v1358_v10, %v1419_v29  ;;  %v1466_v49 = vsel %vm400_vm2, %v1464_v34, %v1465_v22 }
 0x3c7   :  { %v1450_v36 = vrot.slane %v1437_v40, 1  ;;  %v5324_v60 = vsel %vm324_vm0, 0.0, %v1420_v41  ;;  %v1470_v52 = vrot.slane %v5315_v33, 2  ;;  %v1472_v11 = vrot.slane %v1437_v40, 2  ;;  %v2067_v4 = vpop.permute.xlu1 %2066  ;;  %v2104_v40 = vld [vmem:[#allocation14] sm:$0xff] }
 0x3c8   :  { %v1447_v26 = vrot.slane %v5324_v60, 1  ;;  %v2014_v59 = vrot.slane %v5333_v7, 2  ;;  %v2016_v22 = vrot.slane %v5340_v30, 2  ;;  %v2013_v55 = vrot.slane %v5353_v24, 2 }
 0x3c9   :  { %v1451_v0 = vsel %vm357_vm3, %v1448_v51, %v1450_v36  ;;  %1474 = vrot.lane.b32.xlu0 %v1466_v49, %s4594_s13  ;;  %v1473_v44 = vsel %vm400_vm2, %v1470_v52, %v1472_v11  ;;  %v1469_v23 = vrot.slane %v5324_v60, 2  ;;  %v2056_v1 = vrot.slane %v5333_v7, 4 }
 0x3ca   :  { %1458 = vrot.lane.b32.xlu1 %v1451_v0, %s4577_s27  ;;  %v1449_v25 = vsel %vm357_vm3, %v1447_v26, %v1448_v51  ;;  %v2017_v45 = vsel %vm400_vm2, %v2014_v59, %v2016_v22  ;;  %v2058_v6 = vrot.slane %v5340_v30, 4  ;;  %v2055_v18 = vrot.slane %v5353_v24, 4 }
 0x3cb   :  { %v1471_v61 = vsel %vm400_vm2, %v1469_v23, %v1470_v52  ;;  %v2015_v35 = vsel %vm400_vm2, %v2013_v55, %v2014_v59  ;;  %v2018_v62 = vrot.slane %v5119_v14, 2  ;;  %v2020_v54 = vrot.slane %v5122_v15, 2  ;;  %v2029_v20 = vpop.permute.xlu1 %2028 }
 0x3cc   :  { %v2059_v42 = vsel %vm495_vm1, %v2056_v1, %v2058_v6  ;;  %v2057_v13 = vsel %vm495_vm1, %v2055_v18, %v2056_v1  ;;  %v2060_v63 = vrot.slane %v5119_v14, 4  ;;  %v2062_v27 = vrot.slane %v5122_v15, 4  ;;  %v2065_v15 = vpop.permute.xlu0 %2064 }
 0x3cd   :  { %1456 = vrot.lane.b32.xlu0 %v1449_v25, %s4577_s27  ;;  %v2021_v57 = vsel %vm400_vm2, %v2018_v62, %v2020_v54  ;;  %v2019_v39 = vsel %vm400_vm2, %v2016_v22, %v2018_v62  ;;  %vm6111_vm9 = vcmask 97280   ;;  %v2091_v59 = vsel %vm443_vm4, %v5101_v58, %v2029_v20  ;;  %v1684_v54 = vld [vmem:[%s6118_s16 + $0x10] sm:$0xff] }
 0x3ce   :  { %1480 = vrot.lane.b32.xlu1 %v1473_v44, %s4594_s13  ;;  %v2063_v31 = vsel %vm495_vm1, %v2060_v63, %v2062_v27  ;;  %v2061_v38 = vsel %vm495_vm1, %v2058_v6, %v2060_v63  ;;  %vm6112_vm6 = vmmov %vm6111_vm9 }
 0x3cf   :  { %v2071_v50 = vpop.permute.xlu1 %2070  ;;  %vm6113_vm15 = vmmov %vm6112_vm6 }
 0x3d0   :  { %v2027_v16 = vpop.permute.xlu0 %2026  ;;  %v2099_v23 = vsel %vm452_vm5, %v2091_v59, %v2071_v50  ;;  %vm6115_vm13 = vmmov %vm6112_vm6 }
 0x3d1   :  { %1478 = vrot.lane.b32.xlu0 %v1471_v61, %s4594_s13 }
 0x3d2   :  { %2032 = vrot.lane.b32.xlu1 %v2017_v45, %s4593_s10 }
 0x3d4   :  { %v2069_v9 = vpop.permute.xlu0 %2068 }
 0x3d5   :  { %2030 = vrot.lane.b32.xlu0 %v2015_v35, %s4593_s10  ;;  %v1687_v35 = vld [vmem:[%s6118_s16 + $0x28] sm:$0xff] }
 0x3d6   :  { %2074 = vrot.lane.b32.xlu1 %v2059_v42, %s4577_s27  ;;  %4041 = vmatprep.subr.mxu1 %v1687_v35  ;;  %v3810_v42 = vld [vmem:[#allocation8] ss:$0 sm:$0xff] }
 0x3d7   :  { %4042 = vmatpush3.msra.mxu1 %v1687_v35 }
 0x3d9   :  { %2072 = vrot.lane.b32.xlu0 %v2057_v13, %s4577_s27  ;;  %v1683_v13 = vld [vmem:[%s6118_s16 + $0x8] sm:$0xff] }
 0x3da   :  { %2036 = vrot.lane.b32.xlu1 %v2021_v57, %s4593_s10 }
 0x3dd   :  { %2034 = vrot.lane.b32.xlu0 %v2019_v39, %s4593_s10 }
 0x3de   :  { %2078 = vrot.lane.b32.xlu1 %v2063_v31, %s4577_s27  ;;  %v1682_v31 = vld [vmem:[%s6118_s16] sm:$0xff] }
 0x3e1   :  { %2076 = vrot.lane.b32.xlu0 %v2061_v38, %s4577_s27 }
 0x431   :  { %v1455_v21 = vpop.permute.xlu1 %1454 }
 0x432   :  { %v1487_v28 = vsel %vm452_vm5, %v5255_v43, %v1455_v21 }
 0x435   :  { %v1477_v19 = vpop.permute.xlu1 %1476 }
 0x436   :  { %v1491_v10 = vsel %vm744_vm7, %v1487_v28, %v1477_v19 }
 0x437   :  { %v1453_v8 = vpop.permute.xlu0 %1452 }
 0x438   :  { %v1486_v2 = vsel %vm452_vm5, %v5295_v56, %v1453_v8  ;;  %v2088_v56 = vsel %vm443_vm4, %v5080_v47, %v2023_v3  ;;  %v2090_v47 = vsel %vm443_vm4, %v5083_v48, %v2027_v16 }
 0x439   :  { %v2096_v52 = vsel %vm452_vm5, %v2088_v56, %v2065_v15 }
 0x43b   :  { %v1475_v53 = vpop.permute.xlu0 %1474 }
 0x43c   :  { %v1459_v17 = vpop.permute.xlu1 %1458  ;;  %v1490_v29 = vsel %vm744_vm7, %v1486_v2, %v1475_v53 }
 0x43d   :  { %4035 = vmatprep.mubr.msk.f32.mxu0 %vm763_vm8, %v1490_v29  ;;  %v1489_v43 = vsel %vm452_vm5, %v5315_v33, %v1459_v17 }
 0x43e   :  { %4036 = vmatmul.mubr.msk.f32.vlgmr.msra.gmra.mxu0 %vm763_vm8, %v1491_v10 }
 0x43f   :  { %v1457_v51 = vpop.permute.xlu0 %1456  ;;  %4060 = vmatpush3.msk.msra.mxu0 %vm495_vm1, %v5326_v37  ;;  %v2089_v37 = vsel %vm443_vm4, %v5077_v46, %v2025_v5  ;;  %v2098_v46 = vsel %vm452_vm5, %v2090_v47, %v2069_v9 }
 0x440   :  { %v1481_v41 = vpop.permute.xlu1 %1480  ;;  %4061 = vmatprep.subr.mxu0 %v2104_v40  ;;  %v1488_v34 = vsel %vm452_vm5, %v5324_v60, %v1457_v51  ;;  %v2097_v25 = vsel %vm452_vm5, %v2089_v37, %v2067_v4  ;;  %v5469_v51 = vld [vmem:[#allocation16] ss:$0 sm:$0xff] }
 0x441   :  { %4062 = vmatpush3.msra.mxu0 %v2104_v40  ;;  %v1493_v36 = vsel %vm744_vm7, %v1489_v43, %v1481_v41 }
 0x443   :  { %v1479_v49 = vpop.permute.xlu0 %1478 }
 0x444   :  { %v2033_v0 = vpop.permute.xlu1 %2032  ;;  %v1492_v26 = vsel %vm744_vm7, %v1488_v34, %v1479_v49 }
 0x445   :  { %4038 = vmatprep.mubr.msk.f32.mxu0 %vm763_vm8, %v1492_v26  ;;  %v2093_v44 = vsel %vm443_vm4, %v5333_v7, %v2033_v0 }
 0x446   :  { %4039 = vmatmul.mubr.msk.f32.gmra.mxu0 %vm763_vm8, %v1493_v36 }
 0x447   :  { %4063 = vmatprep.mubr.msk.f32.mxu0 %vm6111_vm9, %v2096_v52  ;;  %v2031_v33 = vpop.permute.xlu0 %2030  ;;  %vm6114_vm9 = vmmov %vm6112_vm6 }
 0x448   :  { %v2075_v60 = vpop.permute.xlu1 %2074  ;;  %v2092_v11 = vsel %vm443_vm4, %v5353_v24, %v2031_v33 }
 0x449   :  { %v2101_v24 = vsel %vm452_vm5, %v2093_v44, %v2075_v60 }
 0x44a   :  { %4064 = vmatmul.mubr.msk.f32.vlgmr.msra.gmra.mxu0 %vm6112_vm6, %v2097_v25 }
 0x44b   :  { %4066 = vmatprep.mubr.msk.f32.mxu0 %vm6113_vm15, %v2098_v46  ;;  %v2073_v22 = vpop.permute.xlu0 %2072  ;;  %vm6116_vm15 = vmmov %vm6112_vm6 }
 0x44c   :  { %v2037_v48 = vpop.permute.xlu1 %2036  ;;  %v2100_v55 = vsel %vm452_vm5, %v2092_v11, %v2073_v22 }
 0x44d   :  { %v2095_v45 = vsel %vm443_vm4, %v5119_v14, %v2037_v48  ;;  %v1686_v14 = vld [vmem:[%s6118_s16 + $0x20] sm:$0xff] }
 0x44e   :  { %4067 = vmatmul.mubr.msk.f32.gmra.mxu0 %vm6114_vm9, %v2099_v23  ;;  %vm6117_vm9 = vmmov %vm6112_vm6  ;;  %4043 = vmatprep.subr.mxu1 %v1686_v14 }
 0x44f   :  { %v2035_v58 = vpop.permute.xlu0 %2034  ;;  %4069 = vmatprep.mubr.msk.f32.mxu0 %vm6115_vm13, %v2100_v55  ;;  %4044 = vmatpush3.msra.mxu1 %v1686_v14 }
 0x450   :  { %v2079_v1 = vpop.permute.xlu1 %2078  ;;  %v2094_v6 = vsel %vm443_vm4, %v5340_v30, %v2035_v58  ;;  %v1685_v30 = vld [vmem:[%s6118_s16 + $0x18] sm:$0xff]  ;;  %vm6121_vm4 = vcmask 1046534  }
 0x451   :  { %v2103_v61 = vsel %vm452_vm5, %v2095_v45, %v2079_v1  ;;  %4045 = vmatprep.subr.mxu1 %v1685_v30  ;;  %vm6122_vm13 = vmmov %vm6121_vm4 }
 0x452   :  { %4070 = vmatmul.mubr.msk.f32.gmra.mxu0 %vm6112_vm6, %v2101_v24  ;;  %4046 = vmatpush3.msra.mxu1 %v1685_v30  ;;  %vm6124_vm6 = vcmask 1047559  }
 0x453   :  { %v2077_v7 = vpop.permute.xlu0 %2076  ;;  %4047 = vmatprep.subr.mxu1 %v1684_v54 }
 0x454   :  { %v2102_v18 = vsel %vm452_vm5, %v2094_v6, %v2077_v7  ;;  %4048 = vmatpush3.msra.mxu1 %v1684_v54  ;;  %v5494_v7 = vld [vmem:[#allocation17 + $0x10] sm:$0xff] }
 0x455   :  { %4072 = vmatprep.mubr.msk.f32.mxu0 %vm6116_vm15, %v2102_v18  ;;  %4049 = vmatprep.subr.mxu1 %v1683_v13  ;;  %vm6125_vm15 = vmmov %vm6124_vm6 }
 0x456   :  { %4073 = vmatmul.mubr.msk.f32.gmra.mxu0 %vm6117_vm9, %v2103_v61  ;;  %4050 = vmatpush3.msra.mxu1 %v1683_v13 }
 0x457   :  { %4051 = vmatprep.subr.mxu1 %v1682_v31 }
 0x458   :  { %4052 = vmatpush3.msra.mxu1 %v1682_v31 }
 0x459   :  { %4075 = vmatprep.subr.mxu1 %v5494_v7 }
 0x4fe   :  { %v4037_v62 = vpop.f32.mrf.mxu0 }
 0x4ff   :  { %v1588_v57 = vadd.f32 %v4037_v62, %v3810_v42 }
 0x500   :  { %v1582_v63 = vpop.f32.mrf.mxu0 }
 0x501   :  { %v1602_v27 = vmax.f32 %v1588_v57, 0.0  ;;  %v1583_v39 = vadd.f32 %v3810_v42, %v1582_v63 }
 0x503   :  { %v1610_v38 = vrot.slane %v1602_v27, 7  ;;  %v1601_v5 = vmax.f32 %v1583_v39, 0.0 }
 0x505   :  { %v1623_v3 = vsel %vm324_vm0, %v1610_v38, 0.0  ;;  %v1609_v4 = vrot.slane %v1601_v5, 7 }
 0x506   :  { %v4040_v15 = vpop.f32.mrf.mxu0  ;;  %v1632_v9 = vrot.slane %v1623_v3, 1  ;;  %v1654_v56 = vrot.slane %v1623_v3, 2 }
 0x507   :  { %v5458_v20 = vsel %vm324_vm0, %v1609_v4, %v1610_v38  ;;  %v5461_v16 = vsel %vm324_vm0, 0.0, %v1609_v4  ;;  %v1598_v50 = vadd.f32 %v4040_v15, %v3810_v42 }
 0x508   :  { %v1629_v21 = vrot.slane %v5461_v16, 1  ;;  %v1630_v8 = vrot.slane %v5458_v20, 1  ;;  %v1592_v19 = vpop.f32.mrf.mxu0  ;;  %v1651_v10 = vrot.slane %v5461_v16, 2  ;;  %v1652_v29 = vrot.slane %v5458_v20, 2 }
 0x509   :  { %v1604_v28 = vmax.f32 %v1598_v50, 0.0  ;;  %v1593_v2 = vadd.f32 %v3810_v42, %v1592_v19 }
 0x50a   :  { %v1633_v53 = vsel %vm357_vm3, %v1630_v8, %v1632_v9  ;;  %v1631_v17 = vsel %vm357_vm3, %v1629_v21, %v1630_v8  ;;  %v4065_v40 = vpop.f32.mrf.mxu0  ;;  %v1655_v37 = vsel %vm400_vm2, %v1652_v29, %v1654_v56  ;;  %v1653_v52 = vsel %vm400_vm2, %v1651_v10, %v1652_v29 }
 0x50b   :  { %1641 = vrot.lane.b32.xlu1 %v1633_v53, %s4594_s13  ;;  %1639 = vrot.lane.b32.xlu0 %v1631_v17, %s4594_s13  ;;  %v1613_v41 = vrot.slane %v1604_v28, 7  ;;  %v1603_v43 = vmax.f32 %v1593_v2, 0.0  ;;  %v2212_v0 = vadd.f32 %v4065_v40, %v5469_v51 }
 0x50c   :  { %v2206_v34 = vpop.f32.mrf.mxu0 }
 0x50d   :  { %v1624_v36 = vsel %vm324_vm0, %v1613_v41, 0.0  ;;  %v1612_v49 = vrot.slane %v1603_v43, 7  ;;  %v2207_v26 = vadd.f32 %v5469_v51, %v2206_v34  ;;  %v2246_v55 = vmax.f32 %v2212_v0, 0.0 }
 0x50e   :  { %v4068_v47 = vpop.f32.mrf.mxu0  ;;  %v1637_v11 = vrot.slane %v1624_v36, 1  ;;  %v1659_v35 = vrot.slane %v1624_v36, 2 }
 0x50f   :  { %1663 = vrot.lane.b32.xlu1 %v1655_v37, %s4596_s20  ;;  %1661 = vrot.lane.b32.xlu0 %v1653_v52, %s4596_s20  ;;  %v5481_v33 = vsel %vm324_vm0, %v1612_v49, %v1613_v41  ;;  %v5484_v60 = vsel %vm324_vm0, 0.0, %v1612_v49  ;;  %v2245_v25 = vmax.f32 %v2207_v26, 0.0  ;;  %v2222_v46 = vadd.f32 %v4068_v47, %v5469_v51 }
 0x510   :  { %v1634_v59 = vrot.slane %v5484_v60, 1  ;;  %v2216_v22 = vpop.f32.mrf.mxu0  ;;  %v1635_v48 = vrot.slane %v5481_v33, 1  ;;  %v1656_v44 = vrot.slane %v5484_v60, 2  ;;  %v1657_v6 = vrot.slane %v5481_v33, 2 }
 0x511   :  { %v2217_v23 = vadd.f32 %v5469_v51, %v2216_v22  ;;  %v2248_v24 = vmax.f32 %v2222_v46, 0.0  ;;  %v2261_v61 = vrot.slane %v2245_v25, 4  ;;  %v2262_v30 = vrot.slane %v2246_v55, 4 }
 0x512   :  { %v4071_v58 = vpop.f32.mrf.mxu0  ;;  %v1638_v45 = vsel %vm357_vm3, %v1635_v48, %v1637_v11  ;;  %v1636_v1 = vsel %vm357_vm3, %v1634_v59, %v1635_v48  ;;  %v1660_v54 = vsel %vm400_vm2, %v1657_v6, %v1659_v35  ;;  %v1658_v13 = vsel %vm400_vm2, %v1656_v44, %v1657_v6  ;;  %v2376_v35 = vld [vmem:[#allocation17 + $0x8] sm:$0xff] }
 0x513   :  { %v2247_v18 = vmax.f32 %v2217_v23, 0.0  ;;  %1645 = vrot.lane.b32.xlu1 %v1638_v45, %s4594_s13  ;;  %1643 = vrot.lane.b32.xlu0 %v1636_v1, %s4594_s13  ;;  %v2266_v42 = vrot.slane %v2248_v24, 4  ;;  %v5502_v57 = vsel %vm495_vm1, 0.0, %v2261_v61  ;;  %v5507_v27 = vsel %vm495_vm1, %v2261_v61, %v2262_v30 }
 0x514   :  { %v2226_v14 = vpop.f32.mrf.mxu0  ;;  %v2293_v31 = vrot.slane %v5502_v57, 4  ;;  %v2232_v38 = vadd.f32 %v4071_v58, %v5469_v51  ;;  %v2294_v3 = vrot.slane %v5507_v27, 4  ;;  %vm1677_vm0 = vcmask 261120  }
 0x515   :  { %v2264_v63 = vrot.slane %v2247_v18, 4  ;;  %v2287_v5 = vsel %vm495_vm1, %v2266_v42, 0.0  ;;  %v2227_v4 = vadd.f32 %v5469_v51, %v2226_v14  ;;  %vm1695_vm2 = vcmask 392192  }
 0x516   :  { %v4074_v62 = vpop.f32.mrf.mxu0  ;;  %v2250_v9 = vmax.f32 %v2232_v38, 0.0  ;;  %v2295_v8 = vsel %vm495_vm1, %v2293_v31, %v2294_v3  ;;  %vm6120_vm3 = vcmask 1044484  }
 0x517   :  { %1667 = vrot.lane.b32.xlu1 %v1660_v54, %s4596_s20  ;;  %1665 = vrot.lane.b32.xlu0 %v1658_v13, %s4596_s20  ;;  %v5519_v50 = vsel %vm495_vm1, %v2262_v30, %v2264_v63  ;;  %v2249_v19 = vmax.f32 %v2227_v4, 0.0  ;;  %v2242_v28 = vadd.f32 %v4074_v62, %v5469_v51  ;;  %v5528_v10 = vsel %vm495_vm1, %v2264_v63, %v2266_v42  ;;  %v2375_v42 = vld [vmem:[#allocation17] sm:$0xff]  ;;  %vm6127_vm9 = vmmov %vm6120_vm3 }
 0x518   :  { %v2236_v39 = vpop.f32.mrf.mxu0  ;;  %v2296_v21 = vrot.slane %v5519_v50, 4  ;;  %v2298_v17 = vrot.slane %v5528_v10, 4  ;;  %v2269_v29 = vrot.slane %v2250_v9, 4 }
 0x519   :  { %v2237_v15 = vadd.f32 %v5469_v51, %v2236_v39  ;;  %v2268_v40 = vrot.slane %v2249_v19, 4  ;;  %v2252_v41 = vmax.f32 %v2242_v28, 0.0  ;;  %v2300_v51 = vrot.slane %v2287_v5, 4 }
 0x51a   :  { %v2297_v53 = vsel %vm495_vm1, %v2294_v3, %v2296_v21  ;;  %v2299_v34 = vsel %vm495_vm1, %v2296_v21, %v2298_v17 }
 0x51b   :  { %2341 = vrot.lane.b32.xlu1 %v2287_v5, %s4594_s13  ;;  %2335 = vrot.lane.b32.xlu0 %v5507_v27, %s4594_s13  ;;  %v2251_v2 = vmax.f32 %v2237_v15, 0.0  ;;  %v2301_v56 = vsel %vm495_vm1, %v2298_v17, %v2300_v51  ;;  %v5538_v36 = vsel %vm495_vm1, 0.0, %v2268_v40  ;;  %v2273_v49 = vrot.slane %v2252_v41, 4 }
 0x51c   :  { %v5543_v0 = vsel %vm495_vm1, %v2268_v40, %v2269_v29  ;;  %v2302_v37 = vrot.slane %v5538_v36, 4 }
 0x51d   :  { %v2271_v43 = vrot.slane %v2251_v2, 4  ;;  %v2303_v52 = vrot.slane %v5543_v0, 4  ;;  %v2288_v25 = vsel %vm495_vm1, %v2273_v49, 0.0 }
 0x51e   :  { %v2309_v59 = vrot.slane %v2288_v25, 4 }
 0x51f   :  { %2337 = vrot.lane.b32.xlu1 %v5519_v50, %s4594_s13  ;;  %2311 = vrot.lane.b32.xlu0 %v2295_v8, %s4577_s27  ;;  %v5546_v26 = vsel %vm495_vm1, %v2269_v29, %v2271_v43  ;;  %v5553_v11 = vsel %vm495_vm1, %v2271_v43, %v2273_v49  ;;  %v2304_v46 = vsel %vm495_vm1, %v2302_v37, %v2303_v52  ;;  %v3815_v37 = vld [vmem:[#allocation10] ss:$0 sm:$0xff] }
 0x520   :  { %v2305_v47 = vrot.slane %v5546_v26, 4  ;;  %v2307_v48 = vrot.slane %v5553_v11, 4 }
 0x522   :  { %v2306_v22 = vsel %vm495_vm1, %v2303_v52, %v2305_v47  ;;  %v2308_v44 = vsel %vm495_vm1, %v2305_v47, %v2307_v48  ;;  %v2310_v55 = vsel %vm495_vm1, %v2307_v48, %v2309_v59 }
 0x523   :  { %2313 = vrot.lane.b32.xlu1 %v2297_v53, %s4577_s27  ;;  %2339 = vrot.lane.b32.xlu0 %v5528_v10, %s4594_s13 }
 0x527   :  { %2317 = vrot.lane.b32.xlu1 %v2301_v56, %s4577_s27  ;;  %2315 = vrot.lane.b32.xlu0 %v2299_v34, %s4577_s27 }
 0x52b   :  { %2343 = vrot.lane.b32.xlu0 %v5543_v0, %s4594_s13  ;;  %2345 = vrot.lane.b32.xlu1 %v5546_v26, %s4594_s13 }
 0x52f   :  { %2319 = vrot.lane.b32.xlu0 %v2304_v46, %s4577_s27  ;;  %2321 = vrot.lane.b32.xlu1 %v2306_v22, %s4577_s27  ;;  %v3821_v22 = vld [vmem:[#allocation13] ss:$0 sm:$0xff] }
 0x533   :  { %2323 = vrot.lane.b32.xlu0 %v2308_v44, %s4577_s27  ;;  %2325 = vrot.lane.b32.xlu1 %v2310_v55, %s4577_s27 }
 0x537   :  { %2347 = vrot.lane.b32.xlu0 %v5553_v11, %s4594_s13  ;;  %2349 = vrot.lane.b32.xlu1 %v2288_v25, %s4594_s13  ;;  %v3820_v25 = vld [vmem:[#allocation11] ss:$0 sm:$0xff] }
 0x57d   :  { %v1642_v23 = vpop.permute.xlu1 %1641  ;;  %v1640_v24 = vpop.permute.xlu0 %1639 }
 0x57e   :  { %v1674_v58 = vsel %vm744_vm7, %v5458_v20, %v1642_v23  ;;  %v1673_v45 = vsel %vm744_vm7, %v5461_v16, %v1640_v24 }
 0x581   :  { %v1664_v1 = vpop.permute.xlu1 %1663  ;;  %v1662_v6 = vpop.permute.xlu0 %1661 }
 0x582   :  { %v1679_v61 = vsel %vm1677_vm0, %v1674_v58, %v1664_v1  ;;  %v1678_v18 = vsel %vm1677_vm0, %v1673_v45, %v1662_v6 }
 0x583   :  { %4053 = vmatprep.mubr.msk.f32.mxu1 %vm1695_vm2, %v1678_v18 }
 0x584   :  { %4054 = vmatmul.mubr.msk.f32.vlgmr.msra.gmra.mxu1 %vm1695_vm2, %v1679_v61 }
 0x585   :  { %v1646_v14 = vpop.permute.xlu1 %1645  ;;  %v1644_v30 = vpop.permute.xlu0 %1643  ;;  %4076 = vmatpush3.msra.mxu1 %v5494_v7 }
 0x586   :  { %4077 = vmatprep.subr.mxu1 %v2376_v35  ;;  %v1676_v20 = vsel %vm744_vm7, %v5481_v33, %v1646_v14  ;;  %v1675_v16 = vsel %vm744_vm7, %v5484_v60, %v1644_v30 }
 0x587   :  { %4078 = vmatpush3.msra.mxu1 %v2376_v35 }
 0x588   :  { %4079 = vmatprep.subr.mxu1 %v2375_v42 }
 0x589   :  { %v1668_v62 = vpop.permute.xlu1 %1667  ;;  %v1666_v54 = vpop.permute.xlu0 %1665  ;;  %4080 = vmatpush3.msra.mxu1 %v2375_v42 }
 0x58a   :  { %v1681_v13 = vsel %vm1677_vm0, %v1676_v20, %v1668_v62  ;;  %v1680_v63 = vsel %vm1677_vm0, %v1675_v16, %v1666_v54 }
 0x58b   :  { %4056 = vmatprep.mubr.msk.f32.mxu1 %vm1695_vm2, %v1680_v63 }
 0x58c   :  { %4057 = vmatmul.mubr.msk.f32.gmra.mxu1 %vm1695_vm2, %v1681_v13 }
 0x58d   :  { %v2342_v7 = vpop.permute.xlu1 %2341  ;;  %v2336_v39 = vpop.permute.xlu0 %2335 }
 0x591   :  { %v2338_v31 = vpop.permute.xlu1 %2337  ;;  %v2312_v38 = vpop.permute.xlu0 %2311 }
 0x592   :  { %v2359_v33 = vsel %vm452_vm5, %v5502_v57, %v2312_v38 }
 0x593   :  { %v2367_v60 = vsel %vm744_vm7, %v2359_v33, %v2336_v39 }
 0x594   :  { %4081 = vmatprep.mubr.msk.f32.mxu1 %vm763_vm8, %v2367_v60 }
 0x595   :  { %v2314_v5 = vpop.permute.xlu1 %2313  ;;  %v2340_v3 = vpop.permute.xlu0 %2339 }
 0x596   :  { %v2360_v4 = vsel %vm452_vm5, %v5507_v27, %v2314_v5 }
 0x597   :  { %v2368_v15 = vsel %vm744_vm7, %v2360_v4, %v2338_v31 }
 0x598   :  { %4082 = vmatmul.mubr.msk.f32.vlgmr.msra.gmra.mxu1 %vm763_vm8, %v2368_v15 }
 0x599   :  { %v2318_v9 = vpop.permute.xlu1 %2317  ;;  %v2316_v21 = vpop.permute.xlu0 %2315 }
 0x59a   :  { %v2362_v8 = vsel %vm452_vm5, %v5528_v10, %v2318_v9  ;;  %v2361_v57 = vsel %vm452_vm5, %v5519_v50, %v2316_v21 }
 0x59b   :  { %v2369_v19 = vsel %vm744_vm7, %v2361_v57, %v2340_v3  ;;  %v2370_v28 = vsel %vm744_vm7, %v2362_v8, %v2342_v7 }
 0x59c   :  { %4084 = vmatprep.mubr.msk.f32.mxu1 %vm763_vm8, %v2369_v19 }
 0x59d   :  { %v2346_v2 = vpop.permute.xlu1 %2345  ;;  %4085 = vmatmul.mubr.msk.f32.gmra.mxu1 %vm763_vm8, %v2370_v28  ;;  %v2344_v27 = vpop.permute.xlu0 %2343 }
 0x5a1   :  { %v2322_v53 = vpop.permute.xlu1 %2321  ;;  %v2320_v17 = vpop.permute.xlu0 %2319 }
 0x5a2   :  { %v2364_v29 = vsel %vm452_vm5, %v5543_v0, %v2322_v53  ;;  %v2363_v10 = vsel %vm452_vm5, %v5538_v36, %v2320_v17 }
 0x5a3   :  { %v2371_v50 = vsel %vm744_vm7, %v2363_v10, %v2344_v27  ;;  %v2372_v40 = vsel %vm744_vm7, %v2364_v29, %v2346_v2  ;;  %v5635_v2 = vld [vmem:[#allocation19] ss:$0 sm:$0xff] }
 0x5a4   :  { %4087 = vmatprep.mubr.msk.f32.mxu1 %vm763_vm8, %v2371_v50 }
 0x5a5   :  { %v2326_v41 = vpop.permute.xlu1 %2325  ;;  %4088 = vmatmul.mubr.msk.f32.gmra.mxu1 %vm763_vm8, %v2372_v40  ;;  %v2324_v43 = vpop.permute.xlu0 %2323 }
 0x5a6   :  { %v2366_v51 = vsel %vm452_vm5, %v5553_v11, %v2326_v41  ;;  %v2365_v56 = vsel %vm452_vm5, %v5546_v26, %v2324_v43 }
 0x5a9   :  { %v2350_v34 = vpop.permute.xlu1 %2349  ;;  %v2348_v49 = vpop.permute.xlu0 %2347 }
 0x5aa   :  { %v2374_v36 = vsel %vm744_vm7, %v2366_v51, %v2350_v34  ;;  %v2373_v0 = vsel %vm744_vm7, %v2365_v56, %v2348_v49 }
 0x5ab   :  { %4090 = vmatprep.mubr.msk.f32.mxu1 %vm763_vm8, %v2373_v0 }
 0x5ac   :  { %4091 = vmatmul.mubr.msk.f32.gmra.mxu1 %vm763_vm8, %v2374_v36 }
 0x644   :  { %v4055_v52 = vpop.f32.mrf.mxu1 }
 0x645   :  { %v1780_v47 = vadd.f32 %v4055_v52, %v3815_v37 }
 0x646   :  { %v1774_v59 = vpop.f32.mrf.mxu1 }
 0x647   :  { %v1794_v46 = vmax.f32 %v1780_v47, 0.0  ;;  %v1775_v11 = vadd.f32 %v3815_v37, %v1774_v59 }
 0x649   :  { %v1805_v48 = vmul.f32 %v3820_v25, %v1794_v46  ;;  %v1793_v26 = vmax.f32 %v1775_v11, 0.0 }
 0x64b   :  { %v1816_v44 = vadd.f32 %v3821_v22, %v1805_v48  ;;  %v1804_v55 = vmul.f32 %v3820_v25, %v1793_v26 }
 0x64c   :  { %v4058_v23 = vpop.f32.mrf.mxu1 }
 0x64d   :  { %v1840_v24 = vcombine.high %v1816_v44, %v1816_v44  ;;  %v1847_v58 = vrot.slane %v1816_v44, %v5136_v12  ;;  %v1815_v45 = vadd.f32 %v3821_v22, %v1804_v55  ;;  %v1790_v1 = vadd.f32 %v4058_v23, %v3815_v37  ;;  %v3100_v55 = vld [vmem:[#allocation23 + $0x10] sm:$0xff] }
 0x64e   :  { %v1784_v6 = vpop.f32.mrf.mxu1  ;;  %4093 = vmatprep.subr.mxu0 %v3100_v55 }
 0x64f   :  { %v1854_v61 = vrot.slane %v1840_v24, %v5136_v12  ;;  %v1855_v18 = vcombine.high %v1847_v58, %v1847_v58  ;;  %v3826_v35 = vrot.slane %v1847_v58, 9  ;;  %v1823_v14 = vcombine.high %v1815_v45, %v1815_v45  ;;  %4094 = vmatpush3.msra.mxu0 %v3100_v55 }
 0x650   :  { %v1830_v30 = vrot.slane %v1815_v45, %v5136_v12  ;;  %v1796_v42 = vmax.f32 %v1790_v1, 0.0  ;;  %v1785_v20 = vadd.f32 %v3815_v37, %v1784_v6  ;;  %v5667_v1 = vld [vmem:[#allocation22] ss:$0 sm:$0xff] }
 0x651   :  { %v3827_v16 = vrot.slane %v1855_v18, 9  ;;  %v1837_v62 = vrot.slane %v1823_v14, %v5136_v12  ;;  %v3828_v39 = vrot.slane %v1854_v61, 9  ;;  %v5624_v31 = vmax.f32 %v1847_v58, %v3826_v35 }
 0x652   :  { %v1838_v54 = vcombine.high %v1830_v30, %v1830_v30  ;;  %v3822_v13 = vrot.slane %v1830_v30, 9  ;;  %v1807_v63 = vmul.f32 %v3820_v25, %v1796_v42  ;;  %v1795_v7 = vmax.f32 %v1785_v20, 0.0 }
 0x653   :  { %v1839_v38 = vcombine.high %v1837_v62, %v1837_v62  ;;  %v3824_v33 = vrot.slane %v1837_v62, 9  ;;  %v5626_v4 = vmax.f32 %v1855_v18, %v3827_v16  ;;  %v1856_v21 = vcombine.high %v1854_v61, %v1854_v61 }
 0x654   :  { %v3823_v60 = vrot.slane %v1838_v54, 9  ;;  %v1818_v5 = vadd.f32 %v3821_v22, %v1807_v63  ;;  %v1806_v3 = vmul.f32 %v3820_v25, %v1795_v7  ;;  %v5628_v9 = vmax.f32 %v1830_v30, %v3822_v13 }
 0x655   :  { %v3825_v15 = vrot.slane %v1839_v38, 9  ;;  %v5632_v57 = vmax.f32 %v1837_v62, %v3824_v33  ;;  %v3829_v17 = vrot.slane %v1856_v21, 9  ;;  %v5639_v29 = vmax.f32 %v1854_v61, %v3828_v39 }
 0x656   :  { %v5630_v8 = vmax.f32 %v1838_v54, %v3823_v60  ;;  %v1874_v19 = vcombine.high %v1818_v5, %v1818_v5  ;;  %v1881_v28 = vrot.slane %v1818_v5, %v5136_v12  ;;  %v1817_v53 = vadd.f32 %v3821_v22, %v1806_v3  ;;  %v5657_v22 = vld [vmem:[#allocation20] ss:$0 sm:$0xff] }
 0x657   :  { %v5641_v10 = vmax.f32 %v1839_v38, %v3825_v15  ;;  %v3550_v51 = vrot.slane %v5628_v9, %v5143_v32  ;;  %v3558_v0 = vrot.slane %v5632_v57, %v5143_v32  ;;  %v5654_v47 = vmax.f32 %v1856_v21, %v3829_v17 }
 0x658   :  { %v5644_v50 = vrot.slane %v1874_v19, %v5136_v12  ;;  %v1889_v40 = vcombine.high %v1881_v28, %v1881_v28  ;;  %v3834_v41 = vrot.slane %v1881_v28, 9  ;;  %v4083_v43 = vpop.f32.mrf.mxu1  ;;  %v1857_v56 = vcombine.high %v1817_v53, %v1817_v53 }
 0x659   :  { %v1864_v34 = vrot.slane %v1817_v53, %v5136_v12  ;;  %v2481_v49 = vadd.f32 %v4083_v43, %v5635_v2  ;;  %v3554_v36 = vrot.slane %v5630_v8, %v5143_v32 }
 0x65a   :  { %v3835_v37 = vrot.slane %v1889_v40, 9  ;;  %v2475_v52 = vpop.f32.mrf.mxu1  ;;  %v1871_v25 = vrot.slane %v1857_v56, %v5136_v12  ;;  %v5660_v26 = vmax.f32 %v1881_v28, %v3834_v41  ;;  %v5698_v19 = vcombine.high %v5644_v50, %v5644_v50 }
 0x65b   :  { %v1872_v59 = vcombine.high %v1864_v34, %v1864_v34  ;;  %v3830_v46 = vrot.slane %v1864_v34, 9  ;;  %v2515_v11 = vmax.f32 %v2481_v49, 0.0  ;;  %v2476_v44 = vadd.f32 %v5635_v2, %v2475_v52 }
 0x65c   :  { %v1873_v23 = vcombine.high %v1871_v25, %v1871_v25  ;;  %v3832_v58 = vrot.slane %v1871_v25, 9  ;;  %v5669_v61 = vmax.f32 %v1889_v40, %v3835_v37  ;;  %v3611_v57 = vsel %vm1407_vm11, %v3554_v36, %v3550_v51 }
 0x65d   :  { %v3831_v24 = vrot.slane %v1872_v59, 9  ;;  %v5665_v45 = vmax.f32 %v1864_v34, %v3830_v46  ;;  %v4086_v6 = vpop.f32.mrf.mxu1  ;;  %v2530_v18 = vmul.f32 %v5657_v22, %v2515_v11  ;;  %v2514_v35 = vmax.f32 %v2476_v44, 0.0 }
 0x65e   :  { %v2491_v14 = vadd.f32 %v4086_v6, %v5635_v2  ;;  %v3833_v30 = vrot.slane %v1873_v23, 9  ;;  %v5675_v20 = vmax.f32 %v1871_v25, %v3832_v58  ;;  %v5705_v34 = vsel %vm1395_vm10, %v3558_v0, %v3611_v57 }
 0x65f   :  { %v5673_v42 = vmax.f32 %v1872_v59, %v3831_v24  ;;  %v2485_v16 = vpop.f32.mrf.mxu1  ;;  %v2545_v54 = vadd.f32 %v5667_v1, %v2530_v18  ;;  %v2529_v13 = vmul.f32 %v5657_v22, %v2514_v35 }
 0x660   :  { %v2517_v63 = vmax.f32 %v2491_v14, 0.0  ;;  %v2486_v7 = vadd.f32 %v5635_v2, %v2485_v16  ;;  %v5682_v39 = vmax.f32 %v1873_v23, %v3833_v30 }
 0x661   :  { %v2577_v5 = vcombine.high %v2545_v54, %v2545_v54  ;;  %v2584_v3 = vrot.slane %v2545_v54, %v5136_v12  ;;  %v2544_v15 = vadd.f32 %v5667_v1, %v2529_v13 }
 0x662   :  { %v2532_v9 = vmul.f32 %v5657_v22, %v2517_v63  ;;  %v2516_v8 = vmax.f32 %v2486_v7, 0.0 }
 0x663   :  { %v2591_v28 = vrot.slane %v2577_v5, %v5136_v12  ;;  %v2592_v53 = vcombine.high %v2584_v3, %v2584_v3  ;;  %v3863_v17 = vrot.slane %v2584_v3, 9  ;;  %v2560_v40 = vcombine.high %v2544_v15, %v2544_v15 }
 0x664   :  { %v2567_v41 = vrot.slane %v2544_v15, %v5136_v12  ;;  %v2547_v43 = vadd.f32 %v5667_v1, %v2532_v9  ;;  %v2531_v56 = vmul.f32 %v5657_v22, %v2516_v8 }
 0x665   :  { %v2593_v49 = vcombine.high %v2591_v28, %v2591_v28  ;;  %v3864_v51 = vrot.slane %v2592_v53, 9  ;;  %v3865_v36 = vrot.slane %v2591_v28, 9  ;;  %v5707_v37 = vmax.f32 %v2584_v3, %v3863_v17  ;;  %v4089_v52 = vpop.f32.mrf.mxu1 }
 0x666   :  { %v2574_v25 = vrot.slane %v2560_v40, %v5136_v12  ;;  %v2575_v59 = vcombine.high %v2567_v41, %v2567_v41  ;;  %v3859_v46 = vrot.slane %v2567_v41, 9  ;;  %v2611_v11 = vcombine.high %v2547_v43, %v2547_v43 }
 0x667   :  { %v3866_v44 = vrot.slane %v2593_v49, 9  ;;  %v5710_v23 = vmax.f32 %v2592_v53, %v3864_v51  ;;  %v5712_v24 = vmax.f32 %v2591_v28, %v3865_v36  ;;  %v2907_v0 = vrot.slane %v5707_v37, %v5143_v32  ;;  %v2495_v13 = vpop.f32.mrf.mxu1 }
 0x668   :  { %v5716_v58 = vcombine.high %v2574_v25, %v2574_v25  ;;  %v3860_v6 = vrot.slane %v2575_v59, 9  ;;  %v3861_v18 = vrot.slane %v2574_v25, 9  ;;  %v5718_v35 = vmax.f32 %v2567_v41, %v3859_v46 }
 0x669   :  { %v5720_v14 = vmax.f32 %v2593_v49, %v3866_v44  ;;  %v2911_v30 = vrot.slane %v5710_v23, %v5143_v32  ;;  %v2915_v16 = vrot.slane %v5712_v24, %v5143_v32  ;;  %v2618_v54 = vrot.slane %v2547_v43, %v5136_v12 }
 0x66a   :  { %v5727_v63 = vmax.f32 %v2575_v59, %v3860_v6  ;;  %v5729_v7 = vmax.f32 %v2574_v25, %v3861_v18  ;;  %v2891_v5 = vrot.slane %v5718_v35, %v5143_v32  ;;  %v2625_v3 = vrot.slane %v2611_v11, %v5136_v12 }
 0x66b   :  { %v2626_v15 = vcombine.high %v2618_v54, %v2618_v54  ;;  %v3871_v9 = vrot.slane %v2618_v54, 9  ;;  %v2546_v8 = vadd.f32 %v5667_v1, %v2531_v56  ;;  %v2501_v57 = vadd.f32 %v4089_v52, %v5635_v2 }
 0x66c   :  { %v4092_v28 = vpop.f32.mrf.mxu1  ;;  %v2496_v17 = vadd.f32 %v5635_v2, %v2495_v13  ;;  %v2627_v41 = vcombine.high %v2625_v3, %v2625_v3  ;;  %v2899_v37 = vrot.slane %v5729_v7, %v5143_v32 }
 0x66d   :  { %v2511_v40 = vadd.f32 %v4092_v28, %v5635_v2  ;;  %v3872_v43 = vrot.slane %v2626_v15, 9  ;;  %v5740_v49 = vmax.f32 %v2618_v54, %v3871_v9  ;;  %v2594_v51 = vcombine.high %v2546_v8, %v2546_v8 }
 0x66e   :  { %v2601_v36 = vrot.slane %v2546_v8, %v5136_v12  ;;  %v2505_v25 = vpop.f32.mrf.mxu1  ;;  %v2519_v59 = vmax.f32 %v2501_v57, 0.0  ;;  %v2518_v56 = vmax.f32 %v2496_v17, 0.0 }
 0x66f   :  { %v2521_v46 = vmax.f32 %v2511_v40, 0.0  ;;  %v2506_v52 = vadd.f32 %v5635_v2, %v2505_v25  ;;  %v5744_v11 = vmax.f32 %v2626_v15, %v3872_v43  ;;  %v5747_v44 = vrot.slane %v2594_v51, %v5136_v12 }
 0x670   :  { %v5749_v6 = vcombine.high %v2601_v36, %v2601_v36  ;;  %v3867_v18 = vrot.slane %v2601_v36, 9  ;;  %v2534_v54 = vmul.f32 %v5657_v22, %v2519_v59  ;;  %v2533_v13 = vmul.f32 %v5657_v22, %v2518_v56 }
 0x671   :  { %v2536_v9 = vmul.f32 %v5657_v22, %v2521_v46  ;;  %v2520_v8 = vmax.f32 %v2506_v52, 0.0  ;;  %v3873_v2 = vrot.slane %v2625_v3, 9  ;;  %v3874_v15 = vrot.slane %v2627_v41, 9 }
 0x672   :  { %v3868_v57 = vrot.slane %v5749_v6, 9  ;;  %v5755_v28 = vmax.f32 %v2601_v36, %v3867_v18  ;;  %v2549_v17 = vadd.f32 %v5667_v1, %v2534_v54  ;;  %v2548_v40 = vadd.f32 %v5667_v1, %v2533_v13 }
 0x673   :  { %v2551_v43 = vadd.f32 %v5667_v1, %v2536_v9  ;;  %v2535_v51 = vmul.f32 %v5657_v22, %v2520_v8  ;;  %v5761_v25 = vmax.f32 %v2625_v3, %v3873_v2  ;;  %v5763_v59 = vmax.f32 %v2627_v41, %v3874_v15 }
 0x674   :  { %v2939_v56 = vrot.slane %v5740_v49, %v5143_v32  ;;  %v2943_v36 = vrot.slane %v5744_v11, %v5143_v32  ;;  %v2645_v46 = vcombine.high %v2549_v17, %v2549_v17  ;;  %v2652_v52 = vrot.slane %v2549_v17, %v5136_v12 }
 0x675   :  { %v2628_v18 = vcombine.high %v2548_v40, %v2548_v40  ;;  %v2635_v54 = vrot.slane %v2548_v40, %v5136_v12  ;;  %v2679_v13 = vcombine.high %v2551_v43, %v2551_v43  ;;  %v2686_v9 = vrot.slane %v2551_v43, %v5136_v12 }
 0x676   :  { %v2550_v22 = vadd.f32 %v5667_v1, %v2535_v51  ;;  %v2947_v3 = vrot.slane %v5761_v25, %v5143_v32  ;;  %v2659_v41 = vrot.slane %v2645_v46, %v5136_v12  ;;  %v2660_v49 = vcombine.high %v2652_v52, %v2652_v52 }
 0x677   :  { %v3879_v8 = vrot.slane %v2652_v52, 9  ;;  %v2642_v11 = vrot.slane %v2628_v18, %v5136_v12  ;;  %v2643_v2 = vcombine.high %v2635_v54, %v2635_v54  ;;  %v3875_v15 = vrot.slane %v2635_v54, 9 }
 0x678   :  { %v2693_v17 = vrot.slane %v2679_v13, %v5136_v12  ;;  %v2694_v21 = vcombine.high %v2686_v9, %v2686_v9  ;;  %v2661_v40 = vcombine.high %v2659_v41, %v2659_v41  ;;  %v3880_v33 = vrot.slane %v2660_v49, 9 }
 0x679   :  { %v3881_v38 = vrot.slane %v2659_v41, 9  ;;  %v2844_v43 = vmax.f32 %v2652_v52, %v3879_v8  ;;  %v5778_v48 = vcombine.high %v2642_v11, %v2642_v11  ;;  %v3876_v1 = vrot.slane %v2643_v2, 9 }
 0x67a   :  { %v3877_v51 = vrot.slane %v2642_v11, 9  ;;  %v5780_v25 = vmax.f32 %v2635_v54, %v3875_v15  ;;  %v3882_v46 = vrot.slane %v2661_v40, 9  ;;  %v2845_v60 = vmax.f32 %v2660_v49, %v3880_v33 }
 0x67b   :  { %v5782_v62 = vmax.f32 %v2659_v41, %v3881_v38  ;;  %v2971_v18 = vrot.slane %v2844_v43, %v5143_v32  ;;  %v5785_v27 = vmax.f32 %v2643_v2, %v3876_v1  ;;  %v5791_v52 = vcombine.high %v2693_v17, %v2693_v17 }
 0x67c   :  { %v5787_v13 = vmax.f32 %v2642_v11, %v3877_v51  ;;  %v5793_v8 = vmax.f32 %v2661_v40, %v3882_v46  ;;  %v2975_v54 = vrot.slane %v2845_v60, %v5143_v32  ;;  %v3887_v38 = vrot.slane %v2686_v9, 9 }
 0x67d   :  { %v3888_v49 = vrot.slane %v2694_v21, 9  ;;  %v3889_v2 = vrot.slane %v2693_v17, 9  ;;  %v2662_v11 = vcombine.high %v2550_v22, %v2550_v22  ;;  %v2669_v60 = vrot.slane %v2550_v22, %v5136_v12 }
 0x67e   :  { %v5803_v43 = vsel %vm1407_vm11, %v2975_v54, %v2971_v18  ;;  %v5805_v40 = vmax.f32 %v2686_v9, %v3887_v38  ;;  %v2951_v41 = vrot.slane %v5763_v59, %v5143_v32  ;;  %v3026_v9 = vsel %vm1407_vm11, %v2943_v36, %v2939_v56 }
 0x67f   :  { %v5808_v1 = vmax.f32 %v2694_v21, %v3888_v49  ;;  %v5810_v51 = vmax.f32 %v2693_v17, %v3889_v2  ;;  %v2676_v46 = vrot.slane %v2662_v11, %v5136_v12  ;;  %v2677_v33 = vcombine.high %v2669_v60, %v2669_v60 }
 0x680   :  { %v3003_v15 = vrot.slane %v5805_v40, %v5143_v32  ;;  %v3883_v18 = vrot.slane %v2669_v60, 9  ;;  %v3027_v54 = vsel %vm1395_vm10, %v2947_v3, %v3026_v9  ;;  %v2610_v2 = vcombine.high %v5747_v44, %v5747_v44  ;;  %v3099_v9 = vld [vmem:[#allocation23 + $0x8] sm:$0xff] }
 0x681   :  { %v3007_v21 = vrot.slane %v5808_v1, %v5143_v32  ;;  %v2678_v22 = vcombine.high %v2676_v46, %v2676_v46  ;;  %v3885_v17 = vrot.slane %v2676_v46, 9  ;;  %v3884_v38 = vrot.slane %v2677_v33, 9  ;;  %4095 = vmatprep.subr.mxu0 %v3099_v9 }
 0x682   :  { %v2848_v49 = vmax.f32 %v2669_v60, %v3883_v18  ;;  %v3028_v59 = vsel %vm1397_vm12, %v2951_v41, %v3027_v54  ;;  %v3869_v36 = vrot.slane %v5747_v44, 9  ;;  %v3870_v55 = vrot.slane %v2610_v2, 9  ;;  %v3098_v60 = vld [vmem:[#allocation23] sm:$0xff]  ;;  %4096 = vmatpush3.msra.mxu0 %v3099_v9 }
 0x683   :  { %v3886_v11 = vrot.slane %v2678_v22, 9  ;;  %v2850_v40 = vmax.f32 %v2676_v46, %v3885_v17  ;;  %v3050_v56 = vsel %vm495_vm1, %v3028_v59, 0.0  ;;  %v2849_v53 = vmax.f32 %v2677_v33, %v3884_v38  ;;  %4097 = vmatprep.subr.mxu0 %v3098_v60 }
 0x684   :  { %v2987_v1 = vrot.slane %v2848_v49, %v5143_v32  ;;  %3080 = vrot.lane.b32.xlu1 %v3050_v56, %s4594_s13  ;;  %v3059_v3 = vrot.slane %v3050_v56, 4  ;;  %v2833_v41 = vmax.f32 %v5749_v6, %v3868_v57  ;;  %v2834_v18 = vmax.f32 %v5747_v44, %v3869_v36  ;;  %4098 = vmatpush3.msra.mxu0 %v3098_v60 }
 0x685   :  { %v2919_v46 = vrot.slane %v5720_v14, %v5143_v32  ;;  %v2923_v33 = vrot.slane %v5755_v28, %v5143_v32  ;;  %v2991_v17 = vrot.slane %v2849_v53, %v5143_v32  ;;  %v2835_v54 = vmax.f32 %v2610_v2, %v3870_v55 }
 0x686   :  { %v3019_v6 = vsel %vm1407_vm11, %v2911_v30, %v2907_v0  ;;  %v3862_v44 = vrot.slane %v5716_v58, 9  ;;  %v2927_v14 = vrot.slane %v2833_v41, %v5143_v32  ;;  %v2931_v57 = vrot.slane %v2834_v18, %v5143_v32 }
 0x687   :  { %v3020_v53 = vsel %vm1395_vm10, %v2915_v16, %v3019_v6  ;;  %v2935_v23 = vrot.slane %v2835_v54, %v5143_v32  ;;  %v6119_v28 = vrot.slane %v5727_v63, %v5143_v32  ;;  %v3890_v38 = vrot.slane %v5791_v52, 9 }
 0x688   :  { %v3021_v0 = vsel %vm1397_vm12, %v2919_v46, %v3020_v53  ;;  %v2827_v30 = vmax.f32 %v5716_v58, %v3862_v44  ;;  %v2851_v49 = vmax.f32 %v2678_v22, %v3886_v11  ;;  %v2995_v2 = vrot.slane %v2850_v40, %v5143_v32 }
 0x689   :  { %v3016_v24 = vsel %vm1401_vm14, %v6119_v28, %v2891_v5  ;;  %v3022_v16 = vsel %vm6120_vm3, %v2923_v33, %v3021_v0  ;;  %v3011_v35 = vrot.slane %v5810_v51, %v5143_v32  ;;  %v2855_v5 = vmax.f32 %v5791_v52, %v3890_v38  ;;  %vm6128_vm3 = vmmov %vm6121_vm4 }
 0x68a   :  { %v3017_v7 = vsel %vm6121_vm4, %v2899_v37, %v3016_v24  ;;  %v3023_v59 = vsel %vm1401_vm14, %v2927_v14, %v3022_v16  ;;  %v2903_v58 = vrot.slane %v2827_v30, %v5143_v32  ;;  %v2999_v56 = vrot.slane %v2851_v49, %v5143_v32  ;;  %vm6129_vm4 = vmmov %vm6124_vm6 }
 0x68b   :  { %v3024_v63 = vsel %vm6122_vm13, %v2931_v57, %v3023_v59  ;;  %v6123_v36 = vrot.slane %v5782_v62, %v5143_v32  ;;  %v6126_v40 = vrot.slane %v5793_v8, %v5143_v32  ;;  %v3039_v9 = vsel %vm1407_vm11, %v3007_v21, %v3003_v15  ;;  %vm6133_vm13 = vmmov %vm6128_vm3 }
 0x68c   :  { %v3025_v11 = vsel %vm6124_vm6, %v2935_v23, %v3024_v63  ;;  %v3018_v55 = vsel %vm6125_vm15, %v2903_v58, %v3017_v7  ;;  %v3015_v62 = vrot.slane %v2855_v5, %v5143_v32  ;;  %v3040_v46 = vsel %vm1395_vm10, %v3011_v35, %v3039_v9  ;;  %vm6135_vm6 = vmmov %vm6127_vm9 }
 0x68d   :  { %v3033_v22 = vsel %vm1395_vm10, %v6123_v36, %v5803_v43  ;;  %3078 = vrot.lane.b32.xlu0 %v3025_v11, %s4594_s13  ;;  %v3057_v52 = vrot.slane %v3025_v11, 4  ;;  %v3048_v60 = vsel %vm495_vm1, 0.0, %v3018_v55  ;;  %v3878_v8 = vrot.slane %v5778_v48, 9  ;;  %vm6137_vm15 = vmmov %vm6129_vm4 }
 0x68e   :  { %v3034_v51 = vsel %vm1397_vm12, %v6126_v40, %v3033_v22  ;;  %v3056_v41 = vrot.slane %v3048_v60, 4  ;;  %v3041_v21 = vsel %vm1397_vm12, %v3015_v62, %v3040_v46  ;;  %v2963_v54 = vrot.slane %v5787_v13, %v5143_v32 }
 0x68f   :  { %v3035_v43 = vsel %vm6127_vm9, %v2987_v1, %v3034_v51  ;;  %v3060_v33 = vsel %vm495_vm1, %v3057_v52, %v3059_v3  ;;  %v2843_v44 = vmax.f32 %v5778_v48, %v3878_v8  ;;  %v6130_v57 = vrot.slane %v5780_v25, %v5143_v32  ;;  %vm6139_vm9 = vmmov %vm6128_vm3 }
 0x690   :  { %v3036_v18 = vsel %vm1401_vm14, %v2991_v17, %v3035_v43  ;;  %3068 = vrot.lane.b32.xlu1 %v3060_v33, %s4577_s27  ;;  %v3058_v1 = vsel %vm495_vm1, %v3056_v41, %v3057_v52  ;;  %v3051_v17 = vsel %vm495_vm1, %v3041_v21, 0.0  ;;  %v6131_v13 = vrot.slane %v5785_v27, %v5143_v32 }
 0x691   :  { %v3037_v15 = vsel %vm6128_vm3, %v2995_v2, %v3036_v18  ;;  %3066 = vrot.lane.b32.xlu0 %v3058_v1, %s4577_s27  ;;  %v3064_v14 = vrot.slane %v3051_v17, 4  ;;  %v6132_v37 = vrot.slane %v5641_v10, %v5143_v32  ;;  %v2967_v48 = vrot.slane %v2843_v44, %v5143_v32  ;;  %vm6141_vm3 = vmmov %vm6129_vm4  ;;  %v3248_v1 = vld [vmem:[#allocation26 + $0x28] sm:$0xff]  ;;  %v3246_v44 = vld [vmem:[#allocation26 + $0x18] sm:$0xff] }
 0x692   :  { %v3038_v6 = vsel %vm6129_vm4, %v2999_v56, %v3037_v15  ;;  %v3029_v53 = vsel %vm1401_vm14, %v6131_v13, %v6130_v57  ;;  %v6134_v30 = vrot.slane %v5624_v31, %v5143_v32  ;;  %v3837_v28 = vrot.slane %v5698_v19, 9  ;;  %vm6145_vm4 = vmmov %vm6135_vm6  ;;  %4105 = vmatprep.subr.mxu1 %v3248_v1  ;;  %v3891_v57 = vld [vmem:[#allocation25] ss:$0 sm:$0xff] }
 0x693   :  { %v3062_v3 = vrot.slane %v3038_v6, 4  ;;  %v3613_v23 = vsel %vm1397_vm12, %v6132_v37, %v5705_v34  ;;  %v3030_v0 = vsel %vm6133_vm13, %v2963_v54, %v3029_v53  ;;  %v3578_v24 = vrot.slane %v5654_v47, %v5143_v32  ;;  %vm6146_vm13 = vmmov %vm6139_vm9  ;;  %4106 = vmatpush3.msra.mxu1 %v3248_v1 }
 0x694   :  { %v3614_v25 = vsel %vm6135_vm6, %v6134_v30, %v3613_v23  ;;  %v6136_v10 = vrot.slane %v5626_v4, %v5143_v32  ;;  %v3594_v16 = vrot.slane %v5682_v39, %v5143_v32  ;;  %v3031_v31 = vsel %vm6137_vm15, %v2967_v48, %v3030_v0  ;;  %vm6147_vm6 = vmmov %vm6141_vm3 }
 0x695   :  { %v3065_v27 = vsel %vm495_vm1, %v3062_v3, %v3064_v14  ;;  %v6138_v7 = vrot.slane %v5639_v29, %v5143_v32  ;;  %v6140_v49 = vrot.slane %v5644_v50, 9  ;;  %v3049_v4 = vsel %vm495_vm1, 0.0, %v3031_v31  ;;  %v3243_v14 = vld [vmem:[#allocation26] sm:$0xff] }
 0x696   :  { %v3615_v34 = vsel %vm1401_vm14, %v6136_v10, %v3614_v25  ;;  %3072 = vrot.lane.b32.xlu1 %v3065_v27, %s4577_s27  ;;  %v1970_v39 = vmax.f32 %v5698_v19, %v3837_v28  ;;  %v6142_v58 = vrot.slane %v5665_v45, %v5143_v32  ;;  %v6143_v2 = vrot.slane %v5673_v42, %v5143_v32 }
 0x697   :  { %v3616_v38 = vsel %vm6139_vm9, %v6138_v7, %v3615_v34  ;;  %v1969_v47 = vmax.f32 %v5644_v50, %v6140_v49  ;;  %v3598_v35 = vrot.slane %v5660_v26, %v5143_v32  ;;  %v3061_v63 = vrot.slane %v3049_v4, 4 }
 0x698   :  { %v5943_v59 = vsel %vm6141_vm3, %v3578_v24, %v3616_v38  ;;  %v3618_v29 = vsel %vm1407_vm11, %v6143_v2, %v6142_v58  ;;  %v6144_v50 = vrot.slane %v5675_v20, %v5143_v32  ;;  %v3602_v19 = vrot.slane %v5669_v61, %v5143_v32 }
 0x699   :  { %v3063_v45 = vsel %vm495_vm1, %v3061_v63, %v3062_v3  ;;  %v3606_v42 = vrot.slane %v1969_v47, %v5143_v32  ;;  %v3610_v26 = vrot.slane %v1970_v39, %v5143_v32  ;;  %v4597_v54 = vmov 0.0   ;;  %v3244_v3 = vld [vmem:[#allocation26 + $0x8] sm:$0xff]  ;;  %vm6148_vm1 = vmmov %vm6145_vm4 }
 0x69a   :  { %v3619_v5 = vsel %vm1395_vm10, %v6144_v50, %v3618_v29  ;;  %3084 = vrot.lane.b32.xlu1 %v3051_v17, %s4594_s13  ;;  %3070 = vrot.lane.b32.xlu0 %v3063_v45, %s4577_s27  ;;  %v3247_v17 = vld [vmem:[#allocation26 + $0x20] sm:$0xff]  ;;  %v3901_v45 = vld [vmem:[#allocation29] ss:$0 sm:$0xff] }
 0x69b   :  { %v3620_v56 = vsel %vm1397_vm12, %v3594_v16, %v3619_v5  ;;  %4107 = vmatprep.subr.mxu1 %v3247_v17  ;;  %v3896_v5 = vld [vmem:[#allocation28] ss:$0 sm:$0xff] }
 0x69c   :  { %v3621_v36 = vsel %vm6145_vm4, %v3598_v35, %v3620_v56  ;;  %4108 = vmatpush3.msra.mxu1 %v3247_v17 }
 0x69d   :  { %v3622_v20 = vsel %vm1401_vm14, %v3602_v19, %v3621_v36  ;;  %4109 = vmatprep.subr.mxu1 %v3246_v44 }
 0x69e   :  { %v3623_v22 = vsel %vm6146_vm13, %v3606_v42, %v3622_v20  ;;  %3082 = vrot.lane.b32.xlu0 %v3038_v6, %s4594_s13  ;;  %3228 = vrot.lane.b32.xlu1 %v4597_v54, %s4596_s20  ;;  %v3902_v20 = vld [vmem:[#allocation31] ss:$0 sm:$0xff] }
 0x69f   :  { %v5971_v61 = vsel %vm6147_vm6, %v3610_v26, %v3623_v22  ;;  %4110 = vmatpush3.msra.mxu1 %v3246_v44 }
 0x6f6   :  { %v3081_v55 = vpop.permute.xlu1 %3080 }
 0x6ff   :  { %v3079_v40 = vpop.permute.xlu0 %3078 }
 0x702   :  { %v3069_v51 = vpop.permute.xlu1 %3068 }
 0x703   :  { %v3091_v9 = vsel %vm452_vm5, %v3025_v11, %v3069_v51  ;;  %v3067_v52 = vpop.permute.xlu0 %3066 }
 0x704   :  { %v3090_v62 = vsel %vm452_vm5, %v3048_v60, %v3067_v52  ;;  %v3095_v41 = vsel %vm744_vm7, %v3091_v9, %v3081_v55 }
 0x705   :  { %v3094_v43 = vsel %vm744_vm7, %v3090_v62, %v3079_v40 }
 0x706   :  { %4099 = vmatprep.mubr.msk.f32.mxu0 %vm763_vm8, %v3094_v43 }
 0x707   :  { %4100 = vmatmul.mubr.msk.f32.vlgmr.msra.gmra.mxu0 %vm763_vm8, %v3095_v41 }
 0x708   :  { %v3073_v18 = vpop.permute.xlu1 %3072 }
 0x709   :  { %v3093_v33 = vsel %vm452_vm5, %v3038_v6, %v3073_v18  ;;  %v3245_v6 = vld [vmem:[#allocation26 + $0x10] sm:$0xff] }
 0x70a   :  { %4111 = vmatprep.subr.mxu1 %v3245_v6 }
 0x70b   :  { %4112 = vmatpush3.msra.mxu1 %v3245_v6 }
 0x70c   :  { %v3071_v46 = vpop.permute.xlu0 %3070  ;;  %v3085_v8 = vpop.permute.xlu1 %3084  ;;  %4113 = vmatprep.subr.mxu1 %v3244_v3 }
 0x70d   :  { %v3092_v15 = vsel %vm452_vm5, %v3049_v4, %v3071_v46  ;;  %v3097_v11 = vsel %vm744_vm7, %v3093_v33, %v3085_v8  ;;  %4114 = vmatpush3.msra.mxu1 %v3244_v3  ;;  %vm6149_vm5 = vmmov %vm6139_vm9 }
 0x70e   :  { %4115 = vmatprep.subr.mxu1 %v3243_v14  ;;  %vm6152_vm15 = vmmov %vm6149_vm5 }
 0x70f   :  { %4116 = vmatpush3.msra.mxu1 %v3243_v14  ;;  %vm6153_vm9 = vmmov %vm6141_vm3 }
 0x710   :  { %v3083_v21 = vpop.permute.xlu0 %3082  ;;  %v3229_v34 = vpop.permute.xlu1 %3228 }
 0x711   :  { %v3096_v60 = vsel %vm744_vm7, %v3092_v15, %v3083_v21 }
 0x712   :  { %4102 = vmatprep.mubr.msk.f32.mxu0 %vm763_vm8, %v3096_v60 }
 0x713   :  { %4103 = vmatmul.mubr.msk.f32.gmra.mxu0 %vm763_vm8, %v3097_v11  ;;  %vm6150_vm8 = vmmov %vm6141_vm3 }
 0x7c7   :  { %v4101_v13 = vpop.f32.mrf.mxu0 }
 0x7c8   :  { %v3192_v53 = vadd.f32 %v4101_v13, %v3891_v57 }
 0x7c9   :  { %v3186_v37 = vpop.f32.mrf.mxu0 }
 0x7ca   :  { %v3206_v23 = vmax.f32 %v3192_v53, 0.0  ;;  %v3187_v48 = vadd.f32 %v3891_v57, %v3186_v37 }
 0x7cc   :  { %3226 = vrot.lane.b32.xlu0 %v3206_v23, %s4596_s20  ;;  %3215 = vrot.lane.b32.xlu1 %v3206_v23, %s4594_s13  ;;  %v3205_v0 = vmax.f32 %v3187_v48, 0.0 }
 0x7d0   :  { %3213 = vrot.lane.b32.xlu0 %v3205_v0, %s4594_s13 }
 0x7d3   :  { %v4104_v30 = vpop.f32.mrf.mxu0 }
 0x7d4   :  { %v3202_v25 = vadd.f32 %v4104_v30, %v3891_v57 }
 0x7d5   :  { %v3196_v28 = vpop.f32.mrf.mxu0 }
 0x7d6   :  { %v3208_v27 = vmax.f32 %v3202_v25, 0.0  ;;  %v3197_v24 = vadd.f32 %v3891_v57, %v3196_v28 }
 0x7d8   :  { %v3207_v10 = vmax.f32 %v3197_v24, 0.0  ;;  %3219 = vrot.lane.b32.xlu1 %v3208_v27, %s4594_s13 }
 0x7da   :  { %3217 = vrot.lane.b32.xlu0 %v3207_v10, %s4594_s13 }
 0x7de   :  { %3230 = vrot.lane.b32.xlu0 %v3208_v27, %s4596_s20 }
 0x83e   :  { %v3227_v16 = vpop.permute.xlu0 %3226  ;;  %v3216_v31 = vpop.permute.xlu1 %3215 }
 0x83f   :  { %v3236_v7 = vsel %vm744_vm7, %v3205_v0, %v3216_v31 }
 0x840   :  { %v3240_v4 = vsel %vm1677_vm0, %v3236_v7, %v3229_v34 }
 0x842   :  { %v3214_v38 = vpop.permute.xlu0 %3213 }
 0x843   :  { %v3235_v49 = vsel %vm744_vm7, 0.0, %v3214_v38 }
 0x844   :  { %v3239_v47 = vsel %vm1677_vm0, %v3235_v49, %v3227_v16 }
 0x845   :  { %4117 = vmatprep.mubr.msk.f32.mxu1 %vm1695_vm2, %v3239_v47 }
 0x846   :  { %4118 = vmatmul.mubr.msk.f32.vlgmr.msra.gmra.mxu1 %vm1695_vm2, %v3240_v4 }
 0x84a   :  { %v3220_v39 = vpop.permute.xlu1 %3219 }
 0x84b   :  { %v3238_v2 = vsel %vm744_vm7, %v3207_v10, %v3220_v39 }
 0x84c   :  { %v3218_v58 = vpop.permute.xlu0 %3217  ;;  %v3242_v50 = vsel %vm1677_vm0, %v3238_v2, %v3229_v34 }
 0x84d   :  { %v3237_v29 = vsel %vm744_vm7, 0.0, %v3218_v58 }
 0x850   :  { %v3231_v35 = vpop.permute.xlu0 %3230 }
 0x851   :  { %v3241_v63 = vsel %vm1677_vm0, %v3237_v29, %v3231_v35 }
 0x852   :  { %4120 = vmatprep.mubr.msk.f32.mxu1 %vm1695_vm2, %v3241_v63 }
 0x853   :  { %4121 = vmatmul.mubr.msk.f32.gmra.mxu1 %vm1695_vm2, %v3242_v50  ;;  %vm6151_vm2 = vmmov %vm6148_vm1 }
 0x906   :  { %v4119_v19 = vpop.f32.mrf.mxu1 }
 0x907   :  { %v3340_v56 = vadd.f32 %v4119_v19, %v3896_v5 }
 0x908   :  { %v3334_v42 = vpop.f32.mrf.mxu1 }
 0x909   :  { %v3354_v36 = vmax.f32 %v3340_v56, 0.0  ;;  %v3335_v26 = vadd.f32 %v3896_v5, %v3334_v42 }
 0x90b   :  { %v3365_v22 = vmul.f32 %v3901_v45, %v3354_v36  ;;  %v3353_v55 = vmax.f32 %v3335_v26, 0.0 }
 0x90d   :  { %v3376_v40 = vadd.f32 %v3902_v20, %v3365_v22  ;;  %v3364_v51 = vmul.f32 %v3901_v45, %v3353_v55 }
 0x90f   :  { %v3400_v9 = vcombine.high %v3376_v40, %v3376_v40  ;;  %v3407_v52 = vrot.slane %v3376_v40, %v5136_v12  ;;  %v3375_v62 = vadd.f32 %v3902_v20, %v3364_v51 }
 0x911   :  { %v3414_v43 = vrot.slane %v3400_v9, %v5136_v12  ;;  %v3415_v41 = vcombine.high %v3407_v52, %v3407_v52  ;;  %v3383_v18 = vcombine.high %v3375_v62, %v3375_v62  ;;  %v3390_v46 = vrot.slane %v3375_v62, %v5136_v12 }
 0x912   :  { %v3907_v33 = vrot.slane %v3407_v52, 9 }
 0x913   :  { %v4122_v8 = vpop.f32.mrf.mxu1  ;;  %v3397_v15 = vrot.slane %v3383_v18, %v5136_v12  ;;  %v3908_v21 = vrot.slane %v3415_v41, 9  ;;  %v3398_v60 = vcombine.high %v3390_v46, %v3390_v46  ;;  %v3903_v54 = vrot.slane %v3390_v46, 9 }
 0x914   :  { %v3350_v11 = vadd.f32 %v4122_v8, %v3896_v5  ;;  %v3416_v17 = vcombine.high %v3414_v43, %v3414_v43  ;;  %v3909_v53 = vrot.slane %v3414_v43, 9  ;;  %v3519_v25 = vmax.f32 %v3407_v52, %v3907_v33 }
 0x915   :  { %v3344_v1 = vpop.f32.mrf.mxu1  ;;  %v3399_v44 = vcombine.high %v3397_v15, %v3397_v15  ;;  %v3905_v6 = vrot.slane %v3397_v15, 9  ;;  %v3904_v57 = vrot.slane %v3398_v60, 9  ;;  %v3515_v13 = vmax.f32 %v3390_v46, %v3903_v54 }
 0x916   :  { %v3356_v3 = vmax.f32 %v3350_v11, 0.0  ;;  %v3345_v14 = vadd.f32 %v3896_v5, %v3344_v1  ;;  %v3910_v37 = vrot.slane %v3416_v17, 9  ;;  %v3520_v27 = vmax.f32 %v3415_v41, %v3908_v21 }
 0x917   :  { %v3906_v23 = vrot.slane %v3399_v44, 9  ;;  %v3517_v48 = vmax.f32 %v3397_v15, %v3905_v6  ;;  %v3516_v28 = vmax.f32 %v3398_v60, %v3904_v57  ;;  %v3646_v10 = vrot.slane %v3515_v13, %v5143_v32 }
 0x918   :  { %v3367_v0 = vmul.f32 %v3901_v45, %v3356_v3  ;;  %v3355_v30 = vmax.f32 %v3345_v14, 0.0  ;;  %v3521_v38 = vmax.f32 %v3414_v43, %v3909_v53  ;;  %v3522_v49 = vmax.f32 %v3416_v17, %v3910_v37 }
 0x919   :  { %v3518_v24 = vmax.f32 %v3399_v44, %v3906_v23  ;;  %v3650_v31 = vrot.slane %v3516_v28, %v5143_v32  ;;  %v3654_v7 = vrot.slane %v3517_v48, %v5143_v32  ;;  %v3662_v63 = vrot.slane %v3519_v25, %v5143_v32 }
 0x91a   :  { %v3378_v34 = vadd.f32 %v3902_v20, %v3367_v0  ;;  %v3366_v16 = vmul.f32 %v3901_v45, %v3355_v30  ;;  %v3666_v19 = vrot.slane %v3520_v27, %v5143_v32  ;;  %v3670_v42 = vrot.slane %v3521_v38, %v5143_v32 }
 0x91b   :  { %v3658_v58 = vrot.slane %v3518_v24, %v5143_v32  ;;  %v3707_v2 = vsel %vm1407_vm11, %v3650_v31, %v3646_v10  ;;  %v3674_v36 = vrot.slane %v3522_v49, %v5143_v32 }
 0x91c   :  { %v3434_v47 = vcombine.high %v3378_v34, %v3378_v34  ;;  %v3441_v4 = vrot.slane %v3378_v34, %v5136_v12  ;;  %v3377_v39 = vadd.f32 %v3902_v20, %v3366_v16  ;;  %v3708_v56 = vsel %vm1395_vm10, %v3654_v7, %v3707_v2 }
 0x91d   :  { %v3709_v26 = vsel %vm1397_vm12, %v3658_v58, %v3708_v56 }
 0x91e   :  { %v3448_v29 = vrot.slane %v3434_v47, %v5136_v12  ;;  %v3417_v35 = vcombine.high %v3377_v39, %v3377_v39  ;;  %v3449_v50 = vcombine.high %v3441_v4, %v3441_v4  ;;  %v3424_v5 = vrot.slane %v3377_v39, %v5136_v12 }
 0x91f   :  { %v3710_v55 = vsel %vm6148_vm1, %v3662_v63, %v3709_v26  ;;  %v3915_v51 = vrot.slane %v3441_v4, 9 }
 0x920   :  { %v3431_v45 = vrot.slane %v3417_v35, %v5136_v12  ;;  %v3432_v20 = vcombine.high %v3424_v5, %v3424_v5  ;;  %v3911_v22 = vrot.slane %v3424_v5, 9  ;;  %v3450_v40 = vcombine.high %v3448_v29, %v3448_v29 }
 0x921   :  { %v3711_v62 = vsel %vm1401_vm14, %v3666_v19, %v3710_v55  ;;  %v3916_v43 = vrot.slane %v3449_v50, 9  ;;  %v3917_v15 = vrot.slane %v3448_v29, 9  ;;  %v3527_v60 = vmax.f32 %v3441_v4, %v3915_v51 }
 0x922   :  { %v3433_v9 = vcombine.high %v3431_v45, %v3431_v45  ;;  %v3913_v52 = vrot.slane %v3431_v45, 9  ;;  %v3912_v41 = vrot.slane %v3432_v20, 9  ;;  %v3523_v18 = vmax.f32 %v3424_v5, %v3911_v22 }
 0x923   :  { %v3712_v12 = vsel %vm6149_vm5, %v3670_v42, %v3711_v62  ;;  %v3918_v21 = vrot.slane %v3450_v40, 9  ;;  %v3528_v6 = vmax.f32 %v3449_v50, %v3916_v43  ;;  %v3529_v3 = vmax.f32 %v3448_v29, %v3917_v15 }
 0x924   :  { %v3914_v46 = vrot.slane %v3433_v9, 9  ;;  %v3525_v8 = vmax.f32 %v3431_v45, %v3913_v52  ;;  %v3713_v33 = vsel %vm6150_vm8, %v3674_v36, %v3712_v12  ;;  %v3524_v11 = vmax.f32 %v3432_v20, %v3912_v41 }
 0x925   :  { %3721 = vrot.lane.b32.xlu1 %v3713_v33, %s4594_s13  ;;  %v3678_v17 = vrot.slane %v3523_v18, %v5143_v32  ;;  %v3530_v57 = vmax.f32 %v3450_v40, %v3918_v21  ;;  %v3694_v53 = vrot.slane %v3527_v60, %v5143_v32  ;;  %v3698_v23 = vrot.slane %v3528_v6, %v5143_v32 }
 0x926   :  { %v3526_v54 = vmax.f32 %v3433_v9, %v3914_v46  ;;  %v3686_v1 = vrot.slane %v3525_v8, %v5143_v32  ;;  %v3682_v44 = vrot.slane %v3524_v11, %v5143_v32  ;;  %v3702_v0 = vrot.slane %v3529_v3, %v5143_v32 }
 0x927   :  { %v3706_v25 = vrot.slane %v3530_v57, %v5143_v32 }
 0x928   :  { %v3690_v14 = vrot.slane %v3526_v54, %v5143_v32  ;;  %v3714_v13 = vsel %vm1407_vm11, %v3682_v44, %v3678_v17 }
 0x929   :  { %v3715_v37 = vsel %vm1395_vm10, %v3686_v1, %v3714_v13 }
 0x92a   :  { %v3716_v48 = vsel %vm1397_vm12, %v3690_v14, %v3715_v37 }
 0x92b   :  { %v3717_v30 = vsel %vm6151_vm2, %v3694_v53, %v3716_v48 }
 0x92c   :  { %v3718_v28 = vsel %vm1401_vm14, %v3698_v23, %v3717_v30 }
 0x92d   :  { %v3719_v27 = vsel %vm6152_vm15, %v3702_v0, %v3718_v28 }
 0x92e   :  { %v3720_v24 = vsel %vm6153_vm9, %v3706_v25, %v3719_v27 }
 0x92f   :  { %3723 = vrot.lane.b32.xlu0 %v3720_v24, %s4594_s13 }
 0x997   :  { %v3722_v10 = vpop.permute.xlu1 %3721 }
 0x998   :  { %v3727_v34 = vsel %vm744_vm7, %v5943_v59, %v3722_v10 }
 0x999   :  { %3729 = vst.msk [vmem:[#allocation32] sm:$0xff] %vm1677_vm0, %v3727_v34 }
 0x9a1   :  { %v3724_v16 = vpop.permute.xlu0 %3723 }
 0x9a2   :  { %v3728_v32 = vsel %vm744_vm7, %v5971_v61, %v3724_v16 }
 0x9a3   :  { %3730 = vst.msk [vmem:[#allocation32 + $0x8] sm:$0xff] %vm1677_vm0, %v3728_v32 }
 0x9a4   :  { %4541 = shalt.err (!%p4538_p1)
}
 0x9a5   :  { %3742 = dma.vmem_to_hbm [thread:$0]  %s3737_s22, 256, %s6082_s25, [#allocation4], %s4576_s30, %s4576_s30, %s4577_s27  }
 0x9a6   :  { %4570 = dma.done.wait [#allocation4], 256  }
 0x9a7   :  { %4571 = vsyncadd [#allocation4], 4294967040 }
 0x9a8   :  { %3746 = vsyncpa [#allocation3], 1 }
 0x9a9   :  { %3747 = vsyncpa [#allocation6], 1 }
 0x9aa   :  { %3748 = vsyncpa [#allocation9], 1 }
 0x9ab   :  { %3749 = vsyncpa [#allocation12], 1 }
 0x9ac   :  { %3750 = vsyncpa [#allocation15], 1 }
 0x9ad   :  { %3751 = vsyncpa [#allocation18], 1 }
 0x9ae   :  { %3752 = vsyncpa [#allocation21], 1 }
 0x9af   :  { %3753 = vsyncpa [#allocation24], 1 }
 0x9b0   :  { %3754 = vsyncpa [#allocation27], 1 }
 0x9b1   :  { %3755 = vsyncpa [#allocation30], 1 }
 0x9b2   :  { %3756 = vsyncpa [#allocation4], 1 }

</bundles_post_ra>
